<compile_context>
chip_gen: v7x
topology: tpu7x:2x2x1
jax: 0.10.0
libtpu: 0.0.40
codegen_flags: <defaults>
</compile_context>

<pallas_src>
import functools

import numpy as np

import jax
import jax.numpy as jnp
from jax.experimental import pallas as pl
from jax.experimental.pallas import tpu as pltpu

LEAKY = 0.2
BN_EPS = 0.8   # nn.BatchNorm2d(out_filters, 0.8): 0.8 lands on eps (kept faithful)


def _conv_out(n):
    # Conv2d(kernel=3, stride=2, padding=1) output size.
    return (n - 1) // 2 + 1


# ---------------------------------------------------------------------------
# Fused kernel: 4 conv blocks + merged heads, B_TILE images per grid step.
# ---------------------------------------------------------------------------
def _disc_kernel(*refs, has_bn, n_classes):
    """refs layout:
         img_ref                                   (B, Hin*Win*Cin)   bf16
         per conv block: t_ref                     (K_l, N_l)         bf16
                         bias_ref                  (1, N_l)           f32
                         [scale_ref, shift_ref]    (1, N_l)           f32  (BN only)
         wh_ref                                    (fdim, NPAD)       bf16
         bh_ref                                    (1, NPAD)          f32
         out_ref                                   (B, NPAD)          f32
    """
    idx = 0
    img_ref = refs[idx]; idx += 1
    x = img_ref[...]                                   # (B, H*W*C) bf16, cast in wrapper

    for bn in has_bn:
        t_ref = refs[idx]; idx += 1
        b_ref = refs[idx]; idx += 1
        # Whole Conv2d(3, stride 2, pad 1) as ONE MXU matmul: taps, stride and
        # zero padding are folded into t_ref host-side.  M = batch tile,
        # K and N are lane-dense multiples of 128.
        y = jnp.dot(x, t_ref[...], preferred_element_type=jnp.float32)
        y = y + b_ref[...]                             # conv bias
        y = jnp.where(y >= 0.0, y, LEAKY * y)          # LeakyReLU(0.2)
        # Dropout2d(0.25): identity in inference mode.
        if bn:                                         # folded eval BatchNorm
            s_ref = refs[idx]; idx += 1
            sh_ref = refs[idx]; idx += 1
            y = y * s_ref[...] + sh_ref[...]
        x = y.astype(jnp.bfloat16)                     # next block / heads input

    wh_ref = refs[idx]; idx += 1
    bh_ref = refs[idx]; idx += 1
    out_ref = refs[idx]

    # Merged heads: one lane-dense matmul -> [adv | aux(softmax) | latent | 0].
    raw = jnp.dot(x, wh_ref[...], preferred_element_type=jnp.float32) + bh_ref[...]

    npad = raw.shape[-1]
    col = jax.lax.broadcasted_iota(jnp.int32, (1, npad), 1)
    is_cls = jnp.logical_and(col >= 1, col < 1 + n_classes)
    # Softmax(dim=1) only over the class columns; other columns pass through.
    z = jnp.where(is_cls, raw, -1e30)
    zmax = jnp.max(z, axis=-1, keepdims=True)
    e = jnp.exp(z - zmax)
    denom = jnp.sum(e, axis=-1, keepdims=True)
    prob = e / denom                                   # exact divide (review feedback)
    out_ref[...] = jnp.where(is_cls, prob, raw)


# ---------------------------------------------------------------------------
# Wrapper
# ---------------------------------------------------------------------------
def discriminator_forward(params, img_nchw, b_tile=32):
    """Returns (validity, label, latent_code) matching the torch module."""
    meta = params["meta"]
    n, c, h, w = img_nchw.shape
    feat_in = h * w * c

    # NCHW -> per-image NHWC-flattened row; bf16 cast in the wrapper so the
    # HBM->VMEM image DMA moves half the bytes (review feedback).
    x = jnp.transpose(img_nchw, (0, 2, 3, 1)).reshape(n, feat_in).astype(jnp.bfloat16)

    # Batch tiling: B_TILE images per grid step, stacked on the matmul M axis.
    if n <= b_tile:
        bt = n                                  # single step; block == full array
        n_pad = n
    else:
        bt = ((b_tile + 7) // 8) * 8            # sub-array blocks: sublane multiple of 8
        n_pad = ((n + bt - 1) // bt) * bt
        if n_pad != n:
            x = jnp.pad(x, ((0, n_pad - n), (0, 0)))
    grid = (n_pad // bt,)

    def const2d(a):
        # Full-array constant operand (weights / bias / scale / shift).
        # VMEM is far under budget here so default buffering is fine;
        # pl.Buffered(1) could halve the constant footprint if ever needed.
        return pl.BlockSpec(a.shape, lambda i: (0, 0))

    operands = [x]
    in_specs = [pl.BlockSpec((bt, feat_in), lambda i: (i, 0))]
    for blk in params["blocks"]:
        operands += [blk["t"], blk["bias"]]
        in_specs += [const2d(blk["t"]), const2d(blk["bias"])]
        if blk["bn"]:
            operands += [blk["scale"], blk["shift"]]
            in_specs += [const2d(blk["scale"]), const2d(blk["shift"])]
    operands += [params["w_heads"], params["b_heads"]]
    in_specs += [const2d(params["w_heads"]), const2d(params["b_heads"])]

    npad = params["b_heads"].shape[-1]
    kernel = functools.partial(_disc_kernel, has_bn=meta["has_bn"],
                               n_classes=meta["n_classes"])
    out = pl.pallas_call(
        kernel,
        grid=grid,
        in_specs=in_specs,
        out_specs=pl.BlockSpec((bt, npad), lambda i: (i, 0)),
        out_shape=jax.ShapeDtypeStruct((n_pad, npad), jnp.float32),
        compiler_params=pltpu.CompilerParams(
            # Batch-tile axis is fully independent; "parallel" keeps it
            # shardable across cores while compiling cleanly on every gen.
            # TODO(synk): use pltpu.CORE_PARALLEL / pl.core_map for explicit
            # 2-TC sharding on v7x once that path is needed.
            dimension_semantics=("parallel",),
            # Explicit VMEM budget (review feedback): folded weights are
            # ~3.3 MB bf16; activations are (B_TILE, 1024) f32.
            vmem_limit_bytes=32 * 1024 * 1024,
        ),
    )(*operands)

    nc, cd = meta["n_classes"], meta["code_dim"]
    validity = out[:n, 0:1]
    label = out[:n, 1:1 + nc]
    latent_code = out[:n, 1 + nc:1 + nc + cd]
    return validity, label, latent_code


# ---------------------------------------------------------------------------
# Parameter construction / lowering
# ---------------------------------------------------------------------------
def make_torch_like_params(key, num_channels, n_classes, code_dim, img_size):
    """Synthetic parameters in PyTorch layouts (as if read from the nn.Module)."""
    specs = [(num_channels, 16, False), (16, 32, True), (32, 64, True), (64, 128, True)]
    blocks = []
    for cin, cout, bn in specs:
        key, k1, k2, k3, k4, k5, k6 = jax.random.split(key, 7)
        blk = {
            "weight": 0.1 * jax.random.normal(k1, (cout, cin, 3, 3), jnp.float32),
            "bias": 0.05 * jax.random.normal(k2, (cout,), jnp.float32),
            "bn": bn,
        }
        if bn:
            blk["gamma"] = 1.0 + 0.1 * jax.random.normal(k3, (cout,), jnp.float32)
            blk["beta"] = 0.05 * jax.random.normal(k4, (cout,), jnp.float32)
            blk["mean"] = 0.05 * jax.random.normal(k5, (cout,), jnp.float32)
            blk["var"] = 0.5 + jax.random.uniform(k6, (cout,), jnp.float32)
        blocks.append(blk)

    ds = img_size
    for _ in range(4):
        ds = _conv_out(ds)
    fdim = 128 * ds * ds

    key, k1, k2, k3, k4, k5, k6 = jax.random.split(key, 7)
    return {
        "blocks": blocks,
        # torch Linear layout: (out_features, in_features)
        "w_adv": 0.1 * jax.random.normal(k1, (1, fdim), jnp.float32),
        "b_adv": 0.05 * jax.random.normal(k2, (1,), jnp.float32),
        "w_aux": 0.1 * jax.random.normal(k3, (n_classes, fdim), jnp.float32),
        "b_aux": 0.05 * jax.random.normal(k4, (n_classes,), jnp.float32),
        "w_lat": 0.1 * jax.random.normal(k5, (code_dim, fdim), jnp.float32),
        "b_lat": 0.05 * jax.random.normal(k6, (code_dim,), jnp.float32),
    }


def prepare_params(tparams, num_channels, n_classes, code_dim, img_size):
    """Lower torch-layout weights into the fused-kernel layout (one-time prep).

    Each Conv2d(3, stride 2, pad 1) is folded into a dense matrix
    T_l : (Hin*Win*Cin, Hout*Wout*Cout) acting on per-image NHWC-flattened
    rows (at img_size=16 the largest T is 1024x1024 = 2 MB bf16).  For much
    larger images one would keep a per-kh factorisation instead of the full
    fold to bound weight VMEM.
    """
    h = w = img_size
    cin = num_channels
    blocks, has_bn = [], []
    for blk in tparams["blocks"]:
        wt = np.asarray(blk["weight"], np.float32)          # (cout, cin, 3, 3)
        cout = wt.shape[0]
        ho, wo = _conv_out(h), _conv_out(w)
        T = np.zeros((h * w * cin, ho * wo * cout), np.float32)
        for oh in range(ho):
            for ow in range(wo):
                oc0 = (oh * wo + ow) * cout
                for kh in range(3):
                    ih = 2 * oh + kh - 1
                    if not 0 <= ih < h:
                        continue                            # zero-padding row
                    for kw in range(3):
                        iw = 2 * ow + kw - 1
                        if not 0 <= iw < w:
                            continue                        # zero-padding col
                        ir0 = (ih * w + iw) * cin
                        T[ir0:ir0 + cin, oc0:oc0 + cout] += wt[:, :, kh, kw].T
        nsp = ho * wo
        entry = {
            "t": jnp.asarray(T, jnp.bfloat16),
            "bias": jnp.asarray(np.tile(np.asarray(blk["bias"], np.float32), nsp)[None, :]),
            "bn": bool(blk["bn"]),
        }
        if blk["bn"]:
            scale = np.asarray(blk["gamma"], np.float32) / np.sqrt(
                np.asarray(blk["var"], np.float32) + BN_EPS)
            shift = np.asarray(blk["beta"], np.float32) - \
                np.asarray(blk["mean"], np.float32) * scale
            entry["scale"] = jnp.asarray(np.tile(scale, nsp)[None, :])
            entry["shift"] = jnp.asarray(np.tile(shift, nsp)[None, :])
        blocks.append(entry)
        has_bn.append(bool(blk["bn"]))
        h, w, cin = ho, wo, cout

    ds, cout_last = h, cin
    fdim = cout_last * ds * ds
    # Merge the three heads into one matmul, zero-padded to a 128-lane multiple.
    wcat = np.concatenate([np.asarray(tparams["w_adv"], np.float32).T,
                           np.asarray(tparams["w_aux"], np.float32).T,
                           np.asarray(tparams["w_lat"], np.float32).T], axis=1)
    bcat = np.concatenate([np.asarray(tparams["b_adv"], np.float32),
                           np.asarray(tparams["b_aux"], np.float32),
                           np.asarray(tparams["b_lat"], np.float32)])
    n_heads = wcat.shape[1]
    npad = ((n_heads + 127) // 128) * 128
    wpad = np.zeros((fdim, npad), np.float32)
    wpad[:, :n_heads] = wcat
    bpad = np.zeros((1, npad), np.float32)
    bpad[0, :n_heads] = bcat
    # Reorder rows from torch's NCHW flatten (c, h, w) to the kernel's (h, w, c).
    perm = np.array([cc * ds * ds + hh * ds + ww
                     for hh in range(ds) for ww in range(ds) for cc in range(cout_last)],
                    dtype=np.int64)
    w_heads = wpad[perm]                                   # (fdim, npad)

    return {
        "blocks": blocks,
        "w_heads": jnp.asarray(w_heads, jnp.bfloat16),
        "b_heads": jnp.asarray(bpad),
        "meta": {"has_bn": tuple(has_bn), "n_classes": n_classes, "code_dim": code_dim},
    }


# ---------------------------------------------------------------------------
# Pure-JAX reference (f32) for correctness checking
# ---------------------------------------------------------------------------
def reference_forward(tparams, img_nchw):
    x = img_nchw.astype(jnp.float32)
    for blk in tparams["blocks"]:
        x = jax.lax.conv_general_dilated(
            x, blk["weight"], window_strides=(2, 2), padding=[(1, 1), (1, 1)],
            dimension_numbers=("NCHW", "OIHW", "NCHW"))
        x = x + blk["bias"][None, :, None, None]
        x = jnp.where(x >= 0.0, x, LEAKY * x)
        if blk["bn"]:
            inv = 1.0 / jnp.sqrt(blk["var"] + BN_EPS)
            x = ((x - blk["mean"][None, :, None, None])
                 * (blk["gamma"] * inv)[None, :, None, None]
                 + blk["beta"][None, :, None, None])
    feat = x.reshape(x.shape[0], -1)
    validity = feat @ tparams["w_adv"].T + tparams["b_adv"]
    label = jax.nn.softmax(feat @ tparams["w_aux"].T + tparams["b_aux"], axis=1)
    latent = feat @ tparams["w_lat"].T + tparams["b_lat"]
    return validity, label, latent


if __name__ == "__main__":
    code_dim, n_classes, num_channels, img_size = 2, 10, 4, 16
    batch = 10      # not a multiple of the batch tile -> exercises padding
    b_tile = 8      # small tile so the test also exercises >1 grid step

    key = jax.random.PRNGKey(0)
    kp, kx = jax.random.split(key)
    tparams = make_torch_like_params(kp, num_channels, n_classes, code_dim, img_size)
    params = prepare_params(tparams, num_channels, n_classes, code_dim, img_size)
    img = jax.random.normal(kx, (batch, num_channels, img_size, img_size),
                            jnp.float32)

    fwd = jax.jit(functools.partial(discriminator_forward, params, b_tile=b_tile))
    validity, label, latent_code = fwd(img)
    jax.block_until_ready((validity, label, latent_code))

    assert validity.shape == (batch, 1)
    assert label.shape == (batch, n_classes)
    assert latent_code.shape == (batch, code_dim)
    # Exact softmax divide -> label rows sum to 1 up to f32 rounding.
    assert bool(jnp.all(jnp.abs(jnp.sum(label, axis=-1) - 1.0) < 1e-3))

    # Compare against the pure-JAX f32 reference (kernel uses bf16 MXU operands).
    v_ref, l_ref, c_ref = reference_forward(tparams, img)
    np.testing.assert_allclose(np.asarray(validity), np.asarray(v_ref),
                               atol=5e-2, rtol=5e-2)
    np.testing.assert_allclose(np.asarray(label), np.asarray(l_ref),
                               atol=5e-2, rtol=5e-2)
    np.testing.assert_allclose(np.asarray(latent_code), np.asarray(c_ref),
                               atol=5e-2, rtol=5e-2)

    print("KERNEL_OK")
</pallas_src>

<mosaic_0001>
module attributes {stable_mosaic.version = 11 : i64} {
  func.func @_disc_kernel(%arg0: i32, %arg1: memref<8x1024xbf16, #tpu.memory_space<vmem>>, %arg2: memref<1024x1024xbf16, #tpu.memory_space<vmem>>, %arg3: memref<1x1024xf32, #tpu.memory_space<vmem>>, %arg4: memref<1024x512xbf16, #tpu.memory_space<vmem>>, %arg5: memref<1x512xf32, #tpu.memory_space<vmem>>, %arg6: memref<1x512xf32, #tpu.memory_space<vmem>>, %arg7: memref<1x512xf32, #tpu.memory_space<vmem>>, %arg8: memref<512x256xbf16, #tpu.memory_space<vmem>>, %arg9: memref<1x256xf32, #tpu.memory_space<vmem>>, %arg10: memref<1x256xf32, #tpu.memory_space<vmem>>, %arg11: memref<1x256xf32, #tpu.memory_space<vmem>>, %arg12: memref<256x128xbf16, #tpu.memory_space<vmem>>, %arg13: memref<1x128xf32, #tpu.memory_space<vmem>>, %arg14: memref<1x128xf32, #tpu.memory_space<vmem>>, %arg15: memref<1x128xf32, #tpu.memory_space<vmem>>, %arg16: memref<128x128xbf16, #tpu.memory_space<vmem>>, %arg17: memref<1x128xf32, #tpu.memory_space<vmem>>, %arg18: memref<8x128xf32, #tpu.memory_space<vmem>>) attributes {dimension_semantics = [#tpu.dimension_semantics<parallel>], iteration_bounds = array<i64: 2>, scalar_prefetch = 0 : i64, scratch_operands = 0 : i64, tpu.core_type = #tpu.core_type<tc>, window_params = [{transform_indices = @transform_0, window_bounds = array<i64: 8, 1024>}, {pipeline_mode = #tpu.pipeline_mode<synchronous>, transform_indices = @transform_1, window_bounds = array<i64: 1024, 1024>}, {pipeline_mode = #tpu.pipeline_mode<synchronous>, transform_indices = @transform_2, window_bounds = array<i64: 1, 1024>}, {pipeline_mode = #tpu.pipeline_mode<synchronous>, transform_indices = @transform_3, window_bounds = array<i64: 1024, 512>}, {pipeline_mode = #tpu.pipeline_mode<synchronous>, transform_indices = @transform_4, window_bounds = array<i64: 1, 512>}, {pipeline_mode = #tpu.pipeline_mode<synchronous>, transform_indices = @transform_5, window_bounds = array<i64: 1, 512>}, {pipeline_mode = #tpu.pipeline_mode<synchronous>, transform_indices = @transform_6, window_bounds = array<i64: 1, 512>}, {pipeline_mode = #tpu.pipeline_mode<synchronous>, transform_indices = @transform_7, window_bounds = array<i64: 512, 256>}, {pipeline_mode = #tpu.pipeline_mode<synchronous>, transform_indices = @transform_8, window_bounds = array<i64: 1, 256>}, {pipeline_mode = #tpu.pipeline_mode<synchronous>, transform_indices = @transform_9, window_bounds = array<i64: 1, 256>}, {pipeline_mode = #tpu.pipeline_mode<synchronous>, transform_indices = @transform_10, window_bounds = array<i64: 1, 256>}, {pipeline_mode = #tpu.pipeline_mode<synchronous>, transform_indices = @transform_11, window_bounds = array<i64: 256, 128>}, {pipeline_mode = #tpu.pipeline_mode<synchronous>, transform_indices = @transform_12, window_bounds = array<i64: 1, 128>}, {pipeline_mode = #tpu.pipeline_mode<synchronous>, transform_indices = @transform_13, window_bounds = array<i64: 1, 128>}, {pipeline_mode = #tpu.pipeline_mode<synchronous>, transform_indices = @transform_14, window_bounds = array<i64: 1, 128>}, {pipeline_mode = #tpu.pipeline_mode<synchronous>, transform_indices = @transform_15, window_bounds = array<i64: 128, 128>}, {pipeline_mode = #tpu.pipeline_mode<synchronous>, transform_indices = @transform_16, window_bounds = array<i64: 1, 128>}, {transform_indices = @transform_17, window_bounds = array<i64: 8, 128>}]} {
    %c0 = arith.constant 0 : index
    %c0_0 = arith.constant 0 : index
    %0 = vector.load %arg1[%c0, %c0_0] : memref<8x1024xbf16, #tpu.memory_space<vmem>>, vector<8x1024xbf16>
    %c0_1 = arith.constant 0 : index
    %c0_2 = arith.constant 0 : index
    %1 = vector.load %arg2[%c0_1, %c0_2] : memref<1024x1024xbf16, #tpu.memory_space<vmem>>, vector<1024x1024xbf16>
    %cst = arith.constant dense<0.000000e+00> : vector<8x1024xf32>
    %2 = tpu.matmul %0, %1, %cst {dimension_numbers = #tpu.dot_dimension_numbers<[1], [0], [0], [1], [0, 0, 1, 1], [], []>} : vector<8x1024xbf16>, vector<1024x1024xbf16>, vector<8x1024xf32> -> vector<8x1024xf32>
    %c0_3 = arith.constant 0 : index
    %c0_4 = arith.constant 0 : index
    %3 = vector.load %arg3[%c0_3, %c0_4] : memref<1x1024xf32, #tpu.memory_space<vmem>>, vector<1x1024xf32>
    %4 = vector.broadcast %3 : vector<1x1024xf32> to vector<8x1024xf32>
    %5 = arith.addf %2, %4 : vector<8x1024xf32>
    %cst_5 = arith.constant 0.000000e+00 : f32
    %6 = vector.broadcast %cst_5 : f32 to vector<8x1024xf32>
    %7 = arith.cmpf oge, %5, %6 : vector<8x1024xf32>
    %cst_6 = arith.constant 2.000000e-01 : f32
    %8 = vector.broadcast %cst_6 : f32 to vector<8x1024xf32>
    %9 = arith.mulf %8, %5 : vector<8x1024xf32>
    %10 = arith.select %7, %5, %9 : vector<8x1024xi1>, vector<8x1024xf32>
    %11 = arith.truncf %10 : vector<8x1024xf32> to vector<8x1024xbf16>
    %c0_7 = arith.constant 0 : index
    %c0_8 = arith.constant 0 : index
    %12 = vector.load %arg4[%c0_7, %c0_8] : memref<1024x512xbf16, #tpu.memory_space<vmem>>, vector<1024x512xbf16>
    %cst_9 = arith.constant dense<0.000000e+00> : vector<8x512xf32>
    %13 = tpu.matmul %11, %12, %cst_9 {dimension_numbers = #tpu.dot_dimension_numbers<[1], [0], [0], [1], [0, 0, 1, 1], [], []>} : vector<8x1024xbf16>, vector<1024x512xbf16>, vector<8x512xf32> -> vector<8x512xf32>
    %c0_10 = arith.constant 0 : index
    %c0_11 = arith.constant 0 : index
    %14 = vector.load %arg5[%c0_10, %c0_11] : memref<1x512xf32, #tpu.memory_space<vmem>>, vector<1x512xf32>
    %15 = vector.broadcast %14 : vector<1x512xf32> to vector<8x512xf32>
    %16 = arith.addf %13, %15 : vector<8x512xf32>
    %cst_12 = arith.constant 0.000000e+00 : f32
    %17 = vector.broadcast %cst_12 : f32 to vector<8x512xf32>
    %18 = arith.cmpf oge, %16, %17 : vector<8x512xf32>
    %cst_13 = arith.constant 2.000000e-01 : f32
    %19 = vector.broadcast %cst_13 : f32 to vector<8x512xf32>
    %20 = arith.mulf %19, %16 : vector<8x512xf32>
    %21 = arith.select %18, %16, %20 : vector<8x512xi1>, vector<8x512xf32>
    %c0_14 = arith.constant 0 : index
    %c0_15 = arith.constant 0 : index
    %22 = vector.load %arg6[%c0_14, %c0_15] : memref<1x512xf32, #tpu.memory_space<vmem>>, vector<1x512xf32>
    %23 = vector.broadcast %22 : vector<1x512xf32> to vector<8x512xf32>
    %24 = arith.mulf %21, %23 : vector<8x512xf32>
    %c0_16 = arith.constant 0 : index
    %c0_17 = arith.constant 0 : index
    %25 = vector.load %arg7[%c0_16, %c0_17] : memref<1x512xf32, #tpu.memory_space<vmem>>, vector<1x512xf32>
    %26 = vector.broadcast %25 : vector<1x512xf32> to vector<8x512xf32>
    %27 = arith.addf %24, %26 : vector<8x512xf32>
    %28 = arith.truncf %27 : vector<8x512xf32> to vector<8x512xbf16>
    %c0_18 = arith.constant 0 : index
    %c0_19 = arith.constant 0 : index
    %29 = vector.load %arg8[%c0_18, %c0_19] : memref<512x256xbf16, #tpu.memory_space<vmem>>, vector<512x256xbf16>
    %cst_20 = arith.constant dense<0.000000e+00> : vector<8x256xf32>
    %30 = tpu.matmul %28, %29, %cst_20 {dimension_numbers = #tpu.dot_dimension_numbers<[1], [0], [0], [1], [0, 0, 1, 1], [], []>} : vector<8x512xbf16>, vector<512x256xbf16>, vector<8x256xf32> -> vector<8x256xf32>
    %c0_21 = arith.constant 0 : index
    %c0_22 = arith.constant 0 : index
    %31 = vector.load %arg9[%c0_21, %c0_22] : memref<1x256xf32, #tpu.memory_space<vmem>>, vector<1x256xf32>
    %32 = vector.broadcast %31 : vector<1x256xf32> to vector<8x256xf32>
    %33 = arith.addf %30, %32 : vector<8x256xf32>
    %cst_23 = arith.constant 0.000000e+00 : f32
    %34 = vector.broadcast %cst_23 : f32 to vector<8x256xf32>
    %35 = arith.cmpf oge, %33, %34 : vector<8x256xf32>
    %cst_24 = arith.constant 2.000000e-01 : f32
    %36 = vector.broadcast %cst_24 : f32 to vector<8x256xf32>
    %37 = arith.mulf %36, %33 : vector<8x256xf32>
    %38 = arith.select %35, %33, %37 : vector<8x256xi1>, vector<8x256xf32>
    %c0_25 = arith.constant 0 : index
    %c0_26 = arith.constant 0 : index
    %39 = vector.load %arg10[%c0_25, %c0_26] : memref<1x256xf32, #tpu.memory_space<vmem>>, vector<1x256xf32>
    %40 = vector.broadcast %39 : vector<1x256xf32> to vector<8x256xf32>
    %41 = arith.mulf %38, %40 : vector<8x256xf32>
    %c0_27 = arith.constant 0 : index
    %c0_28 = arith.constant 0 : index
    %42 = vector.load %arg11[%c0_27, %c0_28] : memref<1x256xf32, #tpu.memory_space<vmem>>, vector<1x256xf32>
    %43 = vector.broadcast %42 : vector<1x256xf32> to vector<8x256xf32>
    %44 = arith.addf %41, %43 : vector<8x256xf32>
    %45 = arith.truncf %44 : vector<8x256xf32> to vector<8x256xbf16>
    %c0_29 = arith.constant 0 : index
    %c0_30 = arith.constant 0 : index
    %46 = vector.load %arg12[%c0_29, %c0_30] : memref<256x128xbf16, #tpu.memory_space<vmem>>, vector<256x128xbf16>
    %cst_31 = arith.constant dense<0.000000e+00> : vector<8x128xf32>
    %47 = tpu.matmul %45, %46, %cst_31 {dimension_numbers = #tpu.dot_dimension_numbers<[1], [0], [0], [1], [0, 0, 1, 1], [], []>} : vector<8x256xbf16>, vector<256x128xbf16>, vector<8x128xf32> -> vector<8x128xf32>
    %c0_32 = arith.constant 0 : index
    %c0_33 = arith.constant 0 : index
    %48 = vector.load %arg13[%c0_32, %c0_33] : memref<1x128xf32, #tpu.memory_space<vmem>>, vector<1x128xf32>
    %49 = vector.broadcast %48 : vector<1x128xf32> to vector<8x128xf32>
    %50 = arith.addf %47, %49 : vector<8x128xf32>
    %cst_34 = arith.constant 0.000000e+00 : f32
    %51 = vector.broadcast %cst_34 : f32 to vector<8x128xf32>
    %52 = arith.cmpf oge, %50, %51 : vector<8x128xf32>
    %cst_35 = arith.constant 2.000000e-01 : f32
    %53 = vector.broadcast %cst_35 : f32 to vector<8x128xf32>
    %54 = arith.mulf %53, %50 : vector<8x128xf32>
    %55 = arith.select %52, %50, %54 : vector<8x128xi1>, vector<8x128xf32>
    %c0_36 = arith.constant 0 : index
    %c0_37 = arith.constant 0 : index
    %56 = vector.load %arg14[%c0_36, %c0_37] : memref<1x128xf32, #tpu.memory_space<vmem>>, vector<1x128xf32>
    %57 = vector.broadcast %56 : vector<1x128xf32> to vector<8x128xf32>
    %58 = arith.mulf %55, %57 : vector<8x128xf32>
    %c0_38 = arith.constant 0 : index
    %c0_39 = arith.constant 0 : index
    %59 = vector.load %arg15[%c0_38, %c0_39] : memref<1x128xf32, #tpu.memory_space<vmem>>, vector<1x128xf32>
    %60 = vector.broadcast %59 : vector<1x128xf32> to vector<8x128xf32>
    %61 = arith.addf %58, %60 : vector<8x128xf32>
    %62 = arith.truncf %61 : vector<8x128xf32> to vector<8x128xbf16>
    %c0_40 = arith.constant 0 : index
    %c0_41 = arith.constant 0 : index
    %63 = vector.load %arg16[%c0_40, %c0_41] : memref<128x128xbf16, #tpu.memory_space<vmem>>, vector<128x128xbf16>
    %cst_42 = arith.constant dense<0.000000e+00> : vector<8x128xf32>
    %64 = tpu.matmul %62, %63, %cst_42 {dimension_numbers = #tpu.dot_dimension_numbers<[1], [0], [0], [1], [0, 0, 1, 1], [], []>} : vector<8x128xbf16>, vector<128x128xbf16>, vector<8x128xf32> -> vector<8x128xf32>
    %c0_43 = arith.constant 0 : index
    %c0_44 = arith.constant 0 : index
    %65 = vector.load %arg17[%c0_43, %c0_44] : memref<1x128xf32, #tpu.memory_space<vmem>>, vector<1x128xf32>
    %66 = vector.broadcast %65 : vector<1x128xf32> to vector<8x128xf32>
    %67 = arith.addf %64, %66 : vector<8x128xf32>
    %68 = tpu.iota {dimensions = array<i32: 1>} : vector<1x128xi32>
    %c1_i32 = arith.constant 1 : i32
    %69 = vector.broadcast %c1_i32 : i32 to vector<1x128xi32>
    %70 = arith.cmpi sge, %68, %69 : vector<1x128xi32>
    %c11_i32 = arith.constant 11 : i32
    %71 = vector.broadcast %c11_i32 : i32 to vector<1x128xi32>
    %72 = arith.cmpi slt, %68, %71 : vector<1x128xi32>
    %73 = arith.andi %70, %72 : vector<1x128xi1>
    %cst_45 = arith.constant -1.000000e+30 : f32
    %74 = vector.shape_cast %73 : vector<1x128xi1> to vector<1x128xi1>
    %75 = vector.broadcast %74 : vector<1x128xi1> to vector<8x128xi1>
    %76 = vector.broadcast %cst_45 : f32 to vector<8x128xf32>
    %77 = arith.select %75, %67, %76 : vector<8x128xi1>, vector<8x128xf32>
    %cst_46 = arith.constant dense<0xFF800000> : vector<8xf32>
    %78 = vector.multi_reduction <maximumf>, %77, %cst_46 [1] : vector<8x128xf32> to vector<8xf32>
    %79 = vector.shape_cast %78 : vector<8xf32> to vector<8x1xf32>
    %80 = vector.broadcast %79 : vector<8x1xf32> to vector<8x128xf32>
    %81 = arith.subf %77, %80 : vector<8x128xf32>
    %82 = math.exp %81 : vector<8x128xf32>
    %cst_47 = arith.constant dense<0.000000e+00> : vector<8xf32>
    %83 = vector.multi_reduction <add>, %82, %cst_47 [1] : vector<8x128xf32> to vector<8xf32>
    %84 = vector.shape_cast %83 : vector<8xf32> to vector<8x1xf32>
    %85 = vector.broadcast %84 : vector<8x1xf32> to vector<8x128xf32>
    %86 = arith.divf %82, %85 : vector<8x128xf32>
    %87 = vector.shape_cast %73 : vector<1x128xi1> to vector<1x128xi1>
    %88 = vector.broadcast %87 : vector<1x128xi1> to vector<8x128xi1>
    %89 = arith.select %88, %86, %67 : vector<8x128xi1>, vector<8x128xf32>
    %c0_48 = arith.constant 0 : index
    %c0_49 = arith.constant 0 : index
    %90 = vector.load %arg18[%c0_48, %c0_49] : memref<8x128xf32, #tpu.memory_space<vmem>>, vector<8x128xf32>
    tpu.vector_store %arg18[%c0_48, %c0_49], %89 {strides = array<i32>} : memref<8x128xf32, #tpu.memory_space<vmem>>, vector<8x128xf32>,
    return
  }
  func.func @transform_0(%arg0: i32) -> (i32, i32) {
    %c0_i32 = arith.constant 0 : i32
    %c0_i32_0 = arith.constant 0 : i32
    return %arg0, %c0_i32 : i32, i32
  }
  func.func @transform_1(%arg0: i32) -> (i32, i32) {
    %c0_i32 = arith.constant 0 : i32
    %c0_i32_0 = arith.constant 0 : i32
    %c0_i32_1 = arith.constant 0 : i32
    return %c0_i32, %c0_i32_0 : i32, i32
  }
  func.func @transform_2(%arg0: i32) -> (i32, i32) {
    %c0_i32 = arith.constant 0 : i32
    %c0_i32_0 = arith.constant 0 : i32
    %c0_i32_1 = arith.constant 0 : i32
    return %c0_i32, %c0_i32_0 : i32, i32
  }
  func.func @transform_3(%arg0: i32) -> (i32, i32) {
    %c0_i32 = arith.constant 0 : i32
    %c0_i32_0 = arith.constant 0 : i32
    %c0_i32_1 = arith.constant 0 : i32
    return %c0_i32, %c0_i32_0 : i32, i32
  }
  func.func @transform_4(%arg0: i32) -> (i32, i32) {
    %c0_i32 = arith.constant 0 : i32
    %c0_i32_0 = arith.constant 0 : i32
    %c0_i32_1 = arith.constant 0 : i32
    return %c0_i32, %c0_i32_0 : i32, i32
  }
  func.func @transform_5(%arg0: i32) -> (i32, i32) {
    %c0_i32 = arith.constant 0 : i32
    %c0_i32_0 = arith.constant 0 : i32
    %c0_i32_1 = arith.constant 0 : i32
    return %c0_i32, %c0_i32_0 : i32, i32
  }
  func.func @transform_6(%arg0: i32) -> (i32, i32) {
    %c0_i32 = arith.constant 0 : i32
    %c0_i32_0 = arith.constant 0 : i32
    %c0_i32_1 = arith.constant 0 : i32
    return %c0_i32, %c0_i32_0 : i32, i32
  }
  func.func @transform_7(%arg0: i32) -> (i32, i32) {
    %c0_i32 = arith.constant 0 : i32
    %c0_i32_0 = arith.constant 0 : i32
    %c0_i32_1 = arith.constant 0 : i32
    return %c0_i32, %c0_i32_0 : i32, i32
  }
  func.func @transform_8(%arg0: i32) -> (i32, i32) {
    %c0_i32 = arith.constant 0 : i32
    %c0_i32_0 = arith.constant 0 : i32
    %c0_i32_1 = arith.constant 0 : i32
    return %c0_i32, %c0_i32_0 : i32, i32
  }
  func.func @transform_9(%arg0: i32) -> (i32, i32) {
    %c0_i32 = arith.constant 0 : i32
    %c0_i32_0 = arith.constant 0 : i32
    %c0_i32_1 = arith.constant 0 : i32
    return %c0_i32, %c0_i32_0 : i32, i32
  }
  func.func @transform_10(%arg0: i32) -> (i32, i32) {
    %c0_i32 = arith.constant 0 : i32
    %c0_i32_0 = arith.constant 0 : i32
    %c0_i32_1 = arith.constant 0 : i32
    return %c0_i32, %c0_i32_0 : i32, i32
  }
  func.func @transform_11(%arg0: i32) -> (i32, i32) {
    %c0_i32 = arith.constant 0 : i32
    %c0_i32_0 = arith.constant 0 : i32
    %c0_i32_1 = arith.constant 0 : i32
    return %c0_i32, %c0_i32_0 : i32, i32
  }
  func.func @transform_12(%arg0: i32) -> (i32, i32) {
    %c0_i32 = arith.constant 0 : i32
    %c0_i32_0 = arith.constant 0 : i32
    %c0_i32_1 = arith.constant 0 : i32
    return %c0_i32, %c0_i32_0 : i32, i32
  }
  func.func @transform_13(%arg0: i32) -> (i32, i32) {
    %c0_i32 = arith.constant 0 : i32
    %c0_i32_0 = arith.constant 0 : i32
    %c0_i32_1 = arith.constant 0 : i32
    return %c0_i32, %c0_i32_0 : i32, i32
  }
  func.func @transform_14(%arg0: i32) -> (i32, i32) {
    %c0_i32 = arith.constant 0 : i32
    %c0_i32_0 = arith.constant 0 : i32
    %c0_i32_1 = arith.constant 0 : i32
    return %c0_i32, %c0_i32_0 : i32, i32
  }
  func.func @transform_15(%arg0: i32) -> (i32, i32) {
    %c0_i32 = arith.constant 0 : i32
    %c0_i32_0 = arith.constant 0 : i32
    %c0_i32_1 = arith.constant 0 : i32
    return %c0_i32, %c0_i32_0 : i32, i32
  }
  func.func @transform_16(%arg0: i32) -> (i32, i32) {
    %c0_i32 = arith.constant 0 : i32
    %c0_i32_0 = arith.constant 0 : i32
    %c0_i32_1 = arith.constant 0 : i32
    return %c0_i32, %c0_i32_0 : i32, i32
  }
  func.func @transform_17(%arg0: i32) -> (i32, i32) {
    %c0_i32 = arith.constant 0 : i32
    %c0_i32_0 = arith.constant 0 : i32
    return %arg0, %c0_i32 : i32, i32
  }
}

</mosaic_0001>

<bundles_post_ra>
// kernel: discriminator_forward.1
= control target key start
LH: loop header
LB: loop body
LE: loop exit
PB: predicated region body
PF: predicated region fallthrough
CT: control target
= control target key end

     0   :  { %s8875_s24 = smov 0   ;;  %s11660_s0 = inlined_call_operand.vmem [shape: bf16[16,1024], index: 0, kind: input, shape index: {}]   ;;  %s11661_s1 = inlined_call_operand.vmem [shape: bf16[1024,1024], index: 1, kind: input, shape index: {}]   ;;  %s11662_s2 = inlined_call_operand.vmem [shape: f32[1,1024], index: 2, kind: input, shape index: {}]   ;;  %s11663_s3 = inlined_call_operand.vmem [shape: bf16[1024,512], index: 3, kind: input, shape index: {}]   ;;  %s11664_s4 = inlined_call_operand.vmem [shape: f32[1,512], index: 4, kind: input, shape index: {}]   ;;  %s11665_s5 = inlined_call_operand.vmem [shape: f32[1,512], index: 5, kind: input, shape index: {}]   ;;  %s11666_s6 = inlined_call_operand.vmem [shape: f32[1,512], index: 6, kind: input, shape index: {}]   ;;  %s11667_s7 = inlined_call_operand.vmem [shape: bf16[512,256], index: 7, kind: input, shape index: {}]   ;;  %s11668_s8 = inlined_call_operand.vmem [shape: f32[1,256], index: 8, kind: input, shape index: {}]   ;;  %s11669_s9 = inlined_call_operand.vmem [shape: f32[1,256], index: 9, kind: input, shape index: {}]   ;;  %s11670_s10 = inlined_call_operand.vmem [shape: f32[1,256], index: 10, kind: input, shape index: {}]   ;;  %s11671_s11 = inlined_call_operand.vmem [shape: bf16[256,128], index: 11, kind: input, shape index: {}]   ;;  %s11672_s12 = inlined_call_operand.vmem [shape: f32[1,128], index: 12, kind: input, shape index: {}]   ;;  %s11673_s13 = inlined_call_operand.vmem [shape: f32[1,128], index: 13, kind: input, shape index: {}]   ;;  %s11674_s14 = inlined_call_operand.vmem [shape: f32[1,128], index: 14, kind: input, shape index: {}]   ;;  %s11675_s15 = inlined_call_operand.vmem [shape: bf16[128,128], index: 15, kind: input, shape index: {}]   ;;  %s11676_s16 = inlined_call_operand.vmem [shape: f32[1,128], index: 16, kind: input, shape index: {}]   ;;  %s11677_s17 = inlined_call_operand.vmem [shape: f32[16,128], index: 17, kind: output, shape index: {}]  }
   0x1   :  { %11680 = sst [smem:[#allocation3_spill]] %s11660_s0 }
   0x2   :  { %11681 = sst [smem:[#allocation4_spill]] %s11661_s1 }
   0x3 LB: > { %11682 = sst [smem:[#allocation2_spill]] %s8781_s24  ;;  %s7228_s25 = sadd.s32 4294967295, %s8781_s24   ;;  %s8781_s24 = sphi %s8875_s24, %s27_s24  }
   0x4   : > { %p7232_p0 = scmp.ge.s32.totalorder %s8781_s24, 1  ;;  %p487_p1 = scmp.lt.s32.totalorder %s8781_s24, 3 }
   0x6   : > { %p488_p2 = pnand %p7232_p0, %p487_p1 }
   0x7   : > { %s11683_s28 = sld [smem:[#allocation4_spill]] (!%p488_p2)  ;;  %p538_p3 = scmp.lt.s32.totalorder (!%p488_p2), %s7228_s25, 1  ;;  %vm8784_vm14 = vmmov (!%p488_p2), 0  }
   0x8   : > { %491 = sbr.rel (%p488_p2) target bundleno = 2083 (0x823), region = 88  ;;  %s11684_s1 = sld [smem:[#allocation3_spill]] (!%p488_p2) }
   0xd   : > { %v552_v0 = vld [vmem:[%s11683_s28] sm:$0xff] (!%p488_p2)  ;;  %v553_v2 = vld [vmem:[%s11683_s28 + $0x8] sm:$0xff] (!%p488_p2) }
   0xe   : > { %v556_v1 = vld [vmem:[%s11683_s28 + $0x20] sm:$0xff] (!%p488_p2)  ;;  %v557_v4 = vld [vmem:[%s11683_s28 + $0x28] sm:$0xff] (!%p488_p2) }
   0xf   : > { %v7245_v3 = vcombine.high %v552_v0, %v556_v1  ;;  %v7244_v5 = vcombine.low %v552_v0, %v556_v1  ;;  %v560_v6 = vld [vmem:[%s11683_s28 + $0x40] sm:$0xff]  ;;  %v7247_v8 = vcombine.high %v553_v2, %v557_v4  ;;  %v7246_v9 = vcombine.low %v553_v2, %v557_v4  ;;  %v561_v11 = vld [vmem:[%s11683_s28 + $0x48] sm:$0xff]  ;;  %s11689_s25 = smov (!%p538_p3, %s7228_s25), 1 }
  0x10   : > { %v564_v7 = vld [vmem:[%s11683_s28 + $0x60] sm:$0xff]  ;;  %v565_v12 = vld [vmem:[%s11683_s28 + $0x68] sm:$0xff]  ;;  %s8106_s26 = sshll.u32 %s11689_s25, 5  ;;  %s7235_s30 = sshll.u32 %s11689_s25, 3 }
  0x11   : > { %v7253_v10 = vcombine.high %v560_v6, %v564_v7  ;;  %v568_v13 = vld [vmem:[%s11683_s28 + $0x80] sm:$0xff]  ;;  %3694 = vmatprep.subr.bf16.mxu0 %v7245_v3  ;;  %v7255_v14 = vcombine.high %v561_v11, %v565_v12  ;;  %v569_v16 = vld [vmem:[%s11683_s28 + $0x88] sm:$0xff]  ;;  %3858 = vmatprep.subr.bf16.mxu1 %v7247_v8  ;;  %v7252_v18 = vcombine.low %v560_v6, %v564_v7  ;;  %s8971_s20 = scalar_lea.vmem %s11684_s1, %s8106_s26  ;;  %s546_s1 = scalar_lea.vmem %s11677_s17, %s7235_s30 }
  0x12   : > { %v572_v15 = vld [vmem:[%s11683_s28 + $0xa0] sm:$0xff]  ;;  %v573_v17 = vld [vmem:[%s11683_s28 + $0xa8] sm:$0xff]  ;;  %3695 = vmatpush1.bf16.msra.mxu0 %v7244_v5  ;;  %3859 = vmatpush1.bf16.msra.mxu1 %v7246_v9  ;;  %v7254_v19 = vcombine.low %v561_v11, %v565_v12 }
  0x13   : > { %3696 = vmatprep.subr.bf16.mxu0 %v7253_v10  ;;  %v7261_v20 = vcombine.high %v568_v13, %v572_v15  ;;  %3860 = vmatprep.subr.bf16.mxu1 %v7255_v14  ;;  %v7263_v21 = vcombine.high %v569_v16, %v573_v17  ;;  %v576_v22 = vld [vmem:[%s11683_s28 + $0xc0] sm:$0xff]  ;;  %v577_v24 = vld [vmem:[%s11683_s28 + $0xc8] sm:$0xff]  ;;  %v7260_v26 = vcombine.low %v568_v13, %v572_v15 }
  0x14   : > { %v580_v23 = vld [vmem:[%s11683_s28 + $0xe0] sm:$0xff]  ;;  %v581_v25 = vld [vmem:[%s11683_s28 + $0xe8] sm:$0xff]  ;;  %v7262_v27 = vcombine.low %v569_v16, %v573_v17 }
  0x15   : > { %v7269_v28 = vcombine.high %v576_v22, %v580_v23  ;;  %v7271_v29 = vcombine.high %v577_v24, %v581_v25  ;;  %v584_v30 = vld [vmem:[%s11683_s28 + $0x100] sm:$0xff]  ;;  %v585_v32 = vld [vmem:[%s11683_s28 + $0x108] sm:$0xff]  ;;  %v7268_v34 = vcombine.low %v576_v22, %v580_v23  ;;  %v7270_v35 = vcombine.low %v577_v24, %v581_v25 }
  0x16   : > { %3697 = vmatpush1.bf16.msra.mxu0 %v7252_v18  ;;  %3861 = vmatpush1.bf16.msra.mxu1 %v7254_v19  ;;  %v588_v31 = vld [vmem:[%s11683_s28 + $0x120] sm:$0xff]  ;;  %v589_v33 = vld [vmem:[%s11683_s28 + $0x128] sm:$0xff] }
  0x17   : > { %3698 = vmatprep.subr.bf16.mxu0 %v7261_v20  ;;  %3862 = vmatprep.subr.bf16.mxu1 %v7263_v21  ;;  %v7277_v36 = vcombine.high %v584_v30, %v588_v31  ;;  %v7279_v37 = vcombine.high %v585_v32, %v589_v33  ;;  %v592_v38 = vld [vmem:[%s11683_s28 + $0x140] sm:$0xff]  ;;  %v593_v40 = vld [vmem:[%s11683_s28 + $0x148] sm:$0xff]  ;;  %v7276_v42 = vcombine.low %v584_v30, %v588_v31 }
  0x18   : > { %v596_v39 = vld [vmem:[%s11683_s28 + $0x160] sm:$0xff]  ;;  %v597_v41 = vld [vmem:[%s11683_s28 + $0x168] sm:$0xff]  ;;  %v7278_v43 = vcombine.low %v585_v32, %v589_v33 }
  0x19   : > { %v7285_v44 = vcombine.high %v592_v38, %v596_v39  ;;  %v7287_v45 = vcombine.high %v593_v40, %v597_v41  ;;  %v600_v46 = vld [vmem:[%s11683_s28 + $0x180] sm:$0xff]  ;;  %v601_v48 = vld [vmem:[%s11683_s28 + $0x188] sm:$0xff]  ;;  %v7284_v50 = vcombine.low %v592_v38, %v596_v39  ;;  %v7286_v51 = vcombine.low %v593_v40, %v597_v41 }
  0x1a   : > { %3699 = vmatpush1.bf16.msra.mxu0 %v7260_v26  ;;  %3863 = vmatpush1.bf16.msra.mxu1 %v7262_v27  ;;  %v604_v47 = vld [vmem:[%s11683_s28 + $0x1a0] sm:$0xff]  ;;  %v605_v49 = vld [vmem:[%s11683_s28 + $0x1a8] sm:$0xff] }
  0x1b   : > { %3700 = vmatprep.subr.bf16.mxu0 %v7269_v28  ;;  %3864 = vmatprep.subr.bf16.mxu1 %v7271_v29  ;;  %v7293_v52 = vcombine.high %v600_v46, %v604_v47  ;;  %v8980_v53 = vld [vmem:[%s8971_s20] sm:$0xff]  ;;  %v7295_v54 = vcombine.high %v601_v48, %v605_v49  ;;  %v609_v58 = vld [vmem:[%s11683_s28 + $0x1c8] sm:$0xff]  ;;  %v7292_v60 = vcombine.low %v600_v46, %v604_v47 }
  0x1c   : > { %v608_v55 = vld [vmem:[%s11683_s28 + $0x1c0] sm:$0xff]  ;;  %v8990_v57 = vcombine.high %v8980_v53, %v8980_v53  ;;  %v613_v59 = vld [vmem:[%s11683_s28 + $0x1e8] sm:$0xff]  ;;  %v7294_v61 = vcombine.low %v601_v48, %v605_v49 }
  0x1d   : > { %v612_v56 = vld [vmem:[%s11683_s28 + $0x1e0] sm:$0xff]  ;;  %v7303_v63 = vcombine.high %v609_v58, %v613_v59  ;;  %v617_v2 = vld [vmem:[%s11683_s28 + $0x208] sm:$0xff]  ;;  %v7302_v5 = vcombine.low %v609_v58, %v613_v59 }
  0x1e   : > { %3701 = vmatpush1.bf16.msra.mxu0 %v7268_v34  ;;  %3865 = vmatpush1.bf16.msra.mxu1 %v7270_v35  ;;  %v7301_v62 = vcombine.high %v608_v55, %v612_v56  ;;  %v616_v0 = vld [vmem:[%s11683_s28 + $0x200] sm:$0xff]  ;;  %v621_v3 = vld [vmem:[%s11683_s28 + $0x228] sm:$0xff]  ;;  %v7300_v4 = vcombine.low %v608_v55, %v612_v56 }
  0x1f   : > { %3702 = vmatprep.subr.bf16.mxu0 %v7277_v36  ;;  %3866 = vmatprep.subr.bf16.mxu1 %v7279_v37  ;;  %v620_v1 = vld [vmem:[%s11683_s28 + $0x220] sm:$0xff]  ;;  %v7311_v7 = vcombine.high %v617_v2, %v621_v3  ;;  %v625_v10 = vld [vmem:[%s11683_s28 + $0x248] sm:$0xff]  ;;  %v7310_v13 = vcombine.low %v617_v2, %v621_v3 }
  0x20   : > { %3726 = vmatprep.mubr.bf16.mxu0 %v8990_v57  ;;  %3890 = vmatprep.mubr.bf16.mxu1 %v8990_v57  ;;  %v7309_v6 = vcombine.high %v616_v0, %v620_v1  ;;  %v624_v8 = vld [vmem:[%s11683_s28 + $0x240] sm:$0xff]  ;;  %v629_v11 = vld [vmem:[%s11683_s28 + $0x268] sm:$0xff]  ;;  %v7308_v12 = vcombine.low %v616_v0, %v620_v1 }
  0x21   : > { %v628_v9 = vld [vmem:[%s11683_s28 + $0x260] sm:$0xff]  ;;  %v7319_v15 = vcombine.high %v625_v10, %v629_v11  ;;  %v633_v18 = vld [vmem:[%s11683_s28 + $0x288] sm:$0xff]  ;;  %v7318_v21 = vcombine.low %v625_v10, %v629_v11 }
  0x22   : > { %3703 = vmatpush1.bf16.msra.mxu0 %v7276_v42  ;;  %3867 = vmatpush1.bf16.msra.mxu1 %v7278_v43  ;;  %v7317_v14 = vcombine.high %v624_v8, %v628_v9  ;;  %v632_v16 = vld [vmem:[%s11683_s28 + $0x280] sm:$0xff]  ;;  %v637_v19 = vld [vmem:[%s11683_s28 + $0x2a8] sm:$0xff]  ;;  %v7316_v20 = vcombine.low %v624_v8, %v628_v9 }
  0x23   : > { %3704 = vmatprep.subr.bf16.mxu0 %v7285_v44  ;;  %3868 = vmatprep.subr.bf16.mxu1 %v7287_v45  ;;  %v636_v17 = vld [vmem:[%s11683_s28 + $0x2a0] sm:$0xff]  ;;  %v7327_v23 = vcombine.high %v633_v18, %v637_v19  ;;  %v641_v26 = vld [vmem:[%s11683_s28 + $0x2c8] sm:$0xff]  ;;  %v7326_v29 = vcombine.low %v633_v18, %v637_v19 }
  0x24   : > { %v7325_v22 = vcombine.high %v632_v16, %v636_v17  ;;  %v640_v24 = vld [vmem:[%s11683_s28 + $0x2c0] sm:$0xff]  ;;  %v645_v27 = vld [vmem:[%s11683_s28 + $0x2e8] sm:$0xff]  ;;  %v7324_v28 = vcombine.low %v632_v16, %v636_v17 }
  0x25   : > { %v644_v25 = vld [vmem:[%s11683_s28 + $0x2e0] sm:$0xff]  ;;  %v7335_v31 = vcombine.high %v641_v26, %v645_v27  ;;  %v649_v34 = vld [vmem:[%s11683_s28 + $0x308] sm:$0xff]  ;;  %v7334_v37 = vcombine.low %v641_v26, %v645_v27 }
  0x26   : > { %3705 = vmatpush1.bf16.msra.mxu0 %v7284_v50  ;;  %3869 = vmatpush1.bf16.msra.mxu1 %v7286_v51  ;;  %v7333_v30 = vcombine.high %v640_v24, %v644_v25  ;;  %v648_v32 = vld [vmem:[%s11683_s28 + $0x300] sm:$0xff]  ;;  %v653_v35 = vld [vmem:[%s11683_s28 + $0x328] sm:$0xff]  ;;  %v7332_v36 = vcombine.low %v640_v24, %v644_v25 }
  0x27   : > { %3706 = vmatprep.subr.bf16.mxu0 %v7293_v52  ;;  %3870 = vmatprep.subr.bf16.mxu1 %v7295_v54  ;;  %v652_v33 = vld [vmem:[%s11683_s28 + $0x320] sm:$0xff]  ;;  %v7343_v39 = vcombine.high %v649_v34, %v653_v35  ;;  %v657_v42 = vld [vmem:[%s11683_s28 + $0x348] sm:$0xff]  ;;  %v7342_v45 = vcombine.low %v649_v34, %v653_v35 }
  0x28   : > { %v7341_v38 = vcombine.high %v648_v32, %v652_v33  ;;  %v656_v40 = vld [vmem:[%s11683_s28 + $0x340] sm:$0xff]  ;;  %v661_v43 = vld [vmem:[%s11683_s28 + $0x368] sm:$0xff]  ;;  %v7340_v44 = vcombine.low %v648_v32, %v652_v33 }
  0x29   : > { %v660_v41 = vld [vmem:[%s11683_s28 + $0x360] sm:$0xff]  ;;  %v7351_v47 = vcombine.high %v657_v42, %v661_v43  ;;  %v665_v50 = vld [vmem:[%s11683_s28 + $0x388] sm:$0xff]  ;;  %v7350_v54 = vcombine.low %v657_v42, %v661_v43 }
  0x2a   : > { %3707 = vmatpush1.bf16.msra.mxu0 %v7292_v60  ;;  %3871 = vmatpush1.bf16.msra.mxu1 %v7294_v61  ;;  %v7349_v46 = vcombine.high %v656_v40, %v660_v41  ;;  %v664_v48 = vld [vmem:[%s11683_s28 + $0x380] sm:$0xff]  ;;  %v669_v51 = vld [vmem:[%s11683_s28 + $0x3a8] sm:$0xff]  ;;  %v7348_v52 = vcombine.low %v656_v40, %v660_v41 }
  0x2b   : > { %3708 = vmatprep.subr.bf16.mxu0 %v7301_v62  ;;  %3872 = vmatprep.subr.bf16.mxu1 %v7303_v63  ;;  %v668_v49 = vld [vmem:[%s11683_s28 + $0x3a0] sm:$0xff]  ;;  %v7359_v56 = vcombine.high %v665_v50, %v669_v51  ;;  %v673_v60 = vld [vmem:[%s11683_s28 + $0x3c8] sm:$0xff]  ;;  %v7358_v63 = vcombine.low %v665_v50, %v669_v51 }
  0x2c   : > { %v7357_v55 = vcombine.high %v664_v48, %v668_v49  ;;  %v672_v58 = vld [vmem:[%s11683_s28 + $0x3c0] sm:$0xff]  ;;  %v677_v61 = vld [vmem:[%s11683_s28 + $0x3e8] sm:$0xff]  ;;  %v7356_v62 = vcombine.low %v664_v48, %v668_v49 }
  0x2d   : > { %v676_v59 = vld [vmem:[%s11683_s28 + $0x3e0] sm:$0xff]  ;;  %v7367_v1 = vcombine.high %v673_v60, %v677_v61 }
  0x2e   : > { %3709 = vmatpush1.bf16.msra.mxu0 %v7300_v4  ;;  %3873 = vmatpush1.bf16.msra.mxu1 %v7302_v5  ;;  %v7365_v0 = vcombine.high %v672_v58, %v676_v59  ;;  %v680_v2 = vld [vmem:[%s11683_s28 + $0x400] sm:$0xff]  ;;  %v681_v4 = vld [vmem:[%s11683_s28 + $0x408] sm:$0xff] }
  0x2f   : > { %3710 = vmatprep.subr.bf16.mxu0 %v7309_v6  ;;  %3874 = vmatprep.subr.bf16.mxu1 %v7311_v7  ;;  %v684_v3 = vld [vmem:[%s11683_s28 + $0x420] sm:$0xff]  ;;  %v685_v5 = vld [vmem:[%s11683_s28 + $0x428] sm:$0xff]  ;;  %v7364_v6 = vcombine.low %v672_v58, %v676_v59  ;;  %v7366_v7 = vcombine.low %v673_v60, %v677_v61 }
  0x30   : > { %v7373_v8 = vcombine.high %v680_v2, %v684_v3  ;;  %v7375_v9 = vcombine.high %v681_v4, %v685_v5  ;;  %v688_v10 = vld [vmem:[%s11683_s28 + $0x440] sm:$0xff]  ;;  %v7372_v16 = vcombine.low %v680_v2, %v684_v3  ;;  %v7374_v17 = vcombine.low %v681_v4, %v685_v5 }
  0x31   : > { %v692_v11 = vld [vmem:[%s11683_s28 + $0x460] sm:$0xff] }
  0x32   : > { %3711 = vmatpush1.bf16.msra.mxu0 %v7308_v12  ;;  %3875 = vmatpush1.bf16.msra.mxu1 %v7310_v13  ;;  %v9116_v12 = vcombine.low %v8980_v53, %v8980_v53  ;;  %v689_v13 = vld [vmem:[%s11683_s28 + $0x448] sm:$0xff]  ;;  %v7381_v18 = vcombine.high %v688_v10, %v692_v11  ;;  %v696_v53 = vld [vmem:[%s11683_s28 + $0x480] sm:$0xff]  ;;  %v7380_v24 = vcombine.low %v688_v10, %v692_v11 }
  0x33   : > { %3712 = vmatprep.subr.bf16.mxu0 %v7317_v14  ;;  %3876 = vmatprep.subr.bf16.mxu1 %v7319_v15  ;;  %v693_v14 = vld [vmem:[%s11683_s28 + $0x468] sm:$0xff]  ;;  %v700_v19 = vld [vmem:[%s11683_s28 + $0x4a0] sm:$0xff] }
  0x34   : > { %v9125_v15 = vld [vmem:[%s8971_s20 + $0x8] sm:$0xff]  ;;  %v7382_v25 = vcombine.low %v689_v13, %v693_v14  ;;  %v7389_v26 = vcombine.high %v696_v53, %v700_v19  ;;  %v704_v27 = vld [vmem:[%s11683_s28 + $0x4c0] sm:$0xff]  ;;  %v7388_v32 = vcombine.low %v696_v53, %v700_v19 }
  0x35   : > { %v712_v35 = vld [vmem:[%s11683_s28 + $0x500] sm:$0xff]  ;;  %v757_v53 = vld [vmem:[%s11683_s28 + $0x668] sm:$0xff] }
  0x36   : > { %3713 = vmatpush1.bf16.msra.mxu0 %v7316_v20  ;;  %3877 = vmatpush1.bf16.msra.mxu1 %v7318_v21  ;;  %v7383_v20 = vcombine.high %v689_v13, %v693_v14  ;;  %v697_v21 = vld [vmem:[%s11683_s28 + $0x488] sm:$0xff]  ;;  %v720_v43 = vld [vmem:[%s11683_s28 + $0x540] sm:$0xff] }
  0x37   : > { %3714 = vmatprep.subr.bf16.mxu0 %v7325_v22  ;;  %3878 = vmatprep.subr.bf16.mxu1 %v7327_v23  ;;  %v701_v22 = vld [vmem:[%s11683_s28 + $0x4a8] sm:$0xff]  ;;  %v9141_v23 = vcombine.high %v9125_v15, %v9125_v15  ;;  %v728_v51 = vld [vmem:[%s11683_s28 + $0x580] sm:$0xff] }
  0x38   : > { %v7390_v33 = vcombine.low %v697_v21, %v701_v22  ;;  %v736_v61 = vld [vmem:[%s11683_s28 + $0x5c0] sm:$0xff] }
  0x39   : > { %v744_v5 = vld [vmem:[%s11683_s28 + $0x600] sm:$0xff] }
  0x3a   : > { %3715 = vmatpush1.bf16.msra.mxu0 %v7324_v28  ;;  %3879 = vmatpush1.bf16.msra.mxu1 %v7326_v29  ;;  %v708_v28 = vld [vmem:[%s11683_s28 + $0x4e0] sm:$0xff]  ;;  %v705_v29 = vld [vmem:[%s11683_s28 + $0x4c8] sm:$0xff] }
  0x3b   : > { %3716 = vmatprep.subr.bf16.mxu0 %v7333_v30  ;;  %3880 = vmatprep.subr.bf16.mxu1 %v7335_v31  ;;  %v7391_v30 = vcombine.high %v697_v21, %v701_v22  ;;  %v709_v31 = vld [vmem:[%s11683_s28 + $0x4e8] sm:$0xff]  ;;  %v7397_v34 = vcombine.high %v704_v27, %v708_v28  ;;  %v7396_v40 = vcombine.low %v704_v27, %v708_v28  ;;  %v752_v14 = vld [vmem:[%s11683_s28 + $0x640] sm:$0xff] }
  0x3c   : > { %v7398_v41 = vcombine.low %v705_v29, %v709_v31  ;;  %v760_v22 = vld [vmem:[%s11683_s28 + $0x680] sm:$0xff]  ;;  %v765_v27 = vld [vmem:[%s11683_s28 + $0x6a8] sm:$0xff] }
  0x3e   : > { %3717 = vmatpush1.bf16.msra.mxu0 %v7332_v36  ;;  %3881 = vmatpush1.bf16.msra.mxu1 %v7334_v37  ;;  %v716_v36 = vld [vmem:[%s11683_s28 + $0x520] sm:$0xff]  ;;  %v713_v37 = vld [vmem:[%s11683_s28 + $0x508] sm:$0xff] }
  0x3f   : > { %3718 = vmatprep.subr.bf16.mxu0 %v7341_v38  ;;  %3882 = vmatprep.subr.bf16.mxu1 %v7343_v39  ;;  %v7399_v38 = vcombine.high %v705_v29, %v709_v31  ;;  %v717_v39 = vld [vmem:[%s11683_s28 + $0x528] sm:$0xff]  ;;  %v7405_v42 = vcombine.high %v712_v35, %v716_v36  ;;  %v7404_v48 = vcombine.low %v712_v35, %v716_v36  ;;  %v768_v31 = vld [vmem:[%s11683_s28 + $0x6c0] sm:$0xff] }
  0x40   : > { %v7406_v49 = vcombine.low %v713_v37, %v717_v39  ;;  %v773_v35 = vld [vmem:[%s11683_s28 + $0x6e8] sm:$0xff] }
  0x42   : > { %3719 = vmatpush1.bf16.msra.mxu0 %v7340_v44  ;;  %3883 = vmatpush1.bf16.msra.mxu1 %v7342_v45  ;;  %v724_v44 = vld [vmem:[%s11683_s28 + $0x560] sm:$0xff]  ;;  %v721_v45 = vld [vmem:[%s11683_s28 + $0x548] sm:$0xff] }
  0x43   : > { %3720 = vmatprep.subr.bf16.mxu0 %v7349_v46  ;;  %3884 = vmatprep.subr.bf16.mxu1 %v7351_v47  ;;  %v7407_v46 = vcombine.high %v713_v37, %v717_v39  ;;  %v725_v47 = vld [vmem:[%s11683_s28 + $0x568] sm:$0xff]  ;;  %v7413_v50 = vcombine.high %v720_v43, %v724_v44  ;;  %v7412_v58 = vcombine.low %v720_v43, %v724_v44  ;;  %v776_v39 = vld [vmem:[%s11683_s28 + $0x700] sm:$0xff] }
  0x44   : > { %v7414_v59 = vcombine.low %v721_v45, %v725_v47  ;;  %v781_v43 = vld [vmem:[%s11683_s28 + $0x728] sm:$0xff] }
  0x46   : > { %3721 = vmatpush1.bf16.msra.mxu0 %v7348_v52  ;;  %3885 = vmatpush1.bf16.msra.mxu1 %v7350_v54  ;;  %v732_v52 = vld [vmem:[%s11683_s28 + $0x5a0] sm:$0xff]  ;;  %v729_v54 = vld [vmem:[%s11683_s28 + $0x588] sm:$0xff] }
  0x47   : > { %3722 = vmatprep.subr.bf16.mxu0 %v7357_v55  ;;  %3886 = vmatprep.subr.bf16.mxu1 %v7359_v56  ;;  %v7415_v55 = vcombine.high %v721_v45, %v725_v47  ;;  %v733_v56 = vld [vmem:[%s11683_s28 + $0x5a8] sm:$0xff]  ;;  %v7421_v60 = vcombine.high %v728_v51, %v732_v52  ;;  %v7420_v2 = vcombine.low %v728_v51, %v732_v52  ;;  %v784_v47 = vld [vmem:[%s11683_s28 + $0x740] sm:$0xff] }
  0x48   : > { %v7422_v3 = vcombine.low %v729_v54, %v733_v56  ;;  %v789_v51 = vld [vmem:[%s11683_s28 + $0x768] sm:$0xff] }
  0x4a   : > { %3723 = vmatpush1.bf16.msra.mxu0 %v7356_v62  ;;  %3887 = vmatpush1.bf16.msra.mxu1 %v7358_v63  ;;  %v740_v62 = vld [vmem:[%s11683_s28 + $0x5e0] sm:$0xff]  ;;  %v737_v63 = vld [vmem:[%s11683_s28 + $0x5c8] sm:$0xff] }
  0x4b   : > { %3724 = vmatprep.subr.bf16.mxu0 %v7365_v0  ;;  %3888 = vmatprep.subr.bf16.mxu1 %v7367_v1  ;;  %v7423_v0 = vcombine.high %v729_v54, %v733_v56  ;;  %v741_v1 = vld [vmem:[%s11683_s28 + $0x5e8] sm:$0xff]  ;;  %v7429_v4 = vcombine.high %v736_v61, %v740_v62  ;;  %v7428_v10 = vcombine.low %v736_v61, %v740_v62  ;;  %v792_v56 = vld [vmem:[%s11683_s28 + $0x780] sm:$0xff] }
  0x4c   : > { %v7430_v11 = vcombine.low %v737_v63, %v741_v1  ;;  %v797_v61 = vld [vmem:[%s11683_s28 + $0x7a8] sm:$0xff] }
  0x4e   : > { %3725 = vmatpush1.bf16.msra.mxu0 %v7364_v6  ;;  %3889 = vmatpush1.bf16.msra.mxu1 %v7366_v7  ;;  %v748_v6 = vld [vmem:[%s11683_s28 + $0x620] sm:$0xff]  ;;  %v745_v7 = vld [vmem:[%s11683_s28 + $0x608] sm:$0xff] }
  0x4f   : > { %3735 = vmatprep.subr.bf16.mxu0 %v7373_v8  ;;  %3899 = vmatprep.subr.bf16.mxu1 %v7375_v9  ;;  %v7431_v8 = vcombine.high %v737_v63, %v741_v1  ;;  %v749_v9 = vld [vmem:[%s11683_s28 + $0x628] sm:$0xff]  ;;  %v7437_v13 = vcombine.high %v744_v5, %v748_v6  ;;  %v7436_v19 = vcombine.low %v744_v5, %v748_v6  ;;  %v800_v1 = vld [vmem:[%s11683_s28 + $0x7c0] sm:$0xff] }
  0x50   : > { %v805_v5 = vld [vmem:[%s11683_s28 + $0x7e8] sm:$0xff] }
  0x51   : > { %3727 = vmatmul.mubr.bf16.vlgmr.msra.gmra.mrb[0].mxu0 %v9116_v12  ;;  %3891 = vmatmul.mubr.bf16.vlgmr.msra.gmra.mrb[0].mxu1 %v9116_v12 }
  0x52   : > { %3736 = vmatpush1.bf16.msra.mxu0 %v7372_v16  ;;  %3900 = vmatpush1.bf16.msra.mxu1 %v7374_v17  ;;  %v756_v16 = vld [vmem:[%s11683_s28 + $0x660] sm:$0xff]  ;;  %v753_v17 = vld [vmem:[%s11683_s28 + $0x648] sm:$0xff] }
  0x53   : > { %3737 = vmatprep.subr.bf16.mxu0 %v7381_v18  ;;  %3901 = vmatprep.subr.bf16.mxu1 %v7383_v20  ;;  %v7439_v18 = vcombine.high %v745_v7, %v749_v9  ;;  %v7438_v20 = vcombine.low %v745_v7, %v749_v9  ;;  %v7445_v21 = vcombine.high %v752_v14, %v756_v16  ;;  %v808_v9 = vld [vmem:[%s11683_s28 + $0x800] sm:$0xff] }
  0x54   : > { %3767 = vmatprep.mubr.bf16.mxu0 %v9141_v23  ;;  %3931 = vmatprep.mubr.bf16.mxu1 %v9141_v23  ;;  %v7444_v28 = vcombine.low %v752_v14, %v756_v16  ;;  %v7446_v29 = vcombine.low %v753_v17, %v757_v53  ;;  %v813_v14 = vld [vmem:[%s11683_s28 + $0x828] sm:$0xff] }
  0x56   : > { %3738 = vmatpush1.bf16.msra.mxu0 %v7380_v24  ;;  %3902 = vmatpush1.bf16.msra.mxu1 %v7382_v25  ;;  %v764_v24 = vld [vmem:[%s11683_s28 + $0x6a0] sm:$0xff]  ;;  %v761_v25 = vld [vmem:[%s11683_s28 + $0x688] sm:$0xff] }
  0x57   : > { %3739 = vmatprep.subr.bf16.mxu0 %v7389_v26  ;;  %3903 = vmatprep.subr.bf16.mxu1 %v7391_v30  ;;  %v7447_v26 = vcombine.high %v753_v17, %v757_v53  ;;  %v7453_v30 = vcombine.high %v760_v22, %v764_v24  ;;  %v7452_v36 = vcombine.low %v760_v22, %v764_v24  ;;  %v816_v17 = vld [vmem:[%s11683_s28 + $0x840] sm:$0xff]  ;;  %v9328_v24 = vld [vmem:[%s8971_s20 + $0x10] sm:$0xff] }
  0x58   : > { %v7454_v37 = vcombine.low %v761_v25, %v765_v27 }
  0x5a   : > { %3740 = vmatpush1.bf16.msra.mxu0 %v7388_v32  ;;  %3904 = vmatpush1.bf16.msra.mxu1 %v7390_v33  ;;  %v772_v32 = vld [vmem:[%s11683_s28 + $0x6e0] sm:$0xff]  ;;  %v769_v33 = vld [vmem:[%s11683_s28 + $0x6c8] sm:$0xff] }
  0x5b   : > { %3741 = vmatprep.subr.bf16.mxu0 %v7397_v34  ;;  %3905 = vmatprep.subr.bf16.mxu1 %v7399_v38  ;;  %v7455_v34 = vcombine.high %v761_v25, %v765_v27  ;;  %v7461_v38 = vcombine.high %v768_v31, %v772_v32  ;;  %v7460_v44 = vcombine.low %v768_v31, %v772_v32  ;;  %v825_v31 = vld [vmem:[%s11683_s28 + $0x888] sm:$0xff] }
  0x5c   : > { %v7462_v45 = vcombine.low %v769_v33, %v773_v35  ;;  %v9332_v25 = vcombine.low %v9125_v15, %v9125_v15  ;;  %v829_v32 = vld [vmem:[%s11683_s28 + $0x8a8] sm:$0xff] }
  0x5e   : > { %3742 = vmatpush1.bf16.msra.mxu0 %v7396_v40  ;;  %3906 = vmatpush1.bf16.msra.mxu1 %v7398_v41  ;;  %v780_v40 = vld [vmem:[%s11683_s28 + $0x720] sm:$0xff]  ;;  %v777_v41 = vld [vmem:[%s11683_s28 + $0x708] sm:$0xff] }
  0x5f   : > { %3743 = vmatprep.subr.bf16.mxu0 %v7405_v42  ;;  %3907 = vmatprep.subr.bf16.mxu1 %v7407_v46  ;;  %v7463_v42 = vcombine.high %v769_v33, %v773_v35  ;;  %v7469_v46 = vcombine.high %v776_v39, %v780_v40  ;;  %v7468_v52 = vcombine.low %v776_v39, %v780_v40  ;;  %v833_v39 = vld [vmem:[%s11683_s28 + $0x8c8] sm:$0xff] }
  0x60   : > { %v7470_v54 = vcombine.low %v777_v41, %v781_v43  ;;  %v9348_v33 = vcombine.high %v9328_v24, %v9328_v24  ;;  %v7519_v40 = vcombine.high %v825_v31, %v829_v32 }
  0x62   : > { %3744 = vmatpush1.bf16.msra.mxu0 %v7404_v48  ;;  %3908 = vmatpush1.bf16.msra.mxu1 %v7406_v49  ;;  %v788_v48 = vld [vmem:[%s11683_s28 + $0x760] sm:$0xff]  ;;  %v785_v49 = vld [vmem:[%s11683_s28 + $0x748] sm:$0xff] }
  0x63   : > { %3745 = vmatprep.subr.bf16.mxu0 %v7413_v50  ;;  %3909 = vmatprep.subr.bf16.mxu1 %v7415_v55  ;;  %v7471_v50 = vcombine.high %v777_v41, %v781_v43  ;;  %v7477_v55 = vcombine.high %v784_v47, %v788_v48  ;;  %v7476_v62 = vcombine.low %v784_v47, %v788_v48  ;;  %v837_v41 = vld [vmem:[%s11683_s28 + $0x8e8] sm:$0xff] }
  0x64   : > { %v7478_v63 = vcombine.low %v785_v49, %v789_v51  ;;  %v7518_v43 = vcombine.low %v825_v31, %v829_v32  ;;  %v841_v47 = vld [vmem:[%s11683_s28 + $0x908] sm:$0xff]  ;;  %v7527_v48 = vcombine.high %v833_v39, %v837_v41 }
  0x65   : > { %v885_v31 = vld [vmem:[%s11683_s28 + $0xa68] sm:$0xff] }
  0x66   : > { %3746 = vmatpush1.bf16.msra.mxu0 %v7412_v58  ;;  %3910 = vmatpush1.bf16.msra.mxu1 %v7414_v59  ;;  %v796_v58 = vld [vmem:[%s11683_s28 + $0x7a0] sm:$0xff]  ;;  %v793_v59 = vld [vmem:[%s11683_s28 + $0x788] sm:$0xff] }
  0x67   : > { %3747 = vmatprep.subr.bf16.mxu0 %v7421_v60  ;;  %3911 = vmatprep.subr.bf16.mxu1 %v7423_v0  ;;  %v7479_v60 = vcombine.high %v785_v49, %v789_v51  ;;  %v7485_v0 = vcombine.high %v792_v56, %v796_v58  ;;  %v7484_v6 = vcombine.low %v792_v56, %v796_v58  ;;  %v845_v49 = vld [vmem:[%s11683_s28 + $0x928] sm:$0xff] }
  0x68   : > { %v7486_v7 = vcombine.low %v793_v59, %v797_v61  ;;  %v7526_v51 = vcombine.low %v833_v39, %v837_v41  ;;  %v849_v56 = vld [vmem:[%s11683_s28 + $0x948] sm:$0xff]  ;;  %v7535_v58 = vcombine.high %v841_v47, %v845_v49 }
  0x69   : > { %v893_v39 = vld [vmem:[%s11683_s28 + $0xaa8] sm:$0xff] }
  0x6a   : > { %3748 = vmatpush1.bf16.msra.mxu0 %v7420_v2  ;;  %3912 = vmatpush1.bf16.msra.mxu1 %v7422_v3  ;;  %v804_v2 = vld [vmem:[%s11683_s28 + $0x7e0] sm:$0xff]  ;;  %v801_v3 = vld [vmem:[%s11683_s28 + $0x7c8] sm:$0xff] }
  0x6b   : > { %3749 = vmatprep.subr.bf16.mxu0 %v7429_v4  ;;  %3913 = vmatprep.subr.bf16.mxu1 %v7431_v8  ;;  %v7487_v4 = vcombine.high %v793_v59, %v797_v61  ;;  %v7493_v8 = vcombine.high %v800_v1, %v804_v2  ;;  %v7492_v16 = vcombine.low %v800_v1, %v804_v2  ;;  %v853_v59 = vld [vmem:[%s11683_s28 + $0x968] sm:$0xff] }
  0x6c   : > { %v7534_v61 = vcombine.low %v841_v47, %v845_v49  ;;  %v857_v1 = vld [vmem:[%s11683_s28 + $0x988] sm:$0xff]  ;;  %v7543_v2 = vcombine.high %v849_v56, %v853_v59 }
  0x6d   : > { %v901_v47 = vld [vmem:[%s11683_s28 + $0xae8] sm:$0xff] }
  0x6e   : > { %3750 = vmatpush1.bf16.msra.mxu0 %v7428_v10  ;;  %3914 = vmatpush1.bf16.msra.mxu1 %v7430_v11  ;;  %v812_v10 = vld [vmem:[%s11683_s28 + $0x820] sm:$0xff]  ;;  %v809_v11 = vld [vmem:[%s11683_s28 + $0x808] sm:$0xff] }
  0x6f   : > { %3751 = vmatprep.subr.bf16.mxu0 %v7437_v13  ;;  %3915 = vmatprep.subr.bf16.mxu1 %v7439_v18  ;;  %v7495_v13 = vcombine.high %v801_v3, %v805_v5  ;;  %v7494_v18 = vcombine.low %v801_v3, %v805_v5  ;;  %v7501_v53 = vcombine.high %v808_v9, %v812_v10  ;;  %v861_v3 = vld [vmem:[%s11683_s28 + $0x9a8] sm:$0xff] }
  0x70   : > { %v7503_v22 = vcombine.high %v809_v11, %v813_v14  ;;  %v7502_v27 = vcombine.low %v809_v11, %v813_v14  ;;  %v7542_v5 = vcombine.low %v849_v56, %v853_v59  ;;  %v869_v11 = vld [vmem:[%s11683_s28 + $0x9e8] sm:$0xff]  ;;  %v7550_v14 = vcombine.low %v857_v1, %v861_v3 }
  0x71   : > { %v909_v56 = vld [vmem:[%s11683_s28 + $0xb28] sm:$0xff] }
  0x72   : > { %3752 = vmatpush1.bf16.msra.mxu0 %v7436_v19  ;;  %3916 = vmatpush1.bf16.msra.mxu1 %v7438_v20  ;;  %v820_v19 = vld [vmem:[%s11683_s28 + $0x860] sm:$0xff]  ;;  %v817_v20 = vld [vmem:[%s11683_s28 + $0x848] sm:$0xff] }
  0x73   : > { %3753 = vmatprep.subr.bf16.mxu0 %v7445_v21  ;;  %3917 = vmatprep.subr.bf16.mxu1 %v7447_v26  ;;  %v821_v21 = vld [vmem:[%s11683_s28 + $0x868] sm:$0xff]  ;;  %v7500_v26 = vcombine.low %v808_v9, %v812_v10  ;;  %v7551_v10 = vcombine.high %v857_v1, %v861_v3 }
  0x74   : > { %v7511_v15 = vcombine.high %v817_v20, %v821_v21  ;;  %v7510_v35 = vcombine.low %v817_v20, %v821_v21  ;;  %v865_v9 = vld [vmem:[%s11683_s28 + $0x9c8] sm:$0xff] }
  0x75   : > { %v877_v20 = vld [vmem:[%s11683_s28 + $0xa28] sm:$0xff] }
  0x76   : > { %3754 = vmatpush1.bf16.msra.mxu0 %v7444_v28  ;;  %3918 = vmatpush1.bf16.msra.mxu1 %v7446_v29  ;;  %v7509_v28 = vcombine.high %v816_v17, %v820_v19  ;;  %v824_v29 = vld [vmem:[%s11683_s28 + $0x880] sm:$0xff]  ;;  %v917_v1 = vld [vmem:[%s11683_s28 + $0xb68] sm:$0xff] }
  0x77   : > { %3755 = vmatprep.subr.bf16.mxu0 %v7453_v30  ;;  %3919 = vmatprep.subr.bf16.mxu1 %v7455_v34  ;;  %v828_v30 = vld [vmem:[%s11683_s28 + $0x8a0] sm:$0xff]  ;;  %v7508_v34 = vcombine.low %v816_v17, %v820_v19  ;;  %v7559_v19 = vcombine.high %v865_v9, %v869_v11 }
  0x78   : > { %v872_v17 = vld [vmem:[%s11683_s28 + $0xa00] sm:$0xff] }
  0x7a   : > { %3756 = vmatpush1.bf16.msra.mxu0 %v7452_v36  ;;  %3920 = vmatpush1.bf16.msra.mxu1 %v7454_v37  ;;  %v7517_v36 = vcombine.high %v824_v29, %v828_v30  ;;  %v832_v37 = vld [vmem:[%s11683_s28 + $0x8c0] sm:$0xff] }
  0x7b   : > { %3757 = vmatprep.subr.bf16.mxu0 %v7461_v38  ;;  %3921 = vmatprep.subr.bf16.mxu1 %v7463_v42  ;;  %v836_v38 = vld [vmem:[%s11683_s28 + $0x8e0] sm:$0xff]  ;;  %v7516_v42 = vcombine.low %v824_v29, %v828_v30  ;;  %v881_v29 = vld [vmem:[%s11683_s28 + $0xa48] sm:$0xff] }
  0x7c   : > { %v7574_v41 = vcombine.low %v881_v29, %v885_v31 }
  0x7e   : > { %3758 = vmatpush1.bf16.msra.mxu0 %v7460_v44  ;;  %3922 = vmatpush1.bf16.msra.mxu1 %v7462_v45  ;;  %v7525_v44 = vcombine.high %v832_v37, %v836_v38  ;;  %v840_v45 = vld [vmem:[%s11683_s28 + $0x900] sm:$0xff] }
  0x7f   : > { %3759 = vmatprep.subr.bf16.mxu0 %v7469_v46  ;;  %3923 = vmatprep.subr.bf16.mxu1 %v7471_v50  ;;  %v844_v46 = vld [vmem:[%s11683_s28 + $0x920] sm:$0xff]  ;;  %v7524_v50 = vcombine.low %v832_v37, %v836_v38  ;;  %v889_v37 = vld [vmem:[%s11683_s28 + $0xa88] sm:$0xff]  ;;  %v7575_v38 = vcombine.high %v881_v29, %v885_v31 }
  0x80   : > { %v7582_v49 = vcombine.low %v889_v37, %v893_v39  ;;  %v941_v29 = vld [vmem:[%s11683_s28 + $0xc28] sm:$0xff]  ;;  %v944_v31 = vld [vmem:[%s11683_s28 + $0xc40] sm:$0xff] }
  0x82   : > { %3760 = vmatpush1.bf16.msra.mxu0 %v7468_v52  ;;  %3924 = vmatpush1.bf16.msra.mxu1 %v7470_v54  ;;  %v7533_v52 = vcombine.high %v840_v45, %v844_v46  ;;  %v848_v54 = vld [vmem:[%s11683_s28 + $0x940] sm:$0xff] }
  0x83   : > { %3761 = vmatprep.subr.bf16.mxu0 %v7477_v55  ;;  %3925 = vmatprep.subr.bf16.mxu1 %v7479_v60  ;;  %v852_v55 = vld [vmem:[%s11683_s28 + $0x960] sm:$0xff]  ;;  %v7532_v60 = vcombine.low %v840_v45, %v844_v46  ;;  %v897_v45 = vld [vmem:[%s11683_s28 + $0xac8] sm:$0xff]  ;;  %v7583_v46 = vcombine.high %v889_v37, %v893_v39  ;;  %v9539_v39 = vcombine.low %v9328_v24, %v9328_v24 }
  0x84   : > { %v7590_v59 = vcombine.low %v897_v45, %v901_v47 }
  0x86   : > { %3762 = vmatpush1.bf16.msra.mxu0 %v7476_v62  ;;  %3926 = vmatpush1.bf16.msra.mxu1 %v7478_v63  ;;  %v7541_v62 = vcombine.high %v848_v54, %v852_v55  ;;  %v856_v63 = vld [vmem:[%s11683_s28 + $0x980] sm:$0xff] }
  0x87   : > { %3763 = vmatprep.subr.bf16.mxu0 %v7485_v0  ;;  %3927 = vmatprep.subr.bf16.mxu1 %v7487_v4  ;;  %v860_v0 = vld [vmem:[%s11683_s28 + $0x9a0] sm:$0xff]  ;;  %v7540_v4 = vcombine.low %v848_v54, %v852_v55  ;;  %v905_v54 = vld [vmem:[%s11683_s28 + $0xb08] sm:$0xff]  ;;  %v7591_v55 = vcombine.high %v897_v45, %v901_v47 }
  0x88   : > { %v7598_v3 = vcombine.low %v905_v54, %v909_v56  ;;  %v953_v45 = vld [vmem:[%s11683_s28 + $0xc88] sm:$0xff] }
  0x8a   : > { %3764 = vmatpush1.bf16.msra.mxu0 %v7484_v6  ;;  %3928 = vmatpush1.bf16.msra.mxu1 %v7486_v7  ;;  %v7549_v6 = vcombine.high %v856_v63, %v860_v0  ;;  %v864_v7 = vld [vmem:[%s11683_s28 + $0x9c0] sm:$0xff] }
  0x8b   : > { %3765 = vmatprep.subr.bf16.mxu0 %v7493_v8  ;;  %3929 = vmatprep.subr.bf16.mxu1 %v7495_v13  ;;  %v868_v8 = vld [vmem:[%s11683_s28 + $0x9e0] sm:$0xff]  ;;  %v7548_v13 = vcombine.low %v856_v63, %v860_v0  ;;  %v913_v63 = vld [vmem:[%s11683_s28 + $0xb48] sm:$0xff]  ;;  %v7599_v0 = vcombine.high %v905_v54, %v909_v56 }
  0x8c   : > { %v7556_v21 = vcombine.low %v864_v7, %v868_v8  ;;  %v961_v54 = vld [vmem:[%s11683_s28 + $0xcc8] sm:$0xff] }
  0x8d   : > { %v965_v56 = vld [vmem:[%s11683_s28 + $0xce8] sm:$0xff] }
  0x8e   : > { %3766 = vmatpush1.bf16.msra.mxu0 %v7492_v16  ;;  %3930 = vmatpush1.bf16.msra.mxu1 %v7494_v18  ;;  %v7557_v16 = vcombine.high %v864_v7, %v868_v8  ;;  %v876_v18 = vld [vmem:[%s11683_s28 + $0xa20] sm:$0xff]  ;;  %v921_v7 = vld [vmem:[%s11683_s28 + $0xb88] sm:$0xff]  ;;  %v7607_v8 = vcombine.high %v913_v63, %v917_v1 }
  0x8f   : > { %3776 = vmatprep.subr.bf16.mxu0 %v7501_v53  ;;  %3940 = vmatprep.subr.bf16.mxu1 %v7503_v22  ;;  %v873_v53 = vld [vmem:[%s11683_s28 + $0xa08] sm:$0xff]  ;;  %v7558_v22 = vcombine.low %v865_v9, %v869_v11  ;;  %v7606_v11 = vcombine.low %v913_v63, %v917_v1 }
  0x90   : > { %v7567_v30 = vcombine.high %v873_v53, %v877_v20  ;;  %v7566_v32 = vcombine.low %v873_v53, %v877_v20  ;;  %v925_v9 = vld [vmem:[%s11683_s28 + $0xba8] sm:$0xff] }
  0x91   : > { %3768 = vmatmul.mubr.bf16.vlgmr.msra.gmra.mrb[0].mxu0 %v9332_v25  ;;  %3932 = vmatmul.mubr.bf16.vlgmr.msra.gmra.mrb[0].mxu1 %v9332_v25  ;;  %v933_v53 = vld [vmem:[%s11683_s28 + $0xbe8] sm:$0xff]  ;;  %v7614_v20 = vcombine.low %v921_v7, %v925_v9 }
  0x92   : > { %3777 = vmatpush1.bf16.msra.mxu0 %v7500_v26  ;;  %3941 = vmatpush1.bf16.msra.mxu1 %v7502_v27  ;;  %v7565_v26 = vcombine.high %v872_v17, %v876_v18  ;;  %v880_v27 = vld [vmem:[%s11683_s28 + $0xa40] sm:$0xff]  ;;  %v969_v63 = vld [vmem:[%s11683_s28 + $0xd08] sm:$0xff] }
  0x93   : > { %3778 = vmatprep.subr.bf16.mxu0 %v7509_v28  ;;  %3942 = vmatprep.subr.bf16.mxu1 %v7511_v15  ;;  %v884_v28 = vld [vmem:[%s11683_s28 + $0xa60] sm:$0xff]  ;;  %v7564_v15 = vcombine.low %v872_v17, %v876_v18  ;;  %v929_v17 = vld [vmem:[%s11683_s28 + $0xbc8] sm:$0xff]  ;;  %v7615_v18 = vcombine.high %v921_v7, %v925_v9 }
  0x94   : > { %3808 = vmatprep.mubr.bf16.mxu0 %v9348_v33  ;;  %3972 = vmatprep.mubr.bf16.mxu1 %v9348_v33  ;;  %v973_v1 = vld [vmem:[%s11683_s28 + $0xd28] sm:$0xff] }
  0x95   : > { %v977_v7 = vld [vmem:[%s11683_s28 + $0xd48] sm:$0xff] }
  0x96   : > { %3779 = vmatpush1.bf16.msra.mxu0 %v7508_v34  ;;  %3943 = vmatpush1.bf16.msra.mxu1 %v7510_v35  ;;  %v7573_v34 = vcombine.high %v880_v27, %v884_v28  ;;  %v888_v35 = vld [vmem:[%s11683_s28 + $0xa80] sm:$0xff]  ;;  %v981_v9 = vld [vmem:[%s11683_s28 + $0xd68] sm:$0xff] }
  0x97   : > { %3780 = vmatprep.subr.bf16.mxu0 %v7517_v36  ;;  %3944 = vmatprep.subr.bf16.mxu1 %v7519_v40  ;;  %v892_v36 = vld [vmem:[%s11683_s28 + $0xaa0] sm:$0xff]  ;;  %v7572_v40 = vcombine.low %v880_v27, %v884_v28  ;;  %v937_v27 = vld [vmem:[%s11683_s28 + $0xc08] sm:$0xff]  ;;  %v7623_v28 = vcombine.high %v929_v17, %v933_v53 }
  0x98   : > { %v7631_v37 = vcombine.high %v937_v27, %v941_v29 }
  0x9a   : > { %3781 = vmatpush1.bf16.msra.mxu0 %v7516_v42  ;;  %3945 = vmatpush1.bf16.msra.mxu1 %v7518_v43  ;;  %v7581_v42 = vcombine.high %v888_v35, %v892_v36  ;;  %v896_v43 = vld [vmem:[%s11683_s28 + $0xac0] sm:$0xff] }
  0x9b   : > { %3782 = vmatprep.subr.bf16.mxu0 %v7525_v44  ;;  %3946 = vmatprep.subr.bf16.mxu1 %v7527_v48  ;;  %v900_v44 = vld [vmem:[%s11683_s28 + $0xae0] sm:$0xff]  ;;  %v7580_v48 = vcombine.low %v888_v35, %v892_v36  ;;  %v945_v35 = vld [vmem:[%s11683_s28 + $0xc48] sm:$0xff] }
  0x9c   : > { %v949_v36 = vld [vmem:[%s11683_s28 + $0xc68] sm:$0xff] }
  0x9d   : > { %v7639_v24 = vcombine.high %v945_v35, %v949_v36 }
  0x9e   : > { %3783 = vmatpush1.bf16.msra.mxu0 %v7524_v50  ;;  %3947 = vmatpush1.bf16.msra.mxu1 %v7526_v51  ;;  %v7589_v50 = vcombine.high %v896_v43, %v900_v44  ;;  %v904_v51 = vld [vmem:[%s11683_s28 + $0xb00] sm:$0xff] }
  0x9f   : > { %3784 = vmatprep.subr.bf16.mxu0 %v7533_v52  ;;  %3948 = vmatprep.subr.bf16.mxu1 %v7535_v58  ;;  %v908_v52 = vld [vmem:[%s11683_s28 + $0xb20] sm:$0xff]  ;;  %v7588_v58 = vcombine.low %v896_v43, %v900_v44 }
  0xa0   : > { %v952_v43 = vld [vmem:[%s11683_s28 + $0xc80] sm:$0xff] }
  0xa1   : > { %v956_v44 = vld [vmem:[%s11683_s28 + $0xca0] sm:$0xff] }
  0xa2   : > { %3785 = vmatpush1.bf16.msra.mxu0 %v7532_v60  ;;  %3949 = vmatpush1.bf16.msra.mxu1 %v7534_v61  ;;  %v7597_v60 = vcombine.high %v904_v51, %v908_v52  ;;  %v912_v61 = vld [vmem:[%s11683_s28 + $0xb40] sm:$0xff] }
  0xa3   : > { %3786 = vmatprep.subr.bf16.mxu0 %v7541_v62  ;;  %3950 = vmatprep.subr.bf16.mxu1 %v7543_v2  ;;  %v916_v62 = vld [vmem:[%s11683_s28 + $0xb60] sm:$0xff]  ;;  %v7596_v2 = vcombine.low %v904_v51, %v908_v52 }
  0xa4   : > { %v960_v51 = vld [vmem:[%s11683_s28 + $0xcc0] sm:$0xff] }
  0xa5   : > { %v964_v52 = vld [vmem:[%s11683_s28 + $0xce0] sm:$0xff] }
  0xa6   : > { %3787 = vmatpush1.bf16.msra.mxu0 %v7540_v4  ;;  %3951 = vmatpush1.bf16.msra.mxu1 %v7542_v5  ;;  %v7605_v4 = vcombine.high %v912_v61, %v916_v62  ;;  %v920_v5 = vld [vmem:[%s11683_s28 + $0xb80] sm:$0xff] }
  0xa7   : > { %3788 = vmatprep.subr.bf16.mxu0 %v7549_v6  ;;  %3952 = vmatprep.subr.bf16.mxu1 %v7551_v10  ;;  %v924_v6 = vld [vmem:[%s11683_s28 + $0xba0] sm:$0xff]  ;;  %v7604_v10 = vcombine.low %v912_v61, %v916_v62 }
  0xa8   : > { %v968_v61 = vld [vmem:[%s11683_s28 + $0xd00] sm:$0xff] }
  0xa9   : > { %v972_v62 = vld [vmem:[%s11683_s28 + $0xd20] sm:$0xff] }
  0xaa   : > { %3789 = vmatpush1.bf16.msra.mxu0 %v7548_v13  ;;  %3953 = vmatpush1.bf16.msra.mxu1 %v7550_v14  ;;  %v7613_v13 = vcombine.high %v920_v5, %v924_v6  ;;  %v928_v14 = vld [vmem:[%s11683_s28 + $0xbc0] sm:$0xff] }
  0xab   : > { %3790 = vmatprep.subr.bf16.mxu0 %v7557_v16  ;;  %3954 = vmatprep.subr.bf16.mxu1 %v7559_v19  ;;  %v932_v16 = vld [vmem:[%s11683_s28 + $0xbe0] sm:$0xff]  ;;  %v7612_v19 = vcombine.low %v920_v5, %v924_v6 }
  0xac   : > { %v976_v5 = vld [vmem:[%s11683_s28 + $0xd40] sm:$0xff] }
  0xad   : > { %v980_v6 = vld [vmem:[%s11683_s28 + $0xd60] sm:$0xff] }
  0xae   : > { %3791 = vmatpush1.bf16.msra.mxu0 %v7556_v21  ;;  %3955 = vmatpush1.bf16.msra.mxu1 %v7558_v22  ;;  %v7621_v21 = vcombine.high %v928_v14, %v932_v16  ;;  %v936_v22 = vld [vmem:[%s11683_s28 + $0xc00] sm:$0xff] }
  0xaf   : > { %3792 = vmatprep.subr.bf16.mxu0 %v7565_v26  ;;  %3956 = vmatprep.subr.bf16.mxu1 %v7567_v30  ;;  %v940_v26 = vld [vmem:[%s11683_s28 + $0xc20] sm:$0xff]  ;;  %v7620_v30 = vcombine.low %v928_v14, %v932_v16 }
  0xb0   : > { %v984_v14 = vld [vmem:[%s11683_s28 + $0xd80] sm:$0xff] }
  0xb1   : > { %v988_v16 = vld [vmem:[%s11683_s28 + $0xda0] sm:$0xff] }
  0xb2   : > { %3793 = vmatpush1.bf16.msra.mxu0 %v7564_v15  ;;  %3957 = vmatpush1.bf16.msra.mxu1 %v7566_v32  ;;  %v7622_v15 = vcombine.low %v929_v17, %v933_v53  ;;  %v7629_v32 = vcombine.high %v936_v22, %v940_v26  ;;  %v985_v17 = vld [vmem:[%s11683_s28 + $0xd88] sm:$0xff] }
  0xb3   : > { %3794 = vmatprep.subr.bf16.mxu0 %v7573_v34  ;;  %3958 = vmatprep.subr.bf16.mxu1 %v7575_v38  ;;  %v948_v34 = vld [vmem:[%s11683_s28 + $0xc60] sm:$0xff]  ;;  %v9535_v38 = vld [vmem:[%s8971_s20 + $0x18] sm:$0xff]  ;;  %v989_v53 = vld [vmem:[%s11683_s28 + $0xda8] sm:$0xff] }
  0xb4   : > { %v9555_v47 = vcombine.high %v9535_v38, %v9535_v38 }
  0xb6   : > { %3795 = vmatpush1.bf16.msra.mxu0 %v7572_v40  ;;  %3959 = vmatpush1.bf16.msra.mxu1 %v7574_v41  ;;  %v7628_v40 = vcombine.low %v936_v22, %v940_v26  ;;  %v7630_v41 = vcombine.low %v937_v27, %v941_v29  ;;  %v992_v22 = vld [vmem:[%s11683_s28 + $0xdc0] sm:$0xff]  ;;  %v993_v27 = vld [vmem:[%s11683_s28 + $0xdc8] sm:$0xff] }
  0xb7   : > { %3796 = vmatprep.subr.bf16.mxu0 %v7581_v42  ;;  %3960 = vmatprep.subr.bf16.mxu1 %v7583_v46  ;;  %v7637_v42 = vcombine.high %v944_v31, %v948_v34  ;;  %v957_v46 = vld [vmem:[%s11683_s28 + $0xca8] sm:$0xff]  ;;  %v996_v26 = vld [vmem:[%s11683_s28 + $0xde0] sm:$0xff] }
  0xb8   : > { %v997_v29 = vld [vmem:[%s11683_s28 + $0xde8] sm:$0xff] }
  0xba   : > { %3797 = vmatpush1.bf16.msra.mxu0 %v7580_v48  ;;  %3961 = vmatpush1.bf16.msra.mxu1 %v7582_v49  ;;  %v7636_v48 = vcombine.low %v944_v31, %v948_v34  ;;  %v7638_v49 = vcombine.low %v945_v35, %v949_v36  ;;  %v7678_v31 = vcombine.low %v985_v17, %v989_v53  ;;  %v1004_v34 = vld [vmem:[%s11683_s28 + $0xe20] sm:$0xff]  ;;  %v1001_v35 = vld [vmem:[%s11683_s28 + $0xe08] sm:$0xff] }
  0xbb   : > { %3798 = vmatprep.subr.bf16.mxu0 %v7589_v50  ;;  %3962 = vmatprep.subr.bf16.mxu1 %v7591_v55  ;;  %v7645_v50 = vcombine.high %v952_v43, %v956_v44  ;;  %v7647_v55 = vcombine.high %v953_v45, %v957_v46  ;;  %v7687_v36 = vcombine.high %v993_v27, %v997_v29 }
  0xbe   : > { %3799 = vmatpush1.bf16.msra.mxu0 %v7588_v58  ;;  %3963 = vmatpush1.bf16.msra.mxu1 %v7590_v59  ;;  %v7644_v58 = vcombine.low %v952_v43, %v956_v44  ;;  %v7646_v59 = vcombine.low %v953_v45, %v957_v46  ;;  %v1008_v43 = vld [vmem:[%s11683_s28 + $0xe40] sm:$0xff]  ;;  %v1009_v45 = vld [vmem:[%s11683_s28 + $0xe48] sm:$0xff] }
  0xbf   : > { %3800 = vmatprep.subr.bf16.mxu0 %v7597_v60  ;;  %3964 = vmatprep.subr.bf16.mxu1 %v7599_v0  ;;  %v7653_v60 = vcombine.high %v960_v51, %v964_v52  ;;  %v7655_v0 = vcombine.high %v961_v54, %v965_v56  ;;  %v1012_v44 = vld [vmem:[%s11683_s28 + $0xe60] sm:$0xff]  ;;  %v1013_v46 = vld [vmem:[%s11683_s28 + $0xe68] sm:$0xff] }
  0xc2   : > { %3801 = vmatpush1.bf16.msra.mxu0 %v7596_v2  ;;  %3965 = vmatpush1.bf16.msra.mxu1 %v7598_v3  ;;  %v7652_v2 = vcombine.low %v960_v51, %v964_v52  ;;  %v7654_v3 = vcombine.low %v961_v54, %v965_v56  ;;  %v1016_v51 = vld [vmem:[%s11683_s28 + $0xe80] sm:$0xff]  ;;  %v1017_v54 = vld [vmem:[%s11683_s28 + $0xe88] sm:$0xff] }
  0xc3   : > { %3802 = vmatprep.subr.bf16.mxu0 %v7605_v4  ;;  %3966 = vmatprep.subr.bf16.mxu1 %v7607_v8  ;;  %v7661_v4 = vcombine.high %v968_v61, %v972_v62  ;;  %v7663_v8 = vcombine.high %v969_v63, %v973_v1  ;;  %v1020_v52 = vld [vmem:[%s11683_s28 + $0xea0] sm:$0xff]  ;;  %v1021_v56 = vld [vmem:[%s11683_s28 + $0xea8] sm:$0xff] }
  0xc6   : > { %3803 = vmatpush1.bf16.msra.mxu0 %v7604_v10  ;;  %3967 = vmatpush1.bf16.msra.mxu1 %v7606_v11  ;;  %v7660_v10 = vcombine.low %v968_v61, %v972_v62  ;;  %v7662_v11 = vcombine.low %v969_v63, %v973_v1  ;;  %v1024_v61 = vld [vmem:[%s11683_s28 + $0xec0] sm:$0xff]  ;;  %v1025_v63 = vld [vmem:[%s11683_s28 + $0xec8] sm:$0xff] }
  0xc7   : > { %3804 = vmatprep.subr.bf16.mxu0 %v7613_v13  ;;  %3968 = vmatprep.subr.bf16.mxu1 %v7615_v18  ;;  %v7669_v13 = vcombine.high %v976_v5, %v980_v6  ;;  %v7671_v18 = vcombine.high %v977_v7, %v981_v9  ;;  %v1028_v62 = vld [vmem:[%s11683_s28 + $0xee0] sm:$0xff]  ;;  %v1029_v1 = vld [vmem:[%s11683_s28 + $0xee8] sm:$0xff] }
  0xca   : > { %3805 = vmatpush1.bf16.msra.mxu0 %v7612_v19  ;;  %3969 = vmatpush1.bf16.msra.mxu1 %v7614_v20  ;;  %v7668_v19 = vcombine.low %v976_v5, %v980_v6  ;;  %v7670_v20 = vcombine.low %v977_v7, %v981_v9  ;;  %v1032_v5 = vld [vmem:[%s11683_s28 + $0xf00] sm:$0xff]  ;;  %v1033_v7 = vld [vmem:[%s11683_s28 + $0xf08] sm:$0xff] }
  0xcb   : > { %3806 = vmatprep.subr.bf16.mxu0 %v7621_v21  ;;  %3970 = vmatprep.subr.bf16.mxu1 %v7623_v28  ;;  %v7677_v21 = vcombine.high %v984_v14, %v988_v16  ;;  %v7679_v28 = vcombine.high %v985_v17, %v989_v53  ;;  %v1036_v6 = vld [vmem:[%s11683_s28 + $0xf20] sm:$0xff]  ;;  %v1037_v9 = vld [vmem:[%s11683_s28 + $0xf28] sm:$0xff] }
  0xcc   : > { %v1041_v17 = vld [vmem:[%s11683_s28 + $0xf48] sm:$0xff] }
  0xcd   : > { %v1045_v53 = vld [vmem:[%s11683_s28 + $0xf68] sm:$0xff] }
  0xce   : > { %3807 = vmatpush1.bf16.msra.mxu0 %v7620_v30  ;;  %3971 = vmatpush1.bf16.msra.mxu1 %v7622_v15  ;;  %v7676_v30 = vcombine.low %v984_v14, %v988_v16  ;;  %v7685_v15 = vcombine.high %v992_v22, %v996_v26  ;;  %v1040_v14 = vld [vmem:[%s11683_s28 + $0xf40] sm:$0xff] }
  0xcf   : > { %3817 = vmatprep.subr.bf16.mxu0 %v7629_v32  ;;  %3981 = vmatprep.subr.bf16.mxu1 %v7631_v37  ;;  %v1000_v32 = vld [vmem:[%s11683_s28 + $0xe00] sm:$0xff]  ;;  %v1005_v37 = vld [vmem:[%s11683_s28 + $0xe28] sm:$0xff] }
  0xd0   : > { %v1044_v16 = vld [vmem:[%s11683_s28 + $0xf60] sm:$0xff] }
  0xd1   : > { %3809 = vmatmul.mubr.bf16.vlgmr.msra.gmra.mrb[0].mxu0 %v9539_v39  ;;  %3973 = vmatmul.mubr.bf16.vlgmr.msra.gmra.mrb[0].mxu1 %v9539_v39 }
  0xd2   : > { %3818 = vmatpush1.bf16.msra.mxu0 %v7628_v40  ;;  %3982 = vmatpush1.bf16.msra.mxu1 %v7630_v41  ;;  %v7684_v40 = vcombine.low %v992_v22, %v996_v26  ;;  %v7686_v41 = vcombine.low %v993_v27, %v997_v29  ;;  %v1048_v22 = vld [vmem:[%s11683_s28 + $0xf80] sm:$0xff]  ;;  %v1049_v27 = vld [vmem:[%s11683_s28 + $0xf88] sm:$0xff] }
  0xd3   : > { %3819 = vmatprep.subr.bf16.mxu0 %v7637_v42  ;;  %3983 = vmatprep.subr.bf16.mxu1 %v7639_v24  ;;  %v7693_v42 = vcombine.high %v1000_v32, %v1004_v34  ;;  %v7695_v24 = vcombine.high %v1001_v35, %v1005_v37  ;;  %v1052_v26 = vld [vmem:[%s11683_s28 + $0xfa0] sm:$0xff]  ;;  %v1053_v29 = vld [vmem:[%s11683_s28 + $0xfa8] sm:$0xff] }
  0xd4   : > { %3849 = vmatprep.mubr.bf16.mxu0 %v9555_v47  ;;  %4013 = vmatprep.mubr.bf16.mxu1 %v9555_v47 }
  0xd6   : > { %3820 = vmatpush1.bf16.msra.mxu0 %v7636_v48  ;;  %3984 = vmatpush1.bf16.msra.mxu1 %v7638_v49  ;;  %v7692_v48 = vcombine.low %v1000_v32, %v1004_v34  ;;  %v7694_v49 = vcombine.low %v1001_v35, %v1005_v37  ;;  %v1056_v32 = vld [vmem:[%s11683_s28 + $0xfc0] sm:$0xff]  ;;  %v1057_v35 = vld [vmem:[%s11683_s28 + $0xfc8] sm:$0xff] }
  0xd7   : > { %3821 = vmatprep.subr.bf16.mxu0 %v7645_v50  ;;  %3985 = vmatprep.subr.bf16.mxu1 %v7647_v55  ;;  %v7701_v50 = vcombine.high %v1008_v43, %v1012_v44  ;;  %v7703_v55 = vcombine.high %v1009_v45, %v1013_v46  ;;  %v1060_v34 = vld [vmem:[%s11683_s28 + $0xfe0] sm:$0xff]  ;;  %v1061_v37 = vld [vmem:[%s11683_s28 + $0xfe8] sm:$0xff] }
  0xda   : > { %3822 = vmatpush1.bf16.msra.mxu0 %v7644_v58  ;;  %3986 = vmatpush1.bf16.msra.mxu1 %v7646_v59  ;;  %v7700_v58 = vcombine.low %v1008_v43, %v1012_v44  ;;  %v7702_v59 = vcombine.low %v1009_v45, %v1013_v46  ;;  %v7751_v43 = vcombine.high %v1057_v35, %v1061_v37  ;;  %v554_v44 = vld [vmem:[%s11683_s28 + $0x10] sm:$0xff]  ;;  %v559_v46 = vld [vmem:[%s11683_s28 + $0x38] sm:$0xff] }
  0xdb   : > { %3823 = vmatprep.subr.bf16.mxu0 %v7653_v60  ;;  %3987 = vmatprep.subr.bf16.mxu1 %v7655_v0  ;;  %v7709_v60 = vcombine.high %v1016_v51, %v1020_v52  ;;  %v7711_v0 = vcombine.high %v1017_v54, %v1021_v56  ;;  %v558_v45 = vld [vmem:[%s11683_s28 + $0x30] sm:$0xff] }
  0xde   : > { %3824 = vmatpush1.bf16.msra.mxu0 %v7652_v2  ;;  %3988 = vmatpush1.bf16.msra.mxu1 %v7654_v3  ;;  %v7708_v2 = vcombine.low %v1016_v51, %v1020_v52  ;;  %v7710_v3 = vcombine.low %v1017_v54, %v1021_v56  ;;  %v562_v52 = vld [vmem:[%s11683_s28 + $0x50] sm:$0xff]  ;;  %v563_v56 = vld [vmem:[%s11683_s28 + $0x58] sm:$0xff] }
  0xdf   : > { %3825 = vmatprep.subr.bf16.mxu0 %v7661_v4  ;;  %3989 = vmatprep.subr.bf16.mxu1 %v7663_v8  ;;  %v7717_v4 = vcombine.high %v1024_v61, %v1028_v62  ;;  %v7719_v8 = vcombine.high %v1025_v63, %v1029_v1  ;;  %v566_v54 = vld [vmem:[%s11683_s28 + $0x70] sm:$0xff] }
  0xe2   : > { %3826 = vmatpush1.bf16.msra.mxu0 %v7660_v10  ;;  %3990 = vmatpush1.bf16.msra.mxu1 %v7662_v11  ;;  %v7716_v10 = vcombine.low %v1024_v61, %v1028_v62  ;;  %v7718_v11 = vcombine.low %v1025_v63, %v1029_v1  ;;  %v7257_v61 = vcombine.high %v562_v52, %v566_v54  ;;  %v574_v63 = vld [vmem:[%s11683_s28 + $0xb0] sm:$0xff]  ;;  %v575_v1 = vld [vmem:[%s11683_s28 + $0xb8] sm:$0xff] }
  0xe3   : > { %3827 = vmatprep.subr.bf16.mxu0 %v7669_v13  ;;  %3991 = vmatprep.subr.bf16.mxu1 %v7671_v18  ;;  %v7725_v13 = vcombine.high %v1032_v5, %v1036_v6  ;;  %v7727_v18 = vcombine.high %v1033_v7, %v1037_v9 }
  0xe6   : > { %3828 = vmatpush1.bf16.msra.mxu0 %v7668_v19  ;;  %3992 = vmatpush1.bf16.msra.mxu1 %v7670_v20  ;;  %v7724_v19 = vcombine.low %v1032_v5, %v1036_v6  ;;  %v7726_v20 = vcombine.low %v1033_v7, %v1037_v9  ;;  %v578_v6 = vld [vmem:[%s11683_s28 + $0xd0] sm:$0xff]  ;;  %v583_v9 = vld [vmem:[%s11683_s28 + $0xf8] sm:$0xff] }
  0xe7   : > { %3829 = vmatprep.subr.bf16.mxu0 %v7677_v21  ;;  %3993 = vmatprep.subr.bf16.mxu1 %v7679_v28  ;;  %v7733_v21 = vcombine.high %v1040_v14, %v1044_v16  ;;  %v7735_v28 = vcombine.high %v1041_v17, %v1045_v53  ;;  %v582_v7 = vld [vmem:[%s11683_s28 + $0xf0] sm:$0xff] }
  0xea   : > { %3830 = vmatpush1.bf16.msra.mxu0 %v7676_v30  ;;  %3994 = vmatpush1.bf16.msra.mxu1 %v7678_v31  ;;  %v7732_v30 = vcombine.low %v1040_v14, %v1044_v16  ;;  %v7734_v31 = vcombine.low %v1041_v17, %v1045_v53  ;;  %v586_v16 = vld [vmem:[%s11683_s28 + $0x110] sm:$0xff]  ;;  %v7272_v53 = vcombine.low %v578_v6, %v582_v7 }
  0xeb   : > { %3831 = vmatprep.subr.bf16.mxu0 %v7685_v15  ;;  %3995 = vmatprep.subr.bf16.mxu1 %v7687_v36  ;;  %v7741_v15 = vcombine.high %v1048_v22, %v1052_v26  ;;  %v7743_v36 = vcombine.high %v1049_v27, %v1053_v29  ;;  %v590_v17 = vld [vmem:[%s11683_s28 + $0x130] sm:$0xff] }
  0xee   : > { %3832 = vmatpush1.bf16.msra.mxu0 %v7684_v40  ;;  %3996 = vmatpush1.bf16.msra.mxu1 %v7686_v41  ;;  %v7740_v40 = vcombine.low %v1048_v22, %v1052_v26  ;;  %v7742_v41 = vcombine.low %v1049_v27, %v1053_v29  ;;  %v594_v22 = vld [vmem:[%s11683_s28 + $0x150] sm:$0xff]  ;;  %v595_v27 = vld [vmem:[%s11683_s28 + $0x158] sm:$0xff]  ;;  %v7280_v29 = vcombine.low %v586_v16, %v590_v17 }
  0xef   : > { %3833 = vmatprep.subr.bf16.mxu0 %v7693_v42  ;;  %3997 = vmatprep.subr.bf16.mxu1 %v7695_v24  ;;  %v7749_v42 = vcombine.high %v1056_v32, %v1060_v34  ;;  %v555_v24 = vld [vmem:[%s11683_s28 + $0x18] sm:$0xff]  ;;  %v598_v26 = vld [vmem:[%s11683_s28 + $0x170] sm:$0xff] }
  0xf0   : > { %v7251_v51 = vcombine.high %v555_v24, %v559_v46 }
  0xf2   : > { %3834 = vmatpush1.bf16.msra.mxu0 %v7692_v48  ;;  %3998 = vmatpush1.bf16.msra.mxu1 %v7694_v49  ;;  %v7748_v48 = vcombine.low %v1056_v32, %v1060_v34  ;;  %v7750_v49 = vcombine.low %v1057_v35, %v1061_v37  ;;  %v602_v32 = vld [vmem:[%s11683_s28 + $0x190] sm:$0xff]  ;;  %v603_v35 = vld [vmem:[%s11683_s28 + $0x198] sm:$0xff]  ;;  %v7288_v37 = vcombine.low %v594_v22, %v598_v26 }
  0xf3   : > { %3835 = vmatprep.subr.bf16.mxu0 %v7701_v50  ;;  %3999 = vmatprep.subr.bf16.mxu1 %v7703_v55  ;;  %v7249_v50 = vcombine.high %v554_v44, %v558_v45  ;;  %v9737_v55 = vcombine.low %v9535_v38, %v9535_v38  ;;  %v570_v38 = vld [vmem:[%s11683_s28 + $0x90] sm:$0xff] }
  0xf4   : > { %v606_v34 = vld [vmem:[%s11683_s28 + $0x1b0] sm:$0xff] }
  0xf6   : > { %3836 = vmatpush1.bf16.msra.mxu0 %v7700_v58  ;;  %4000 = vmatpush1.bf16.msra.mxu1 %v7702_v59  ;;  %v567_v58 = vld [vmem:[%s11683_s28 + $0x78] sm:$0xff]  ;;  %v7248_v59 = vcombine.low %v554_v44, %v558_v45  ;;  %v614_v44 = vld [vmem:[%s11683_s28 + $0x1f0] sm:$0xff] }
  0xf7   : > { %3837 = vmatprep.subr.bf16.mxu0 %v7709_v60  ;;  %4001 = vmatprep.subr.bf16.mxu1 %v7711_v0  ;;  %v7250_v60 = vcombine.low %v555_v24, %v559_v46  ;;  %v7259_v62 = vcombine.high %v563_v56, %v567_v58  ;;  %v571_v0 = vld [vmem:[%s11683_s28 + $0x98] sm:$0xff]  ;;  %v7296_v46 = vcombine.low %v602_v32, %v606_v34 }
  0xf8   : > { %v7267_v5 = vcombine.high %v571_v0, %v575_v1  ;;  %v611_v45 = vld [vmem:[%s11683_s28 + $0x1d8] sm:$0xff] }
  0xf9   : > { %v615_v24 = vld [vmem:[%s11683_s28 + $0x1f8] sm:$0xff] }
  0xfa   : > { %3838 = vmatpush1.bf16.msra.mxu0 %v7708_v2  ;;  %4002 = vmatpush1.bf16.msra.mxu1 %v7710_v3  ;;  %v7256_v2 = vcombine.low %v562_v52, %v566_v54  ;;  %v7258_v3 = vcombine.low %v563_v56, %v567_v58  ;;  %v622_v52 = vld [vmem:[%s11683_s28 + $0x230] sm:$0xff]  ;;  %v619_v54 = vld [vmem:[%s11683_s28 + $0x218] sm:$0xff] }
  0xfb   : > { %3839 = vmatprep.subr.bf16.mxu0 %v7717_v4  ;;  %4003 = vmatprep.subr.bf16.mxu1 %v7719_v8  ;;  %v7265_v4 = vcombine.high %v570_v38, %v574_v63  ;;  %v579_v8 = vld [vmem:[%s11683_s28 + $0xd8] sm:$0xff] }
  0xfc   : > { %v7275_v14 = vcombine.high %v579_v8, %v583_v9  ;;  %v623_v56 = vld [vmem:[%s11683_s28 + $0x238] sm:$0xff] }
  0xfe   : > { %3840 = vmatpush1.bf16.msra.mxu0 %v7716_v10  ;;  %4004 = vmatpush1.bf16.msra.mxu1 %v7718_v11  ;;  %v7264_v10 = vcombine.low %v570_v38, %v574_v63  ;;  %v7266_v11 = vcombine.low %v571_v0, %v575_v1  ;;  %v630_v38 = vld [vmem:[%s11683_s28 + $0x270] sm:$0xff]  ;;  %v627_v63 = vld [vmem:[%s11683_s28 + $0x258] sm:$0xff] }
  0xff   : > { %3841 = vmatprep.subr.bf16.mxu0 %v7725_v13  ;;  %4005 = vmatprep.subr.bf16.mxu1 %v7727_v18  ;;  %v7273_v13 = vcombine.high %v578_v6, %v582_v7  ;;  %v591_v18 = vld [vmem:[%s11683_s28 + $0x138] sm:$0xff]  ;;  %v638_v6 = vld [vmem:[%s11683_s28 + $0x2b0] sm:$0xff] }
 0x100   : > { %v631_v0 = vld [vmem:[%s11683_s28 + $0x278] sm:$0xff] }
 0x101   : > { %v635_v7 = vld [vmem:[%s11683_s28 + $0x298] sm:$0xff] }
 0x102   : > { %3842 = vmatpush1.bf16.msra.mxu0 %v7724_v19  ;;  %4006 = vmatpush1.bf16.msra.mxu1 %v7726_v20  ;;  %v7274_v19 = vcombine.low %v579_v8, %v583_v9  ;;  %v7281_v20 = vcombine.high %v586_v16, %v590_v17  ;;  %v639_v8 = vld [vmem:[%s11683_s28 + $0x2b8] sm:$0xff]  ;;  %v646_v16 = vld [vmem:[%s11683_s28 + $0x2f0] sm:$0xff] }
 0x103   : > { %3843 = vmatprep.subr.bf16.mxu0 %v7733_v21  ;;  %4007 = vmatprep.subr.bf16.mxu1 %v7735_v28  ;;  %v599_v28 = vld [vmem:[%s11683_s28 + $0x178] sm:$0xff] }
 0x104   : > { %v643_v17 = vld [vmem:[%s11683_s28 + $0x2d8] sm:$0xff] }
 0x106   : > { %3844 = vmatpush1.bf16.msra.mxu0 %v7732_v30  ;;  %4008 = vmatpush1.bf16.msra.mxu1 %v7734_v31  ;;  %v7289_v31 = vcombine.high %v594_v22, %v598_v26  ;;  %v654_v22 = vld [vmem:[%s11683_s28 + $0x330] sm:$0xff]  ;;  %v651_v26 = vld [vmem:[%s11683_s28 + $0x318] sm:$0xff] }
 0x107   : > { %3845 = vmatprep.subr.bf16.mxu0 %v7741_v15  ;;  %4009 = vmatprep.subr.bf16.mxu1 %v7743_v36  ;;  %v7291_v15 = vcombine.high %v595_v27, %v599_v28  ;;  %v607_v36 = vld [vmem:[%s11683_s28 + $0x1b8] sm:$0xff] }
 0x10a   : > { %3846 = vmatpush1.bf16.msra.mxu0 %v7740_v40  ;;  %4010 = vmatpush1.bf16.msra.mxu1 %v7742_v41  ;;  %v7290_v40 = vcombine.low %v595_v27, %v599_v28  ;;  %v7297_v41 = vcombine.high %v602_v32, %v606_v34  ;;  %v655_v27 = vld [vmem:[%s11683_s28 + $0x338] sm:$0xff]  ;;  %v662_v32 = vld [vmem:[%s11683_s28 + $0x370] sm:$0xff] }
 0x10b   : > { %3847 = vmatprep.subr.bf16.mxu0 %v7749_v42  ;;  %4011 = vmatprep.subr.bf16.mxu1 %v7751_v43  ;;  %v7299_v42 = vcombine.high %v603_v35, %v607_v36  ;;  %v610_v43 = vld [vmem:[%s11683_s28 + $0x1d0] sm:$0xff]  ;;  %v659_v34 = vld [vmem:[%s11683_s28 + $0x358] sm:$0xff] }
 0x10c   : > { %v7304_v58 = vcombine.low %v610_v43, %v614_v44 }
 0x10e   : > { %3848 = vmatpush1.bf16.msra.mxu0 %v7748_v48  ;;  %4012 = vmatpush1.bf16.msra.mxu1 %v7750_v49  ;;  %v7298_v48 = vcombine.low %v603_v35, %v607_v36  ;;  %v7305_v49 = vcombine.high %v610_v43, %v614_v44  ;;  %v663_v35 = vld [vmem:[%s11683_s28 + $0x378] sm:$0xff]  ;;  %v670_v43 = vld [vmem:[%s11683_s28 + $0x3b0] sm:$0xff] }
 0x10f   : > { %4022 = vmatprep.subr.bf16.mxu0 %v7249_v50  ;;  %4186 = vmatprep.subr.bf16.mxu1 %v7251_v51  ;;  %v7307_v50 = vcombine.high %v611_v45, %v615_v24  ;;  %v618_v51 = vld [vmem:[%s11683_s28 + $0x210] sm:$0xff]  ;;  %v667_v44 = vld [vmem:[%s11683_s28 + $0x398] sm:$0xff] }
 0x110   : > { %v7312_v1 = vcombine.low %v618_v51, %v622_v52 }
 0x111   : > { %3850 = vmatmul.mubr.bf16.vlgmr.msra.gmra.mrb[0].mxu0 %v9737_v55  ;;  %4014 = vmatmul.mubr.bf16.vlgmr.msra.gmra.mrb[0].mxu1 %v9737_v55 }
 0x112   : > { %4023 = vmatpush1.bf16.msra.mxu0 %v7248_v59  ;;  %4187 = vmatpush1.bf16.msra.mxu1 %v7250_v60  ;;  %v7306_v59 = vcombine.low %v611_v45, %v615_v24  ;;  %v7313_v60 = vcombine.high %v618_v51, %v622_v52  ;;  %v671_v45 = vld [vmem:[%s11683_s28 + $0x3b8] sm:$0xff]  ;;  %v678_v51 = vld [vmem:[%s11683_s28 + $0x3f0] sm:$0xff] }
 0x113   : > { %4024 = vmatprep.subr.bf16.mxu0 %v7257_v61  ;;  %4188 = vmatprep.subr.bf16.mxu1 %v7259_v62  ;;  %v7315_v61 = vcombine.high %v619_v54, %v623_v56  ;;  %v626_v62 = vld [vmem:[%s11683_s28 + $0x250] sm:$0xff]  ;;  %v675_v52 = vld [vmem:[%s11683_s28 + $0x3d8] sm:$0xff] }
 0x114   : > { %4054 = vmatprep.mubr.bf16.mxu0 %v8990_v57  ;;  %4218 = vmatprep.mubr.bf16.mxu1 %v8990_v57  ;;  %v587_v57 = vld [vmem:[%s11683_s28 + $0x118] sm:$0xff]  ;;  %v7320_v9 = vcombine.low %v626_v62, %v630_v38 }
 0x115   : > { %v7283_v21 = vcombine.high %v587_v57, %v591_v18  ;;  %v7282_v30 = vcombine.low %v587_v57, %v591_v18  ;;  %v647_v57 = vld [vmem:[%s11683_s28 + $0x2f8] sm:$0xff] }
 0x116   : > { %4025 = vmatpush1.bf16.msra.mxu0 %v7256_v2  ;;  %4189 = vmatpush1.bf16.msra.mxu1 %v7258_v3  ;;  %v7314_v2 = vcombine.low %v619_v54, %v623_v56  ;;  %v7321_v3 = vcombine.high %v626_v62, %v630_v38  ;;  %v679_v54 = vld [vmem:[%s11683_s28 + $0x3f8] sm:$0xff]  ;;  %v686_v62 = vld [vmem:[%s11683_s28 + $0x430] sm:$0xff] }
 0x117   : > { %4026 = vmatprep.subr.bf16.mxu0 %v7265_v4  ;;  %4190 = vmatprep.subr.bf16.mxu1 %v7267_v5  ;;  %v7323_v4 = vcombine.high %v627_v63, %v631_v0  ;;  %v634_v5 = vld [vmem:[%s11683_s28 + $0x290] sm:$0xff]  ;;  %v683_v38 = vld [vmem:[%s11683_s28 + $0x418] sm:$0xff] }
 0x118   : > { %v7328_v18 = vcombine.low %v634_v5, %v638_v6 }
 0x11a   : > { %4027 = vmatpush1.bf16.msra.mxu0 %v7264_v10  ;;  %4191 = vmatpush1.bf16.msra.mxu1 %v7266_v11  ;;  %v7322_v10 = vcombine.low %v627_v63, %v631_v0  ;;  %v7329_v11 = vcombine.high %v634_v5, %v638_v6  ;;  %v687_v63 = vld [vmem:[%s11683_s28 + $0x438] sm:$0xff]  ;;  %v694_v5 = vld [vmem:[%s11683_s28 + $0x470] sm:$0xff] }
 0x11b   : > { %4028 = vmatprep.subr.bf16.mxu0 %v7273_v13  ;;  %4192 = vmatprep.subr.bf16.mxu1 %v7275_v14  ;;  %v7331_v13 = vcombine.high %v635_v7, %v639_v8  ;;  %v642_v14 = vld [vmem:[%s11683_s28 + $0x2d0] sm:$0xff]  ;;  %v691_v6 = vld [vmem:[%s11683_s28 + $0x458] sm:$0xff] }
 0x11c   : > { %v7336_v28 = vcombine.low %v642_v14, %v646_v16 }
 0x11e   : > { %4029 = vmatpush1.bf16.msra.mxu0 %v7272_v53  ;;  %4193 = vmatpush1.bf16.msra.mxu1 %v7274_v19  ;;  %v7330_v53 = vcombine.low %v635_v7, %v639_v8  ;;  %v7337_v19 = vcombine.high %v642_v14, %v646_v16  ;;  %v695_v7 = vld [vmem:[%s11683_s28 + $0x478] sm:$0xff]  ;;  %v702_v14 = vld [vmem:[%s11683_s28 + $0x4b0] sm:$0xff] }
 0x11f   : > { %4030 = vmatprep.subr.bf16.mxu0 %v7281_v20  ;;  %4194 = vmatprep.subr.bf16.mxu1 %v7283_v21  ;;  %v7339_v20 = vcombine.high %v643_v17, %v647_v57  ;;  %v650_v21 = vld [vmem:[%s11683_s28 + $0x310] sm:$0xff]  ;;  %v699_v16 = vld [vmem:[%s11683_s28 + $0x498] sm:$0xff] }
 0x120   : > { %v7344_v36 = vcombine.low %v650_v21, %v654_v22 }
 0x122   : > { %4031 = vmatpush1.bf16.msra.mxu0 %v7280_v29  ;;  %4195 = vmatpush1.bf16.msra.mxu1 %v7282_v30  ;;  %v7338_v29 = vcombine.low %v643_v17, %v647_v57  ;;  %v7345_v30 = vcombine.high %v650_v21, %v654_v22  ;;  %v703_v17 = vld [vmem:[%s11683_s28 + $0x4b8] sm:$0xff]  ;;  %v710_v21 = vld [vmem:[%s11683_s28 + $0x4f0] sm:$0xff] }
 0x123   : > { %4032 = vmatprep.subr.bf16.mxu0 %v7289_v31  ;;  %4196 = vmatprep.subr.bf16.mxu1 %v7291_v15  ;;  %v7347_v31 = vcombine.high %v651_v26, %v655_v27  ;;  %v658_v15 = vld [vmem:[%s11683_s28 + $0x350] sm:$0xff]  ;;  %v711_v22 = vld [vmem:[%s11683_s28 + $0x4f8] sm:$0xff] }
 0x124   : > { %v7352_v24 = vcombine.low %v658_v15, %v662_v32 }
 0x126   : > { %4033 = vmatpush1.bf16.msra.mxu0 %v7288_v37  ;;  %4197 = vmatpush1.bf16.msra.mxu1 %v7290_v40  ;;  %v7346_v37 = vcombine.low %v651_v26, %v655_v27  ;;  %v7353_v40 = vcombine.high %v658_v15, %v662_v32  ;;  %v7394_v27 = vcombine.low %v699_v16, %v703_v17  ;;  %v719_v15 = vld [vmem:[%s11683_s28 + $0x538] sm:$0xff] }
 0x127   : > { %4034 = vmatprep.subr.bf16.mxu0 %v7297_v41  ;;  %4198 = vmatprep.subr.bf16.mxu1 %v7299_v42  ;;  %v7355_v41 = vcombine.high %v659_v34, %v663_v35  ;;  %v666_v42 = vld [vmem:[%s11683_s28 + $0x390] sm:$0xff] }
 0x128   : > { %v7360_v56 = vcombine.low %v666_v42, %v670_v43 }
 0x12a   : > { %4035 = vmatpush1.bf16.msra.mxu0 %v7296_v46  ;;  %4199 = vmatpush1.bf16.msra.mxu1 %v7298_v48  ;;  %v7354_v46 = vcombine.low %v659_v34, %v663_v35  ;;  %v7361_v48 = vcombine.high %v666_v42, %v670_v43  ;;  %v727_v42 = vld [vmem:[%s11683_s28 + $0x578] sm:$0xff] }
 0x12b   : > { %4036 = vmatprep.subr.bf16.mxu0 %v7305_v49  ;;  %4200 = vmatprep.subr.bf16.mxu1 %v7307_v50  ;;  %v7363_v49 = vcombine.high %v667_v44, %v671_v45  ;;  %v674_v50 = vld [vmem:[%s11683_s28 + $0x3d0] sm:$0xff] }
 0x12c   : > { %v7368_v0 = vcombine.low %v674_v50, %v678_v51 }
 0x12e   : > { %4037 = vmatpush1.bf16.msra.mxu0 %v7304_v58  ;;  %4201 = vmatpush1.bf16.msra.mxu1 %v7306_v59  ;;  %v7362_v58 = vcombine.low %v667_v44, %v671_v45  ;;  %v7369_v59 = vcombine.high %v674_v50, %v678_v51  ;;  %v735_v50 = vld [vmem:[%s11683_s28 + $0x5b8] sm:$0xff] }
 0x12f   : > { %4038 = vmatprep.subr.bf16.mxu0 %v7313_v60  ;;  %4202 = vmatprep.subr.bf16.mxu1 %v7315_v61  ;;  %v7371_v60 = vcombine.high %v675_v52, %v679_v54  ;;  %v682_v61 = vld [vmem:[%s11683_s28 + $0x410] sm:$0xff] }
 0x130   : > { %v7376_v8 = vcombine.low %v682_v61, %v686_v62 }
 0x132   : > { %4039 = vmatpush1.bf16.msra.mxu0 %v7312_v1  ;;  %4203 = vmatpush1.bf16.msra.mxu1 %v7314_v2  ;;  %v7370_v1 = vcombine.low %v675_v52, %v679_v54  ;;  %v7377_v2 = vcombine.high %v682_v61, %v686_v62  ;;  %v743_v61 = vld [vmem:[%s11683_s28 + $0x5f8] sm:$0xff] }
 0x133   : > { %4040 = vmatprep.subr.bf16.mxu0 %v7321_v3  ;;  %4204 = vmatprep.subr.bf16.mxu1 %v7323_v4  ;;  %v7379_v3 = vcombine.high %v683_v38, %v687_v63  ;;  %v690_v4 = vld [vmem:[%s11683_s28 + $0x450] sm:$0xff] }
 0x134   : > { %v7384_v57 = vcombine.low %v690_v4, %v694_v5 }
 0x136   : > { %4041 = vmatpush1.bf16.msra.mxu0 %v7320_v9  ;;  %4205 = vmatpush1.bf16.msra.mxu1 %v7322_v10  ;;  %v7378_v9 = vcombine.low %v683_v38, %v687_v63  ;;  %v7385_v10 = vcombine.high %v690_v4, %v694_v5  ;;  %v751_v4 = vld [vmem:[%s11683_s28 + $0x638] sm:$0xff] }
 0x137   : > { %4042 = vmatprep.subr.bf16.mxu0 %v7329_v11  ;;  %4206 = vmatprep.subr.bf16.mxu1 %v7331_v13  ;;  %v7387_v11 = vcombine.high %v691_v6, %v695_v7  ;;  %v698_v13 = vld [vmem:[%s11683_s28 + $0x490] sm:$0xff] }
 0x138   : > { %v7392_v26 = vcombine.low %v698_v13, %v702_v14 }
 0x13a   : > { %4043 = vmatpush1.bf16.msra.mxu0 %v7328_v18  ;;  %4207 = vmatpush1.bf16.msra.mxu1 %v7330_v53  ;;  %v7386_v18 = vcombine.low %v691_v6, %v695_v7  ;;  %v7393_v53 = vcombine.high %v698_v13, %v702_v14  ;;  %v759_v13 = vld [vmem:[%s11683_s28 + $0x678] sm:$0xff] }
 0x13b   : > { %4044 = vmatprep.subr.bf16.mxu0 %v7337_v19  ;;  %4208 = vmatprep.subr.bf16.mxu1 %v7339_v20  ;;  %v7395_v19 = vcombine.high %v699_v16, %v703_v17  ;;  %v706_v20 = vld [vmem:[%s11683_s28 + $0x4d0] sm:$0xff] }
 0x13c   : > { %v7400_v32 = vcombine.low %v706_v20, %v710_v21 }
 0x13e   : > { %4045 = vmatpush1.bf16.msra.mxu0 %v7336_v28  ;;  %4209 = vmatpush1.bf16.msra.mxu1 %v7338_v29  ;;  %v7401_v28 = vcombine.high %v706_v20, %v710_v21  ;;  %v767_v20 = vld [vmem:[%s11683_s28 + $0x6b8] sm:$0xff] }
 0x13f   : > { %4046 = vmatprep.subr.bf16.mxu0 %v7345_v30  ;;  %4210 = vmatprep.subr.bf16.mxu1 %v7347_v31  ;;  %v714_v30 = vld [vmem:[%s11683_s28 + $0x510] sm:$0xff] }
 0x140   : > { %v718_v31 = vld [vmem:[%s11683_s28 + $0x530] sm:$0xff] }
 0x141   : > { %v7409_v35 = vcombine.high %v714_v30, %v718_v31  ;;  %v7408_v43 = vcombine.low %v714_v30, %v718_v31  ;;  %v775_v30 = vld [vmem:[%s11683_s28 + $0x6f8] sm:$0xff] }
 0x142   : > { %4047 = vmatpush1.bf16.msra.mxu0 %v7344_v36  ;;  %4211 = vmatpush1.bf16.msra.mxu1 %v7346_v37  ;;  %v722_v37 = vld [vmem:[%s11683_s28 + $0x550] sm:$0xff] }
 0x143   : > { %4048 = vmatprep.subr.bf16.mxu0 %v7353_v40  ;;  %4212 = vmatprep.subr.bf16.mxu1 %v7355_v41  ;;  %v726_v40 = vld [vmem:[%s11683_s28 + $0x570] sm:$0xff]  ;;  %v723_v41 = vld [vmem:[%s11683_s28 + $0x558] sm:$0xff] }
 0x144   : > { %v7417_v45 = vcombine.high %v722_v37, %v726_v40  ;;  %v7416_v51 = vcombine.low %v722_v37, %v726_v40  ;;  %v7418_v52 = vcombine.low %v723_v41, %v727_v42  ;;  %v783_v37 = vld [vmem:[%s11683_s28 + $0x738] sm:$0xff] }
 0x146   : > { %4049 = vmatpush1.bf16.msra.mxu0 %v7352_v24  ;;  %4213 = vmatpush1.bf16.msra.mxu1 %v7354_v46  ;;  %v7419_v24 = vcombine.high %v723_v41, %v727_v42  ;;  %v730_v46 = vld [vmem:[%s11683_s28 + $0x590] sm:$0xff] }
 0x147   : > { %4050 = vmatprep.subr.bf16.mxu0 %v7361_v48  ;;  %4214 = vmatprep.subr.bf16.mxu1 %v7363_v49  ;;  %v734_v48 = vld [vmem:[%s11683_s28 + $0x5b0] sm:$0xff]  ;;  %v731_v49 = vld [vmem:[%s11683_s28 + $0x598] sm:$0xff] }
 0x148   : > { %v7425_v54 = vcombine.high %v730_v46, %v734_v48  ;;  %v7424_v62 = vcombine.low %v730_v46, %v734_v48  ;;  %v7426_v38 = vcombine.low %v731_v49, %v735_v50  ;;  %v791_v46 = vld [vmem:[%s11683_s28 + $0x778] sm:$0xff] }
 0x14a   : > { %4051 = vmatpush1.bf16.msra.mxu0 %v7360_v56  ;;  %4215 = vmatpush1.bf16.msra.mxu1 %v7362_v58  ;;  %v7427_v56 = vcombine.high %v731_v49, %v735_v50  ;;  %v738_v58 = vld [vmem:[%s11683_s28 + $0x5d0] sm:$0xff] }
 0x14b   : > { %4052 = vmatprep.subr.bf16.mxu0 %v7369_v59  ;;  %4216 = vmatprep.subr.bf16.mxu1 %v7371_v60  ;;  %v742_v59 = vld [vmem:[%s11683_s28 + $0x5f0] sm:$0xff]  ;;  %v739_v60 = vld [vmem:[%s11683_s28 + $0x5d8] sm:$0xff] }
 0x14c   : > { %v7433_v63 = vcombine.high %v738_v58, %v742_v59  ;;  %v7432_v5 = vcombine.low %v738_v58, %v742_v59  ;;  %v7434_v6 = vcombine.low %v739_v60, %v743_v61  ;;  %v799_v58 = vld [vmem:[%s11683_s28 + $0x7b8] sm:$0xff] }
 0x14e   : > { %4053 = vmatpush1.bf16.msra.mxu0 %v7368_v0  ;;  %4217 = vmatpush1.bf16.msra.mxu1 %v7370_v1  ;;  %v7435_v0 = vcombine.high %v739_v60, %v743_v61  ;;  %v746_v1 = vld [vmem:[%s11683_s28 + $0x610] sm:$0xff] }
 0x14f   : > { %4063 = vmatprep.subr.bf16.mxu0 %v7377_v2  ;;  %4227 = vmatprep.subr.bf16.mxu1 %v7379_v3  ;;  %v750_v2 = vld [vmem:[%s11683_s28 + $0x630] sm:$0xff]  ;;  %v747_v3 = vld [vmem:[%s11683_s28 + $0x618] sm:$0xff] }
 0x150   : > { %v7441_v7 = vcombine.high %v746_v1, %v750_v2  ;;  %v7440_v14 = vcombine.low %v746_v1, %v750_v2  ;;  %v7442_v16 = vcombine.low %v747_v3, %v751_v4  ;;  %v807_v1 = vld [vmem:[%s11683_s28 + $0x7f8] sm:$0xff] }
 0x151   : > { %4055 = vmatmul.mubr.bf16.vlgmr.msra.gmra.mrb[4].mxu0 %v9116_v12  ;;  %4219 = vmatmul.mubr.bf16.vlgmr.msra.gmra.mrb[4].mxu1 %v9116_v12  ;;  %v707_v12 = vld [vmem:[%s11683_s28 + $0x4d8] sm:$0xff] }
 0x152   : > { %4064 = vmatpush1.bf16.msra.mxu0 %v7376_v8  ;;  %4228 = vmatpush1.bf16.msra.mxu1 %v7378_v9  ;;  %v7403_v29 = vcombine.high %v707_v12, %v711_v22  ;;  %v7402_v34 = vcombine.low %v707_v12, %v711_v22  ;;  %v7443_v8 = vcombine.high %v747_v3, %v751_v4  ;;  %v754_v9 = vld [vmem:[%s11683_s28 + $0x650] sm:$0xff] }
 0x153   : > { %4065 = vmatprep.subr.bf16.mxu0 %v7385_v10  ;;  %4229 = vmatprep.subr.bf16.mxu1 %v7387_v11  ;;  %v758_v10 = vld [vmem:[%s11683_s28 + $0x670] sm:$0xff]  ;;  %v755_v11 = vld [vmem:[%s11683_s28 + $0x658] sm:$0xff] }
 0x154   : > { %4095 = vmatprep.mubr.bf16.mxu0 %v9141_v23  ;;  %4259 = vmatprep.mubr.bf16.mxu1 %v9141_v23  ;;  %v715_v23 = vld [vmem:[%s11683_s28 + $0x518] sm:$0xff]  ;;  %v7449_v17 = vcombine.high %v754_v9, %v758_v10  ;;  %v7448_v21 = vcombine.low %v754_v9, %v758_v10  ;;  %v7450_v12 = vcombine.low %v755_v11, %v759_v13 }
 0x155   : > { %v7411_v36 = vcombine.high %v715_v23, %v719_v15  ;;  %v7410_v44 = vcombine.low %v715_v23, %v719_v15  ;;  %v815_v9 = vld [vmem:[%s11683_s28 + $0x838] sm:$0xff] }
 0x156   : > { %4066 = vmatpush1.bf16.msra.mxu0 %v7384_v57  ;;  %4230 = vmatpush1.bf16.msra.mxu1 %v7386_v18  ;;  %v7451_v57 = vcombine.high %v755_v11, %v759_v13  ;;  %v762_v18 = vld [vmem:[%s11683_s28 + $0x690] sm:$0xff] }
 0x157   : > { %4067 = vmatprep.subr.bf16.mxu0 %v7393_v53  ;;  %4231 = vmatprep.subr.bf16.mxu1 %v7395_v19  ;;  %v766_v53 = vld [vmem:[%s11683_s28 + $0x6b0] sm:$0xff]  ;;  %v763_v19 = vld [vmem:[%s11683_s28 + $0x698] sm:$0xff] }
 0x158   : > { %v7457_v22 = vcombine.high %v762_v18, %v766_v53  ;;  %v7456_v31 = vcombine.low %v762_v18, %v766_v53  ;;  %v7458_v23 = vcombine.low %v763_v19, %v767_v20  ;;  %v823_v18 = vld [vmem:[%s11683_s28 + $0x878] sm:$0xff] }
 0x15a   : > { %4068 = vmatpush1.bf16.msra.mxu0 %v7392_v26  ;;  %4232 = vmatpush1.bf16.msra.mxu1 %v7394_v27  ;;  %v7459_v26 = vcombine.high %v763_v19, %v767_v20  ;;  %v770_v27 = vld [vmem:[%s11683_s28 + $0x6d0] sm:$0xff] }
 0x15b   : > { %4069 = vmatprep.subr.bf16.mxu0 %v7401_v28  ;;  %4233 = vmatprep.subr.bf16.mxu1 %v7403_v29  ;;  %v774_v28 = vld [vmem:[%s11683_s28 + $0x6f0] sm:$0xff]  ;;  %v771_v29 = vld [vmem:[%s11683_s28 + $0x6d8] sm:$0xff] }
 0x15c   : > { %v7465_v15 = vcombine.high %v770_v27, %v774_v28  ;;  %v7464_v40 = vcombine.low %v770_v27, %v774_v28  ;;  %v7466_v41 = vcombine.low %v771_v29, %v775_v30  ;;  %v831_v27 = vld [vmem:[%s11683_s28 + $0x8b8] sm:$0xff] }
 0x15e   : > { %4070 = vmatpush1.bf16.msra.mxu0 %v7400_v32  ;;  %4234 = vmatpush1.bf16.msra.mxu1 %v7402_v34  ;;  %v7467_v32 = vcombine.high %v771_v29, %v775_v30  ;;  %v778_v34 = vld [vmem:[%s11683_s28 + $0x710] sm:$0xff] }
 0x15f   : > { %4071 = vmatprep.subr.bf16.mxu0 %v7409_v35  ;;  %4235 = vmatprep.subr.bf16.mxu1 %v7411_v36  ;;  %v782_v35 = vld [vmem:[%s11683_s28 + $0x730] sm:$0xff]  ;;  %v779_v36 = vld [vmem:[%s11683_s28 + $0x718] sm:$0xff] }
 0x160   : > { %v7473_v42 = vcombine.high %v778_v34, %v782_v35  ;;  %v7472_v48 = vcombine.low %v778_v34, %v782_v35  ;;  %v7474_v49 = vcombine.low %v779_v36, %v783_v37 }
 0x162   : > { %4072 = vmatpush1.bf16.msra.mxu0 %v7408_v43  ;;  %4236 = vmatpush1.bf16.msra.mxu1 %v7410_v44  ;;  %v7475_v43 = vcombine.high %v779_v36, %v783_v37  ;;  %v786_v44 = vld [vmem:[%s11683_s28 + $0x750] sm:$0xff] }
 0x163   : > { %4073 = vmatprep.subr.bf16.mxu0 %v7417_v45  ;;  %4237 = vmatprep.subr.bf16.mxu1 %v7419_v24  ;;  %v790_v45 = vld [vmem:[%s11683_s28 + $0x770] sm:$0xff]  ;;  %v787_v24 = vld [vmem:[%s11683_s28 + $0x758] sm:$0xff] }
 0x164   : > { %v7481_v50 = vcombine.high %v786_v44, %v790_v45  ;;  %v7480_v59 = vcombine.low %v786_v44, %v790_v45  ;;  %v7482_v60 = vcombine.low %v787_v24, %v791_v46 }
 0x166   : > { %4074 = vmatpush1.bf16.msra.mxu0 %v7416_v51  ;;  %4238 = vmatpush1.bf16.msra.mxu1 %v7418_v52  ;;  %v7483_v51 = vcombine.high %v787_v24, %v791_v46  ;;  %v794_v52 = vld [vmem:[%s11683_s28 + $0x790] sm:$0xff] }
 0x167   : > { %4075 = vmatprep.subr.bf16.mxu0 %v7425_v54  ;;  %4239 = vmatprep.subr.bf16.mxu1 %v7427_v56  ;;  %v798_v54 = vld [vmem:[%s11683_s28 + $0x7b0] sm:$0xff]  ;;  %v795_v56 = vld [vmem:[%s11683_s28 + $0x798] sm:$0xff] }
 0x168   : > { %v7489_v61 = vcombine.high %v794_v52, %v798_v54  ;;  %v7488_v2 = vcombine.low %v794_v52, %v798_v54  ;;  %v7490_v3 = vcombine.low %v795_v56, %v799_v58  ;;  %v850_v46 = vld [vmem:[%s11683_s28 + $0x950] sm:$0xff] }
 0x16a   : > { %4076 = vmatpush1.bf16.msra.mxu0 %v7424_v62  ;;  %4240 = vmatpush1.bf16.msra.mxu1 %v7426_v38  ;;  %v7491_v62 = vcombine.high %v795_v56, %v799_v58  ;;  %v802_v38 = vld [vmem:[%s11683_s28 + $0x7d0] sm:$0xff] }
 0x16b   : > { %4077 = vmatprep.subr.bf16.mxu0 %v7433_v63  ;;  %4241 = vmatprep.subr.bf16.mxu1 %v7435_v0  ;;  %v806_v63 = vld [vmem:[%s11683_s28 + $0x7f0] sm:$0xff]  ;;  %v803_v0 = vld [vmem:[%s11683_s28 + $0x7d8] sm:$0xff] }
 0x16c   : > { %v7497_v4 = vcombine.high %v802_v38, %v806_v63  ;;  %v7496_v10 = vcombine.low %v802_v38, %v806_v63  ;;  %v7498_v11 = vcombine.low %v803_v0, %v807_v1  ;;  %v858_v58 = vld [vmem:[%s11683_s28 + $0x990] sm:$0xff] }
 0x16e   : > { %4078 = vmatpush1.bf16.msra.mxu0 %v7432_v5  ;;  %4242 = vmatpush1.bf16.msra.mxu1 %v7434_v6  ;;  %v7499_v5 = vcombine.high %v803_v0, %v807_v1  ;;  %v810_v6 = vld [vmem:[%s11683_s28 + $0x810] sm:$0xff] }
 0x16f   : > { %4079 = vmatprep.subr.bf16.mxu0 %v7441_v7  ;;  %4243 = vmatprep.subr.bf16.mxu1 %v7443_v8  ;;  %v814_v7 = vld [vmem:[%s11683_s28 + $0x830] sm:$0xff]  ;;  %v811_v8 = vld [vmem:[%s11683_s28 + $0x818] sm:$0xff] }
 0x170   : > { %v7505_v13 = vcombine.high %v810_v6, %v814_v7  ;;  %v7504_v53 = vcombine.low %v810_v6, %v814_v7  ;;  %v7506_v19 = vcombine.low %v811_v8, %v815_v9  ;;  %v866_v1 = vld [vmem:[%s11683_s28 + $0x9d0] sm:$0xff] }
 0x172   : > { %4080 = vmatpush1.bf16.msra.mxu0 %v7440_v14  ;;  %4244 = vmatpush1.bf16.msra.mxu1 %v7442_v16  ;;  %v7507_v14 = vcombine.high %v811_v8, %v815_v9  ;;  %v818_v16 = vld [vmem:[%s11683_s28 + $0x850] sm:$0xff] }
 0x173   : > { %4081 = vmatprep.subr.bf16.mxu0 %v7449_v17  ;;  %4245 = vmatprep.subr.bf16.mxu1 %v7451_v57  ;;  %v822_v17 = vld [vmem:[%s11683_s28 + $0x870] sm:$0xff]  ;;  %v819_v57 = vld [vmem:[%s11683_s28 + $0x858] sm:$0xff] }
 0x174   : > { %v7513_v20 = vcombine.high %v818_v16, %v822_v17  ;;  %v7512_v28 = vcombine.low %v818_v16, %v822_v17  ;;  %v7514_v29 = vcombine.low %v819_v57, %v823_v18  ;;  %v874_v9 = vld [vmem:[%s11683_s28 + $0xa10] sm:$0xff] }
 0x176   : > { %4082 = vmatpush1.bf16.msra.mxu0 %v7448_v21  ;;  %4246 = vmatpush1.bf16.msra.mxu1 %v7450_v12  ;;  %v7515_v21 = vcombine.high %v819_v57, %v823_v18  ;;  %v826_v12 = vld [vmem:[%s11683_s28 + $0x890] sm:$0xff] }
 0x177   : > { %4083 = vmatprep.subr.bf16.mxu0 %v7457_v22  ;;  %4247 = vmatprep.subr.bf16.mxu1 %v7459_v26  ;;  %v830_v22 = vld [vmem:[%s11683_s28 + $0x8b0] sm:$0xff]  ;;  %v827_v26 = vld [vmem:[%s11683_s28 + $0x898] sm:$0xff] }
 0x178   : > { %v7521_v30 = vcombine.high %v826_v12, %v830_v22  ;;  %v7520_v34 = vcombine.low %v826_v12, %v830_v22  ;;  %v7522_v35 = vcombine.low %v827_v26, %v831_v27  ;;  %v882_v18 = vld [vmem:[%s11683_s28 + $0xa50] sm:$0xff] }
 0x17a   : > { %4084 = vmatpush1.bf16.msra.mxu0 %v7456_v31  ;;  %4248 = vmatpush1.bf16.msra.mxu1 %v7458_v23  ;;  %v7523_v31 = vcombine.high %v827_v26, %v831_v27  ;;  %v834_v23 = vld [vmem:[%s11683_s28 + $0x8d0] sm:$0xff] }
 0x17b   : > { %4085 = vmatprep.subr.bf16.mxu0 %v7465_v15  ;;  %4249 = vmatprep.subr.bf16.mxu1 %v7467_v32  ;;  %v838_v15 = vld [vmem:[%s11683_s28 + $0x8f0] sm:$0xff]  ;;  %v839_v32 = vld [vmem:[%s11683_s28 + $0x8f8] sm:$0xff] }
 0x17c   : > { %v7529_v36 = vcombine.high %v834_v23, %v838_v15  ;;  %v890_v27 = vld [vmem:[%s11683_s28 + $0xa90] sm:$0xff] }
 0x17e   : > { %4086 = vmatpush1.bf16.msra.mxu0 %v7464_v40  ;;  %4250 = vmatpush1.bf16.msra.mxu1 %v7466_v41  ;;  %v842_v40 = vld [vmem:[%s11683_s28 + $0x910] sm:$0xff] }
 0x17f   : > { %4087 = vmatprep.subr.bf16.mxu0 %v7473_v42  ;;  %4251 = vmatprep.subr.bf16.mxu1 %v7475_v43  ;;  %v846_v41 = vld [vmem:[%s11683_s28 + $0x930] sm:$0xff]  ;;  %v847_v42 = vld [vmem:[%s11683_s28 + $0x938] sm:$0xff]  ;;  %v7528_v43 = vcombine.low %v834_v23, %v838_v15 }
 0x180   : > { %v7537_v45 = vcombine.high %v842_v40, %v846_v41 }
 0x182   : > { %4088 = vmatpush1.bf16.msra.mxu0 %v7472_v48  ;;  %4252 = vmatpush1.bf16.msra.mxu1 %v7474_v49  ;;  %v854_v48 = vld [vmem:[%s11683_s28 + $0x970] sm:$0xff]  ;;  %v851_v49 = vld [vmem:[%s11683_s28 + $0x958] sm:$0xff] }
 0x183   : > { %4089 = vmatprep.subr.bf16.mxu0 %v7481_v50  ;;  %4253 = vmatprep.subr.bf16.mxu1 %v7483_v51  ;;  %v855_v50 = vld [vmem:[%s11683_s28 + $0x978] sm:$0xff]  ;;  %v7536_v51 = vcombine.low %v842_v40, %v846_v41  ;;  %v7545_v54 = vcombine.high %v850_v46, %v854_v48 }
 0x184   : > { %v7547_v56 = vcombine.high %v851_v49, %v855_v50  ;;  %v7546_v38 = vcombine.low %v851_v49, %v855_v50  ;;  %v914_v50 = vld [vmem:[%s11683_s28 + $0xb50] sm:$0xff] }
 0x186   : > { %4090 = vmatpush1.bf16.msra.mxu0 %v7480_v59  ;;  %4254 = vmatpush1.bf16.msra.mxu1 %v7482_v60  ;;  %v862_v59 = vld [vmem:[%s11683_s28 + $0x9b0] sm:$0xff]  ;;  %v859_v60 = vld [vmem:[%s11683_s28 + $0x998] sm:$0xff] }
 0x187   : > { %4091 = vmatprep.subr.bf16.mxu0 %v7489_v61  ;;  %4255 = vmatprep.subr.bf16.mxu1 %v7491_v62  ;;  %v863_v61 = vld [vmem:[%s11683_s28 + $0x9b8] sm:$0xff]  ;;  %v7544_v62 = vcombine.low %v850_v46, %v854_v48  ;;  %v7553_v63 = vcombine.high %v858_v58, %v862_v59 }
 0x188   : > { %v7555_v0 = vcombine.high %v859_v60, %v863_v61  ;;  %v7554_v6 = vcombine.low %v859_v60, %v863_v61  ;;  %v922_v61 = vld [vmem:[%s11683_s28 + $0xb90] sm:$0xff] }
 0x18a   : > { %4092 = vmatpush1.bf16.msra.mxu0 %v7488_v2  ;;  %4256 = vmatpush1.bf16.msra.mxu1 %v7490_v3  ;;  %v870_v2 = vld [vmem:[%s11683_s28 + $0x9f0] sm:$0xff]  ;;  %v867_v3 = vld [vmem:[%s11683_s28 + $0x9d8] sm:$0xff] }
 0x18b   : > { %4093 = vmatprep.subr.bf16.mxu0 %v7497_v4  ;;  %4257 = vmatprep.subr.bf16.mxu1 %v7499_v5  ;;  %v871_v4 = vld [vmem:[%s11683_s28 + $0x9f8] sm:$0xff]  ;;  %v7552_v5 = vcombine.low %v858_v58, %v862_v59  ;;  %v7561_v7 = vcombine.high %v866_v1, %v870_v2 }
 0x18c   : > { %v7563_v8 = vcombine.high %v867_v3, %v871_v4  ;;  %v7562_v16 = vcombine.low %v867_v3, %v871_v4  ;;  %v930_v4 = vld [vmem:[%s11683_s28 + $0xbd0] sm:$0xff] }
 0x18e   : > { %4094 = vmatpush1.bf16.msra.mxu0 %v7496_v10  ;;  %4258 = vmatpush1.bf16.msra.mxu1 %v7498_v11  ;;  %v878_v10 = vld [vmem:[%s11683_s28 + $0xa30] sm:$0xff]  ;;  %v875_v11 = vld [vmem:[%s11683_s28 + $0xa18] sm:$0xff] }
 0x18f   : > { %4104 = vmatprep.subr.bf16.mxu0 %v7505_v13  ;;  %4268 = vmatprep.subr.bf16.mxu1 %v7507_v14  ;;  %v879_v13 = vld [vmem:[%s11683_s28 + $0xa38] sm:$0xff]  ;;  %v7560_v14 = vcombine.low %v866_v1, %v870_v2  ;;  %v7569_v17 = vcombine.high %v874_v9, %v878_v10 }
 0x190   : > { %v7571_v57 = vcombine.high %v875_v11, %v879_v13  ;;  %v7570_v12 = vcombine.low %v875_v11, %v879_v13  ;;  %v938_v13 = vld [vmem:[%s11683_s28 + $0xc10] sm:$0xff] }
 0x191   : > { %4096 = vmatmul.mubr.bf16.vlgmr.msra.gmra.mrb[4].mxu0 %v9332_v25  ;;  %4260 = vmatmul.mubr.bf16.vlgmr.msra.gmra.mrb[4].mxu1 %v9332_v25  ;;  %v835_v25 = vld [vmem:[%s11683_s28 + $0x8d8] sm:$0xff] }
 0x192   : > { %4105 = vmatpush1.bf16.msra.mxu0 %v7504_v53  ;;  %4269 = vmatpush1.bf16.msra.mxu1 %v7506_v19  ;;  %v7531_v37 = vcombine.high %v835_v25, %v839_v32  ;;  %v7530_v44 = vcombine.low %v835_v25, %v839_v32  ;;  %v886_v53 = vld [vmem:[%s11683_s28 + $0xa70] sm:$0xff]  ;;  %v883_v19 = vld [vmem:[%s11683_s28 + $0xa58] sm:$0xff] }
 0x193   : > { %4106 = vmatprep.subr.bf16.mxu0 %v7513_v20  ;;  %4270 = vmatprep.subr.bf16.mxu1 %v7515_v21  ;;  %v887_v20 = vld [vmem:[%s11683_s28 + $0xa78] sm:$0xff]  ;;  %v7568_v21 = vcombine.low %v874_v9, %v878_v10  ;;  %v7577_v22 = vcombine.high %v882_v18, %v886_v53  ;;  %v898_v32 = vld [vmem:[%s11683_s28 + $0xad0] sm:$0xff] }
 0x194   : > { %4136 = vmatprep.mubr.bf16.mxu0 %v9348_v33  ;;  %4300 = vmatprep.mubr.bf16.mxu1 %v9348_v33  ;;  %v843_v33 = vld [vmem:[%s11683_s28 + $0x918] sm:$0xff]  ;;  %v7579_v26 = vcombine.high %v883_v19, %v887_v20  ;;  %v7578_v23 = vcombine.low %v883_v19, %v887_v20  ;;  %v946_v20 = vld [vmem:[%s11683_s28 + $0xc50] sm:$0xff] }
 0x195   : > { %v7539_v24 = vcombine.high %v843_v33, %v847_v42  ;;  %v7538_v52 = vcombine.low %v843_v33, %v847_v42  ;;  %v906_v42 = vld [vmem:[%s11683_s28 + $0xb10] sm:$0xff] }
 0x196   : > { %4107 = vmatpush1.bf16.msra.mxu0 %v7512_v28  ;;  %4271 = vmatpush1.bf16.msra.mxu1 %v7514_v29  ;;  %v894_v28 = vld [vmem:[%s11683_s28 + $0xab0] sm:$0xff]  ;;  %v891_v29 = vld [vmem:[%s11683_s28 + $0xa98] sm:$0xff] }
 0x197   : > { %4108 = vmatprep.subr.bf16.mxu0 %v7521_v30  ;;  %4272 = vmatprep.subr.bf16.mxu1 %v7523_v31  ;;  %v895_v30 = vld [vmem:[%s11683_s28 + $0xab8] sm:$0xff]  ;;  %v7576_v31 = vcombine.low %v882_v18, %v886_v53  ;;  %v7585_v15 = vcombine.high %v890_v27, %v894_v28 }
 0x198   : > { %v7587_v25 = vcombine.high %v891_v29, %v895_v30  ;;  %v7586_v40 = vcombine.low %v891_v29, %v895_v30  ;;  %v954_v30 = vld [vmem:[%s11683_s28 + $0xc90] sm:$0xff] }
 0x19a   : > { %4109 = vmatpush1.bf16.msra.mxu0 %v7520_v34  ;;  %4273 = vmatpush1.bf16.msra.mxu1 %v7522_v35  ;;  %v902_v34 = vld [vmem:[%s11683_s28 + $0xaf0] sm:$0xff]  ;;  %v899_v35 = vld [vmem:[%s11683_s28 + $0xad8] sm:$0xff] }
 0x19b   : > { %4110 = vmatprep.subr.bf16.mxu0 %v7529_v36  ;;  %4274 = vmatprep.subr.bf16.mxu1 %v7531_v37  ;;  %v903_v36 = vld [vmem:[%s11683_s28 + $0xaf8] sm:$0xff]  ;;  %v7584_v37 = vcombine.low %v890_v27, %v894_v28  ;;  %v7593_v41 = vcombine.high %v898_v32, %v902_v34 }
 0x19c   : > { %v7595_v33 = vcombine.high %v899_v35, %v903_v36  ;;  %v7594_v46 = vcombine.low %v899_v35, %v903_v36  ;;  %v962_v36 = vld [vmem:[%s11683_s28 + $0xcd0] sm:$0xff] }
 0x19e   : > { %4111 = vmatpush1.bf16.msra.mxu0 %v7528_v43  ;;  %4275 = vmatpush1.bf16.msra.mxu1 %v7530_v44  ;;  %v910_v43 = vld [vmem:[%s11683_s28 + $0xb30] sm:$0xff]  ;;  %v907_v44 = vld [vmem:[%s11683_s28 + $0xb18] sm:$0xff] }
 0x19f   : > { %4112 = vmatprep.subr.bf16.mxu0 %v7537_v45  ;;  %4276 = vmatprep.subr.bf16.mxu1 %v7539_v24  ;;  %v911_v45 = vld [vmem:[%s11683_s28 + $0xb38] sm:$0xff]  ;;  %v7592_v24 = vcombine.low %v898_v32, %v902_v34  ;;  %v7601_v48 = vcombine.high %v906_v42, %v910_v43 }
 0x1a0   : > { %v7603_v49 = vcombine.high %v907_v44, %v911_v45  ;;  %v7602_v58 = vcombine.low %v907_v44, %v911_v45  ;;  %v970_v44 = vld [vmem:[%s11683_s28 + $0xd10] sm:$0xff] }
 0x1a1   : > { %v974_v45 = vld [vmem:[%s11683_s28 + $0xd30] sm:$0xff] }
 0x1a2   : > { %4113 = vmatpush1.bf16.msra.mxu0 %v7536_v51  ;;  %4277 = vmatpush1.bf16.msra.mxu1 %v7538_v52  ;;  %v918_v51 = vld [vmem:[%s11683_s28 + $0xb70] sm:$0xff]  ;;  %v915_v52 = vld [vmem:[%s11683_s28 + $0xb58] sm:$0xff] }
 0x1a3   : > { %4114 = vmatprep.subr.bf16.mxu0 %v7545_v54  ;;  %4278 = vmatprep.subr.bf16.mxu1 %v7547_v56  ;;  %v919_v54 = vld [vmem:[%s11683_s28 + $0xb78] sm:$0xff]  ;;  %v7600_v56 = vcombine.low %v906_v42, %v910_v43  ;;  %v7609_v59 = vcombine.high %v914_v50, %v918_v51 }
 0x1a4   : > { %v7611_v60 = vcombine.high %v915_v52, %v919_v54  ;;  %v7610_v1 = vcombine.low %v915_v52, %v919_v54  ;;  %v982_v52 = vld [vmem:[%s11683_s28 + $0xd70] sm:$0xff]  ;;  %v979_v54 = vld [vmem:[%s11683_s28 + $0xd58] sm:$0xff] }
 0x1a6   : > { %4115 = vmatpush1.bf16.msra.mxu0 %v7544_v62  ;;  %4279 = vmatpush1.bf16.msra.mxu1 %v7546_v38  ;;  %v926_v62 = vld [vmem:[%s11683_s28 + $0xbb0] sm:$0xff]  ;;  %v923_v38 = vld [vmem:[%s11683_s28 + $0xb98] sm:$0xff] }
 0x1a7   : > { %4116 = vmatprep.subr.bf16.mxu0 %v7553_v63  ;;  %4280 = vmatprep.subr.bf16.mxu1 %v7555_v0  ;;  %v927_v63 = vld [vmem:[%s11683_s28 + $0xbb8] sm:$0xff]  ;;  %v7608_v0 = vcombine.low %v914_v50, %v918_v51  ;;  %v7617_v2 = vcombine.high %v922_v61, %v926_v62  ;;  %v978_v51 = vld [vmem:[%s11683_s28 + $0xd50] sm:$0xff] }
 0x1a8   : > { %v7619_v3 = vcombine.high %v923_v38, %v927_v63  ;;  %v7618_v9 = vcombine.low %v923_v38, %v927_v63  ;;  %v990_v38 = vld [vmem:[%s11683_s28 + $0xdb0] sm:$0xff]  ;;  %v987_v63 = vld [vmem:[%s11683_s28 + $0xd98] sm:$0xff] }
 0x1aa   : > { %4117 = vmatpush1.bf16.msra.mxu0 %v7552_v5  ;;  %4281 = vmatpush1.bf16.msra.mxu1 %v7554_v6  ;;  %v934_v5 = vld [vmem:[%s11683_s28 + $0xbf0] sm:$0xff]  ;;  %v931_v6 = vld [vmem:[%s11683_s28 + $0xbd8] sm:$0xff] }
 0x1ab   : > { %4118 = vmatprep.subr.bf16.mxu0 %v7561_v7  ;;  %4282 = vmatprep.subr.bf16.mxu1 %v7563_v8  ;;  %v935_v7 = vld [vmem:[%s11683_s28 + $0xbf8] sm:$0xff]  ;;  %v7616_v8 = vcombine.low %v922_v61, %v926_v62  ;;  %v7625_v10 = vcombine.high %v930_v4, %v934_v5  ;;  %v986_v62 = vld [vmem:[%s11683_s28 + $0xd90] sm:$0xff] }
 0x1ac   : > { %v7627_v11 = vcombine.high %v931_v6, %v935_v7  ;;  %v7626_v18 = vcombine.low %v931_v6, %v935_v7  ;;  %v994_v6 = vld [vmem:[%s11683_s28 + $0xdd0] sm:$0xff] }
 0x1ad   : > { %v998_v7 = vld [vmem:[%s11683_s28 + $0xdf0] sm:$0xff] }
 0x1ae   : > { %4119 = vmatpush1.bf16.msra.mxu0 %v7560_v14  ;;  %4283 = vmatpush1.bf16.msra.mxu1 %v7562_v16  ;;  %v942_v14 = vld [vmem:[%s11683_s28 + $0xc30] sm:$0xff]  ;;  %v939_v16 = vld [vmem:[%s11683_s28 + $0xc18] sm:$0xff] }
 0x1af   : > { %4120 = vmatprep.subr.bf16.mxu0 %v7569_v17  ;;  %4284 = vmatprep.subr.bf16.mxu1 %v7571_v57  ;;  %v943_v17 = vld [vmem:[%s11683_s28 + $0xc38] sm:$0xff]  ;;  %v7624_v57 = vcombine.low %v930_v4, %v934_v5  ;;  %v7633_v53 = vcombine.high %v938_v13, %v942_v14 }
 0x1b0   : > { %v7635_v19 = vcombine.high %v939_v16, %v943_v17  ;;  %v7634_v27 = vcombine.low %v939_v16, %v943_v17  ;;  %v7680_v16 = vcombine.low %v986_v62, %v990_v38 }
 0x1b2   : > { %4121 = vmatpush1.bf16.msra.mxu0 %v7568_v21  ;;  %4285 = vmatpush1.bf16.msra.mxu1 %v7570_v12  ;;  %v950_v21 = vld [vmem:[%s11683_s28 + $0xc70] sm:$0xff]  ;;  %v947_v12 = vld [vmem:[%s11683_s28 + $0xc58] sm:$0xff] }
 0x1b3   : > { %4122 = vmatprep.subr.bf16.mxu0 %v7577_v22  ;;  %4286 = vmatprep.subr.bf16.mxu1 %v7579_v26  ;;  %v951_v22 = vld [vmem:[%s11683_s28 + $0xc78] sm:$0xff]  ;;  %v7632_v26 = vcombine.low %v938_v13, %v942_v14  ;;  %v7641_v28 = vcombine.high %v946_v20, %v950_v21 }
 0x1b4   : > { %v7643_v29 = vcombine.high %v947_v12, %v951_v22  ;;  %v7642_v32 = vcombine.low %v947_v12, %v951_v22  ;;  %v1003_v22 = vld [vmem:[%s11683_s28 + $0xe18] sm:$0xff] }
 0x1b6   : > { %4123 = vmatpush1.bf16.msra.mxu0 %v7576_v31  ;;  %4287 = vmatpush1.bf16.msra.mxu1 %v7578_v23  ;;  %v958_v31 = vld [vmem:[%s11683_s28 + $0xcb0] sm:$0xff]  ;;  %v955_v23 = vld [vmem:[%s11683_s28 + $0xc98] sm:$0xff] }
 0x1b7   : > { %4124 = vmatprep.subr.bf16.mxu0 %v7585_v15  ;;  %4288 = vmatprep.subr.bf16.mxu1 %v7587_v25  ;;  %v959_v15 = vld [vmem:[%s11683_s28 + $0xcb8] sm:$0xff]  ;;  %v7640_v25 = vcombine.low %v946_v20, %v950_v21  ;;  %v7649_v34 = vcombine.high %v954_v30, %v958_v31  ;;  %v1002_v20 = vld [vmem:[%s11683_s28 + $0xe10] sm:$0xff] }
 0x1b8   : > { %v7651_v35 = vcombine.high %v955_v23, %v959_v15  ;;  %v1006_v21 = vld [vmem:[%s11683_s28 + $0xe30] sm:$0xff] }
 0x1ba   : > { %4125 = vmatpush1.bf16.msra.mxu0 %v7584_v37  ;;  %4289 = vmatpush1.bf16.msra.mxu1 %v7586_v40  ;;  %v966_v37 = vld [vmem:[%s11683_s28 + $0xcf0] sm:$0xff]  ;;  %v967_v40 = vld [vmem:[%s11683_s28 + $0xcf8] sm:$0xff] }
 0x1bb   : > { %4126 = vmatprep.subr.bf16.mxu0 %v7593_v41  ;;  %4290 = vmatprep.subr.bf16.mxu1 %v7595_v33  ;;  %v7648_v41 = vcombine.low %v954_v30, %v958_v31  ;;  %v7650_v33 = vcombine.low %v955_v23, %v959_v15  ;;  %v7657_v42 = vcombine.high %v962_v36, %v966_v37  ;;  %v1010_v31 = vld [vmem:[%s11683_s28 + $0xe50] sm:$0xff]  ;;  %v1011_v15 = vld [vmem:[%s11683_s28 + $0xe58] sm:$0xff] }
 0x1bc   : > { %v1014_v23 = vld [vmem:[%s11683_s28 + $0xe70] sm:$0xff] }
 0x1be   : > { %4127 = vmatpush1.bf16.msra.mxu0 %v7592_v24  ;;  %4291 = vmatpush1.bf16.msra.mxu1 %v7594_v46  ;;  %v975_v24 = vld [vmem:[%s11683_s28 + $0xd38] sm:$0xff]  ;;  %v7656_v46 = vcombine.low %v962_v36, %v966_v37  ;;  %v1018_v37 = vld [vmem:[%s11683_s28 + $0xe90] sm:$0xff] }
 0x1bf   : > { %4128 = vmatprep.subr.bf16.mxu0 %v7601_v48  ;;  %4292 = vmatprep.subr.bf16.mxu1 %v7603_v49  ;;  %v7665_v49 = vcombine.high %v970_v44, %v974_v45 }
 0x1c2   : > { %4129 = vmatpush1.bf16.msra.mxu0 %v7600_v56  ;;  %4293 = vmatpush1.bf16.msra.mxu1 %v7602_v58  ;;  %v983_v56 = vld [vmem:[%s11683_s28 + $0xd78] sm:$0xff]  ;;  %v7664_v58 = vcombine.low %v970_v44, %v974_v45  ;;  %v1026_v45 = vld [vmem:[%s11683_s28 + $0xed0] sm:$0xff] }
 0x1c3   : > { %4130 = vmatprep.subr.bf16.mxu0 %v7609_v59  ;;  %4294 = vmatprep.subr.bf16.mxu1 %v7611_v60  ;;  %v7673_v60 = vcombine.high %v978_v51, %v982_v52  ;;  %v7675_v61 = vcombine.high %v979_v54, %v983_v56 }
 0x1c6   : > { %4131 = vmatpush1.bf16.msra.mxu0 %v7608_v0  ;;  %4295 = vmatpush1.bf16.msra.mxu1 %v7610_v1  ;;  %v991_v0 = vld [vmem:[%s11683_s28 + $0xdb8] sm:$0xff]  ;;  %v7672_v1 = vcombine.low %v978_v51, %v982_v52 }
 0x1c7   : > { %4132 = vmatprep.subr.bf16.mxu0 %v7617_v2  ;;  %4296 = vmatprep.subr.bf16.mxu1 %v7619_v3  ;;  %v7674_v2 = vcombine.low %v979_v54, %v983_v56  ;;  %v7681_v3 = vcombine.high %v986_v62, %v990_v38  ;;  %v7683_v5 = vcombine.high %v987_v63, %v991_v0  ;;  %v1034_v54 = vld [vmem:[%s11683_s28 + $0xf10] sm:$0xff] }
 0x1c8   : > { %v1038_v56 = vld [vmem:[%s11683_s28 + $0xf30] sm:$0xff] }
 0x1c9   : > { %v7729_v38 = vcombine.high %v1034_v54, %v1038_v56 }
 0x1ca   : > { %4133 = vmatpush1.bf16.msra.mxu0 %v7616_v8  ;;  %4297 = vmatpush1.bf16.msra.mxu1 %v7618_v9 }
 0x1cb   : > { %4134 = vmatprep.subr.bf16.mxu0 %v7625_v10  ;;  %4298 = vmatprep.subr.bf16.mxu1 %v7627_v11  ;;  %v995_v10 = vld [vmem:[%s11683_s28 + $0xdd8] sm:$0xff] }
 0x1cc   : > { %v999_v11 = vld [vmem:[%s11683_s28 + $0xdf8] sm:$0xff] }
 0x1ce   : > { %4135 = vmatpush1.bf16.msra.mxu0 %v7624_v57  ;;  %4299 = vmatpush1.bf16.msra.mxu1 %v7626_v18  ;;  %v7682_v18 = vcombine.low %v987_v63, %v991_v0  ;;  %v1042_v0 = vld [vmem:[%s11683_s28 + $0xf50] sm:$0xff] }
 0x1cf   : > { %4145 = vmatprep.subr.bf16.mxu0 %v7633_v53  ;;  %4309 = vmatprep.subr.bf16.mxu1 %v7635_v19  ;;  %v7689_v53 = vcombine.high %v994_v6, %v998_v7  ;;  %v7691_v19 = vcombine.high %v995_v10, %v999_v11 }
 0x1d1   : > { %4137 = vmatmul.mubr.bf16.vlgmr.msra.gmra.mrb[4].mxu0 %v9539_v39  ;;  %4301 = vmatmul.mubr.bf16.vlgmr.msra.gmra.mrb[4].mxu1 %v9539_v39  ;;  %v963_v39 = vld [vmem:[%s11683_s28 + $0xcd8] sm:$0xff] }
 0x1d2   : > { %4146 = vmatpush1.bf16.msra.mxu0 %v7632_v26  ;;  %4310 = vmatpush1.bf16.msra.mxu1 %v7634_v27  ;;  %v7659_v43 = vcombine.high %v963_v39, %v967_v40  ;;  %v7658_v48 = vcombine.low %v963_v39, %v967_v40  ;;  %v1007_v26 = vld [vmem:[%s11683_s28 + $0xe38] sm:$0xff]  ;;  %v7688_v27 = vcombine.low %v994_v6, %v998_v7  ;;  %v1022_v39 = vld [vmem:[%s11683_s28 + $0xeb0] sm:$0xff]  ;;  %v10498_v7 = vld [vmem:[%s11662_s2] sm:$0xff] }
 0x1d3   : > { %4147 = vmatprep.subr.bf16.mxu0 %v7641_v28  ;;  %4311 = vmatprep.subr.bf16.mxu1 %v7643_v29  ;;  %v7690_v28 = vcombine.low %v995_v10, %v999_v11  ;;  %v7697_v29 = vcombine.high %v1002_v20, %v1006_v21  ;;  %v7699_v30 = vcombine.high %v1003_v22, %v1007_v26  ;;  %v1019_v40 = vld [vmem:[%s11683_s28 + $0xe98] sm:$0xff] }
 0x1d4   : > { %4177 = vmatprep.mubr.bf16.mxu0 %v9555_v47  ;;  %4341 = vmatprep.mubr.bf16.mxu1 %v9555_v47  ;;  %v971_v47 = vld [vmem:[%s11683_s28 + $0xd18] sm:$0xff]  ;;  %v7728_v6 = vcombine.low %v1034_v54, %v1038_v56  ;;  %v8290_v54 = vld [vmem:[%s11663_s3 + $0x80] ss:$16 sps:$4 sm:$0xff]  }
 0x1d5   : > { %v7667_v50 = vcombine.high %v971_v47, %v975_v24  ;;  %v7666_v59 = vcombine.low %v971_v47, %v975_v24  ;;  %v1030_v47 = vld [vmem:[%s11683_s28 + $0xef0] sm:$0xff]  ;;  %v1027_v24 = vld [vmem:[%s11683_s28 + $0xed8] sm:$0xff] }
 0x1d6   : > { %4148 = vmatpush1.bf16.msra.mxu0 %v7640_v25  ;;  %4312 = vmatpush1.bf16.msra.mxu1 %v7642_v32  ;;  %v1015_v25 = vld [vmem:[%s11683_s28 + $0xe78] sm:$0xff]  ;;  %v7696_v32 = vcombine.low %v1002_v20, %v1006_v21  ;;  %v7721_v51 = vcombine.high %v1026_v45, %v1030_v47 }
 0x1d7   : > { %4149 = vmatprep.subr.bf16.mxu0 %v7649_v34  ;;  %4313 = vmatprep.subr.bf16.mxu1 %v7651_v35  ;;  %v7698_v34 = vcombine.low %v1003_v22, %v1007_v26  ;;  %v7705_v35 = vcombine.high %v1010_v31, %v1014_v23  ;;  %v7707_v36 = vcombine.high %v1011_v15, %v1015_v25  ;;  %v1058_v22 = vld [vmem:[%s11683_s28 + $0xfd0] sm:$0xff]  ;;  %v8293_v56 = vld [vmem:[%s11663_s3 + $0x88] ss:$16 sps:$4 sm:$0xff]  }
 0x1d8   : > { %v1062_v26 = vld [vmem:[%s11683_s28 + $0xff0] sm:$0xff] }
 0x1da   : > { %4150 = vmatpush1.bf16.msra.mxu0 %v7648_v41  ;;  %4314 = vmatpush1.bf16.msra.mxu1 %v7650_v33  ;;  %v1023_v41 = vld [vmem:[%s11683_s28 + $0xeb8] sm:$0xff]  ;;  %v7704_v33 = vcombine.low %v1010_v31, %v1014_v23  ;;  %v7753_v23 = vcombine.high %v1058_v22, %v1062_v26 }
 0x1db   : > { %4151 = vmatprep.subr.bf16.mxu0 %v7657_v42  ;;  %4315 = vmatprep.subr.bf16.mxu1 %v7659_v43  ;;  %v7706_v42 = vcombine.low %v1011_v15, %v1015_v25  ;;  %v7713_v43 = vcombine.high %v1018_v37, %v1022_v39  ;;  %v7715_v44 = vcombine.high %v1019_v40, %v1023_v41 }
 0x1de   : > { %4152 = vmatpush1.bf16.msra.mxu0 %v7656_v46  ;;  %4316 = vmatpush1.bf16.msra.mxu1 %v7658_v48  ;;  %v1031_v46 = vld [vmem:[%s11683_s28 + $0xef8] sm:$0xff]  ;;  %v1066_v48 = vlaneseq }
 0x1df   : > { %4153 = vmatprep.subr.bf16.mxu0 %v7665_v49  ;;  %4317 = vmatprep.subr.bf16.mxu1 %v7667_v50  ;;  %v7712_v49 = vcombine.low %v1018_v37, %v1022_v39  ;;  %v7714_v50 = vcombine.low %v1019_v40, %v1023_v41  ;;  %v7723_v52 = vcombine.high %v1027_v24, %v1031_v46  ;;  %v8269_v39 = vld [vmem:[%s11663_s3 + $0x8] ss:$16 sps:$4 sm:$0xff]   ;;  %v8274_v40 = vld [vmem:[%s11663_s3 + $0x24] ss:$16 sps:$4 sm:$0xff]  }
 0x1e0   : > { %v7722_v62 = vcombine.low %v1027_v24, %v1031_v46  ;;  %v8286_v24 = vld [vmem:[%s11663_s3 + $0x64] ss:$16 sps:$4 sm:$0xff]   ;;  %v8289_v46 = vld [vmem:[%s11663_s3 + $0x6c] ss:$16 sps:$4 sm:$0xff]  }
 0x1e2   : > { %4154 = vmatpush1.bf16.msra.mxu0 %v7664_v58  ;;  %4318 = vmatpush1.bf16.msra.mxu1 %v7666_v59  ;;  %v1035_v58 = vld [vmem:[%s11683_s28 + $0xf18] sm:$0xff] }
 0x1e3   : > { %4155 = vmatprep.subr.bf16.mxu0 %v7673_v60  ;;  %4319 = vmatprep.subr.bf16.mxu1 %v7675_v61  ;;  %v1039_v59 = vld [vmem:[%s11683_s28 + $0xf38] sm:$0xff]  ;;  %v10478_v60 = vshrl.u32 %v1066_v48, 7  ;;  %v7720_v61 = vcombine.low %v1026_v45, %v1030_v47  ;;  %v8278_v45 = vld [vmem:[%s11663_s3 + $0x40] ss:$16 sps:$4 sm:$0xff]  }
 0x1e4   : > { %v10397_v4 = vpop.f32.mrb[0].mxu0  ;;  %v10405_v8 = vpop.f32.mrb[0].mxu1  ;;  %v7731_v63 = vcombine.high %v1035_v58, %v1039_v59  ;;  %v7730_v10 = vcombine.low %v1035_v58, %v1039_v59  ;;  %v8281_v47 = vld [vmem:[%s11663_s3 + $0x48] ss:$16 sps:$4 sm:$0xff]   ;;  %v8298_v58 = vld [vmem:[%s11663_s3 + $0xa4] ss:$16 sps:$4 sm:$0xff]  }
 0x1e5   : > { %v10407_v9 = vpop.f32.mrb[1].mxu0  ;;  %v10415_v13 = vpop.f32.mrb[1].mxu1  ;;  %v8301_v59 = vld [vmem:[%s11663_s3 + $0xac] ss:$16 sps:$4 sm:$0xff]  }
 0x1e6   : > { %v3855_v14 = vpop.f32.mrb[2].mxu0  ;;  %4156 = vmatpush1.bf16.msra.mxu0 %v7672_v1  ;;  %v4019_v17 = vpop.f32.mrb[2].mxu1  ;;  %4320 = vmatpush1.bf16.msra.mxu1 %v7674_v2  ;;  %v1046_v1 = vld [vmem:[%s11683_s28 + $0xf70] sm:$0xff]  ;;  %v1043_v2 = vld [vmem:[%s11683_s28 + $0xf58] sm:$0xff] }
 0x1e7   : > { %v3856_v57 = vpop.f32.mrb[3].mxu0  ;;  %4157 = vmatprep.subr.bf16.mxu0 %v7681_v3  ;;  %4321 = vmatprep.subr.bf16.mxu1 %v7683_v5  ;;  %v4020_v12 = vpop.f32.mrb[3].mxu1  ;;  %v1047_v3 = vld [vmem:[%s11683_s28 + $0xf78] sm:$0xff]  ;;  %v10493_v5 = vsub.s32 1, %v10478_v60  ;;  %v7737_v11 = vcombine.high %v1042_v0, %v1046_v1  ;;  %v1054_v17 = vld [vmem:[%s11683_s28 + $0xfb0] sm:$0xff] }
 0x1e8   : > { %v7739_v14 = vcombine.high %v1043_v2, %v1047_v3  ;;  %v1051_v57 = vld [vmem:[%s11683_s28 + $0xf98] sm:$0xff]  ;;  %v7738_v20 = vcombine.low %v1043_v2, %v1047_v3  ;;  %v8310_v2 = vld [vmem:[%s11663_s3 + $0xe4] ss:$16 sps:$4 sm:$0xff]  }
 0x1e9   : > { %v8313_v3 = vld [vmem:[%s11663_s3 + $0xec] ss:$16 sps:$4 sm:$0xff]  }
 0x1ea   : > { %4158 = vmatpush1.bf16.msra.mxu0 %v7680_v16  ;;  %4322 = vmatpush1.bf16.msra.mxu1 %v7682_v18  ;;  %v1050_v16 = vld [vmem:[%s11683_s28 + $0xf90] sm:$0xff]  ;;  %v1055_v18 = vld [vmem:[%s11683_s28 + $0xfb8] sm:$0xff] }
 0x1eb   : > { %4159 = vmatprep.subr.bf16.mxu0 %v7689_v53  ;;  %4323 = vmatprep.subr.bf16.mxu1 %v7691_v19  ;;  %v1073_v53 = vrot.slane %v10498_v7, %v10493_v5  ;;  %v7736_v19 = vcombine.low %v1042_v0, %v1046_v1  ;;  %v7745_v21 = vcombine.high %v1050_v16, %v1054_v17  ;;  %v8302_v0 = vld [vmem:[%s11663_s3 + $0xc0] ss:$16 sps:$4 sm:$0xff]   ;;  %v8305_v1 = vld [vmem:[%s11663_s3 + $0xc8] ss:$16 sps:$4 sm:$0xff]  }
 0x1ec   : > { %v7747_v12 = vcombine.high %v1051_v57, %v1055_v18  ;;  %v7746_v31 = vcombine.low %v1051_v57, %v1055_v18  ;;  %v8322_v57 = vld [vmem:[%s11663_s3 + $0x124] ss:$16 sps:$4 sm:$0xff]   ;;  %v8325_v18 = vld [vmem:[%s11663_s3 + $0x12c] ss:$16 sps:$4 sm:$0xff]  }
 0x1ee   : > { %4160 = vmatpush1.bf16.msra.mxu0 %v7688_v27  ;;  %4324 = vmatpush1.bf16.msra.mxu1 %v7690_v28  ;;  %v1059_v27 = vld [vmem:[%s11683_s28 + $0xfd8] sm:$0xff] }
 0x1ef   : > { %4161 = vmatprep.subr.bf16.mxu0 %v7697_v29  ;;  %4325 = vmatprep.subr.bf16.mxu1 %v7699_v30  ;;  %v1063_v28 = vld [vmem:[%s11683_s28 + $0xff8] sm:$0xff]  ;;  %v8159_v29 = vadd.f32 %v10407_v9, %v1073_v53  ;;  %v7744_v30 = vcombine.low %v1050_v16, %v1054_v17  ;;  %v8314_v16 = vld [vmem:[%s11663_s3 + $0x100] ss:$16 sps:$4 sm:$0xff]  }
 0x1f0   : > { %v7755_v15 = vcombine.high %v1059_v27, %v1063_v28  ;;  %v8271_v9 = vld [vmem:[%s11663_s3 + $0xc] ss:$16 sps:$4 sm:$0xff]   ;;  %v8317_v17 = vld [vmem:[%s11663_s3 + $0x108] ss:$16 sps:$4 sm:$0xff]   ;;  %v8320_v53 = vld [vmem:[%s11663_s3 + $0x120] ss:$16 sps:$4 sm:$0xff]  }
 0x1f1   : > { %v4359_v25 = vmul.f32 0.2, %v8159_v29  ;;  %vm4351_vm0 = vcmp.ge.f32.partialorder %v8159_v29, 0.0 }
 0x1f2   : > { %4162 = vmatpush1.bf16.msra.mxu0 %v7696_v32  ;;  %4326 = vmatpush1.bf16.msra.mxu1 %v7698_v34  ;;  %v7752_v32 = vcombine.low %v1058_v22, %v1062_v26  ;;  %v7754_v34 = vcombine.low %v1059_v27, %v1063_v28  ;;  %v8329_v22 = vld [vmem:[%s11663_s3 + $0x148] ss:$16 sps:$4 sm:$0xff]   ;;  %v8334_v26 = vld [vmem:[%s11663_s3 + $0x164] ss:$16 sps:$4 sm:$0xff]   ;;  %v8337_v27 = vld [vmem:[%s11663_s3 + $0x16c] ss:$16 sps:$4 sm:$0xff]  }
 0x1f3   : > { %4163 = vmatprep.subr.bf16.mxu0 %v7705_v35  ;;  %4327 = vmatprep.subr.bf16.mxu1 %v7707_v36  ;;  %v8268_v35 = vld [vmem:[%s11663_s3 + $0x4] ss:$16 sps:$4 sm:$0xff]   ;;  %v8266_v36 = vld [vmem:[%s11663_s3] ss:$16 sps:$4 sm:$0xff]   ;;  %v4367_v37 = vsel %vm4351_vm0, %v8159_v29, %v4359_v25  ;;  %v8335_v29 = vld [vmem:[%s11663_s3 + $0x168] ss:$16 sps:$4 sm:$0xff]  }
 0x1f4   : > { %v4375_v41 = vpack.c.bf16 %v4367_v37, %v4367_v37  ;;  %v8332_v28 = vld [vmem:[%s11663_s3 + $0x160] ss:$16 sps:$4 sm:$0xff]  }
 0x1f5   : > { %v8338_v25 = vld [vmem:[%s11663_s3 + $0x180] ss:$16 sps:$4 sm:$0xff]  }
 0x1f6   : > { %4164 = vmatpush1.bf16.msra.mxu0 %v7704_v33  ;;  %4328 = vmatpush1.bf16.msra.mxu1 %v7706_v42  ;;  %v8277_v33 = vld [vmem:[%s11663_s3 + $0x2c] ss:$16 sps:$4 sm:$0xff]   ;;  %v8272_v42 = vld [vmem:[%s11663_s3 + $0x20] ss:$16 sps:$4 sm:$0xff]  }
 0x1f7   : > { %4165 = vmatprep.subr.bf16.mxu0 %v7713_v43  ;;  %4329 = vmatprep.subr.bf16.mxu1 %v7715_v44  ;;  %v8275_v43 = vld [vmem:[%s11663_s3 + $0x28] ss:$16 sps:$4 sm:$0xff]   ;;  %v8280_v44 = vld [vmem:[%s11663_s3 + $0x44] ss:$16 sps:$4 sm:$0xff]   ;;  %v8344_v37 = vld [vmem:[%s11663_s3 + $0x1a0] ss:$16 sps:$4 sm:$0xff]  }
 0x1fa   : > { %4166 = vmatpush1.bf16.msra.mxu0 %v7712_v49  ;;  %4330 = vmatpush1.bf16.msra.mxu1 %v7714_v50  ;;  %v8284_v49 = vld [vmem:[%s11663_s3 + $0x60] ss:$16 sps:$4 sm:$0xff]   ;;  %v8287_v50 = vld [vmem:[%s11663_s3 + $0x68] ss:$16 sps:$4 sm:$0xff]  }
 0x1fb   : > { %4167 = vmatprep.subr.bf16.mxu0 %v7721_v51  ;;  %4331 = vmatprep.subr.bf16.mxu1 %v7723_v52  ;;  %v8292_v51 = vld [vmem:[%s11663_s3 + $0x84] ss:$16 sps:$4 sm:$0xff]   ;;  %v8295_v52 = vld [vmem:[%s11663_s3 + $0x8c] ss:$16 sps:$4 sm:$0xff]  }
 0x1fe   : > { %4168 = vmatpush1.bf16.msra.mxu0 %v7720_v61  ;;  %4332 = vmatpush1.bf16.msra.mxu1 %v7722_v62  ;;  %v8296_v61 = vld [vmem:[%s11663_s3 + $0xa0] ss:$16 sps:$4 sm:$0xff]   ;;  %v8299_v62 = vld [vmem:[%s11663_s3 + $0xa8] ss:$16 sps:$4 sm:$0xff]  }
 0x1ff   : > { %4169 = vmatprep.subr.bf16.mxu0 %v7729_v38  ;;  %4333 = vmatprep.subr.bf16.mxu1 %v7731_v63  ;;  %v8304_v38 = vld [vmem:[%s11663_s3 + $0xc4] ss:$16 sps:$4 sm:$0xff]   ;;  %v8307_v63 = vld [vmem:[%s11663_s3 + $0xcc] ss:$16 sps:$4 sm:$0xff]  }
 0x202   : > { %4170 = vmatpush1.bf16.msra.mxu0 %v7728_v6  ;;  %4334 = vmatpush1.bf16.msra.mxu1 %v7730_v10  ;;  %v8308_v6 = vld [vmem:[%s11663_s3 + $0xe0] ss:$16 sps:$4 sm:$0xff]   ;;  %v8311_v10 = vld [vmem:[%s11663_s3 + $0xe8] ss:$16 sps:$4 sm:$0xff]  }
 0x203   : > { %4171 = vmatprep.subr.bf16.mxu0 %v7737_v11  ;;  %4335 = vmatprep.subr.bf16.mxu1 %v7739_v14  ;;  %v8316_v11 = vld [vmem:[%s11663_s3 + $0x104] ss:$16 sps:$4 sm:$0xff]   ;;  %v8319_v14 = vld [vmem:[%s11663_s3 + $0x10c] ss:$16 sps:$4 sm:$0xff]  }
 0x206   : > { %4172 = vmatpush1.bf16.msra.mxu0 %v7736_v19  ;;  %4336 = vmatpush1.bf16.msra.mxu1 %v7738_v20  ;;  %v8323_v19 = vld [vmem:[%s11663_s3 + $0x128] ss:$16 sps:$4 sm:$0xff]   ;;  %v8328_v20 = vld [vmem:[%s11663_s3 + $0x144] ss:$16 sps:$4 sm:$0xff]  }
 0x207   : > { %4173 = vmatprep.subr.bf16.mxu0 %v7745_v21  ;;  %4337 = vmatprep.subr.bf16.mxu1 %v7747_v12  ;;  %v8331_v21 = vld [vmem:[%s11663_s3 + $0x14c] ss:$16 sps:$4 sm:$0xff]   ;;  %v8326_v12 = vld [vmem:[%s11663_s3 + $0x140] ss:$16 sps:$4 sm:$0xff]  }
 0x20a   : > { %4174 = vmatpush1.bf16.msra.mxu0 %v7744_v30  ;;  %4338 = vmatpush1.bf16.msra.mxu1 %v7746_v31  ;;  %v8340_v30 = vld [vmem:[%s11663_s3 + $0x184] ss:$16 sps:$4 sm:$0xff]   ;;  %v10677_v31 = vsub.s32 0, %v10478_v60 }
 0x20b   : > { %4175 = vmatprep.subr.bf16.mxu0 %v7753_v23  ;;  %4339 = vmatprep.subr.bf16.mxu1 %v7755_v15  ;;  %v8343_v23 = vld [vmem:[%s11663_s3 + $0x18c] ss:$16 sps:$4 sm:$0xff]   ;;  %v10683_v15 = vsub.s32 3, %v10478_v60 }
 0x20e   : > { %4176 = vmatpush1.bf16.msra.mxu0 %v7752_v32  ;;  %4340 = vmatpush1.bf16.msra.mxu1 %v7754_v34  ;;  %v8341_v32 = vld [vmem:[%s11663_s3 + $0x188] ss:$16 sps:$4 sm:$0xff]   ;;  %v8346_v34 = vld [vmem:[%s11663_s3 + $0x1a4] ss:$16 sps:$4 sm:$0xff]  }
 0x20f   : > { %5940 = vmatprep.subr.bf16.mxu0 %v8268_v35  ;;  %6104 = vmatprep.subr.bf16.mxu1 %v8271_v9  ;;  %v1069_v35 = vrot.slane %v10498_v7, %v10677_v31  ;;  %v8349_v9 = vld [vmem:[%s11663_s3 + $0x1ac] ss:$16 sps:$4 sm:$0xff]  }
 0x211   : > { %4178 = vmatmul.mubr.bf16.vlgmr.msra.gmra.mrb[4].mxu0 %v9737_v55  ;;  %4342 = vmatmul.mubr.bf16.vlgmr.msra.gmra.mrb[4].mxu1 %v9737_v55  ;;  %v8283_v55 = vld [vmem:[%s11663_s3 + $0x4c] ss:$16 sps:$4 sm:$0xff]  }
 0x212   : > { %5941 = vmatpush1.bf16.msra.mxu0 %v8266_v36  ;;  %5972 = vmatprep.mubr.bf16.mxu0 %v4375_v41  ;;  %v1081_v36 = vrot.slane %v10498_v7, %v10683_v15 }
 0x213   : > { %6105 = vmatpush1.bf16.msra.mxu1 %v8269_v39  ;;  %6136 = vmatprep.mubr.bf16.mxu1 %v4375_v41  ;;  %v8347_v39 = vld [vmem:[%s11663_s3 + $0x1a8] ss:$16 sps:$4 sm:$0xff]   ;;  %v8158_v41 = vadd.f32 %v10397_v4, %v1069_v35  ;;  %v8358_v4 = vld [vmem:[%s11663_s3 + $0x1e4] ss:$16 sps:$4 sm:$0xff]  }
 0x214   : > { %5942 = vmatprep.subr.bf16.mxu0 %v8274_v40  ;;  %6106 = vmatprep.subr.bf16.mxu1 %v8277_v33  ;;  %v8352_v40 = vld [vmem:[%s11663_s3 + $0x1c4] ss:$16 sps:$4 sm:$0xff]   ;;  %v8355_v33 = vld [vmem:[%s11663_s3 + $0x1cc] ss:$16 sps:$4 sm:$0xff]  }
 0x215   : > { %vm4350_vm1 = vcmp.ge.f32.partialorder %v8158_v41, 0.0  ;;  %v8418_v35 = vld [vmem:[%s11663_s3 + $0x324] ss:$16 sps:$4 sm:$0xff]  }
 0x216   : > { %5943 = vmatpush1.bf16.msra.mxu0 %v8272_v42  ;;  %v8161_v42 = vadd.f32 %v10415_v13, %v1081_v36  ;;  %v8361_v13 = vld [vmem:[%s11663_s3 + $0x1ec] ss:$16 sps:$4 sm:$0xff]   ;;  %v8416_v36 = vld [vmem:[%s11663_s3 + $0x320] ss:$16 sps:$4 sm:$0xff]  }
 0x217   : > { %6107 = vmatpush1.bf16.msra.mxu1 %v8275_v43  ;;  %5944 = vmatprep.subr.bf16.mxu0 %v8280_v44  ;;  %v8350_v43 = vld [vmem:[%s11663_s3 + $0x1c0] ss:$16 sps:$4 sm:$0xff]   ;;  %v8353_v44 = vld [vmem:[%s11663_s3 + $0x1c8] ss:$16 sps:$4 sm:$0xff]  }
 0x218   : > { %6108 = vmatprep.subr.bf16.mxu1 %v8283_v55  ;;  %v4358_v55 = vmul.f32 0.2, %v8158_v41  ;;  %vm4353_vm2 = vcmp.ge.f32.partialorder %v8161_v42, 0.0 }
 0x21a   : > { %5945 = vmatpush1.bf16.msra.mxu0 %v8278_v45  ;;  %v4361_v45 = vmul.f32 0.2, %v8161_v42 }
 0x21b   : > { %6109 = vmatpush1.bf16.msra.mxu1 %v8281_v47  ;;  %5946 = vmatprep.subr.bf16.mxu0 %v8286_v24  ;;  %v8356_v47 = vld [vmem:[%s11663_s3 + $0x1e0] ss:$16 sps:$4 sm:$0xff]   ;;  %v8359_v24 = vld [vmem:[%s11663_s3 + $0x1e8] ss:$16 sps:$4 sm:$0xff]  }
 0x21c   : > { %6110 = vmatprep.subr.bf16.mxu1 %v8289_v46  ;;  %v8364_v46 = vld [vmem:[%s11663_s3 + $0x204] ss:$16 sps:$4 sm:$0xff]  }
 0x21e   : > { %5947 = vmatpush1.bf16.msra.mxu0 %v8284_v49  ;;  %v4366_v49 = vsel %vm4350_vm1, %v8158_v41, %v4358_v55  ;;  %v8422_v41 = vld [vmem:[%s11663_s3 + $0x340] ss:$16 sps:$4 sm:$0xff]   ;;  %v8436_v55 = vld [vmem:[%s11663_s3 + $0x384] ss:$16 sps:$4 sm:$0xff]  }
 0x21f   : > { %6111 = vmatpush1.bf16.msra.mxu1 %v8287_v50  ;;  %5948 = vmatprep.subr.bf16.mxu0 %v8292_v51  ;;  %v8367_v50 = vld [vmem:[%s11663_s3 + $0x20c] ss:$16 sps:$4 sm:$0xff]   ;;  %v8362_v51 = vld [vmem:[%s11663_s3 + $0x200] ss:$16 sps:$4 sm:$0xff]  }
 0x220   : > { %6112 = vmatprep.subr.bf16.mxu1 %v8295_v52  ;;  %v4369_v52 = vsel %vm4353_vm2, %v8161_v42, %v4361_v45  ;;  %v8430_v42 = vld [vmem:[%s11663_s3 + $0x364] ss:$16 sps:$4 sm:$0xff]   ;;  %v8439_v45 = vld [vmem:[%s11663_s3 + $0x38c] ss:$16 sps:$4 sm:$0xff]  }
 0x222   : > { %5949 = vmatpush1.bf16.msra.mxu0 %v8290_v54  ;;  %v4374_v54 = vpack.c.bf16 %v4366_v49, %v4366_v49 }
 0x223   : > { %6113 = vmatpush1.bf16.msra.mxu1 %v8293_v56  ;;  %5950 = vmatprep.subr.bf16.mxu0 %v8298_v58  ;;  %v8365_v56 = vld [vmem:[%s11663_s3 + $0x208] ss:$16 sps:$4 sm:$0xff]   ;;  %v8370_v58 = vld [vmem:[%s11663_s3 + $0x224] ss:$16 sps:$4 sm:$0xff]  }
 0x224   : > { %6114 = vmatprep.subr.bf16.mxu1 %v8301_v59  ;;  %v4377_v59 = vpack.c.bf16 %v4369_v52, %v4369_v52  ;;  %v8443_v52 = vld [vmem:[%s11663_s3 + $0x3a8] ss:$16 sps:$4 sm:$0xff]  }
 0x226   : > { %5951 = vmatpush1.bf16.msra.mxu0 %v8296_v61  ;;  %v8373_v61 = vld [vmem:[%s11663_s3 + $0x22c] ss:$16 sps:$4 sm:$0xff]  }
 0x227   : > { %6115 = vmatpush1.bf16.msra.mxu1 %v8299_v62  ;;  %5952 = vmatprep.subr.bf16.mxu0 %v8304_v38  ;;  %v8368_v62 = vld [vmem:[%s11663_s3 + $0x220] ss:$16 sps:$4 sm:$0xff]   ;;  %v8371_v38 = vld [vmem:[%s11663_s3 + $0x228] ss:$16 sps:$4 sm:$0xff]  }
 0x228   : > { %6116 = vmatprep.subr.bf16.mxu1 %v8307_v63  ;;  %v8376_v63 = vld [vmem:[%s11663_s3 + $0x244] ss:$16 sps:$4 sm:$0xff]  }
 0x22a   : > { %5953 = vmatpush1.bf16.msra.mxu0 %v8302_v0  ;;  %v8379_v0 = vld [vmem:[%s11663_s3 + $0x24c] ss:$16 sps:$4 sm:$0xff]  }
 0x22b   : > { %6117 = vmatpush1.bf16.msra.mxu1 %v8305_v1  ;;  %5954 = vmatprep.subr.bf16.mxu0 %v8310_v2  ;;  %v8374_v1 = vld [vmem:[%s11663_s3 + $0x240] ss:$16 sps:$4 sm:$0xff]   ;;  %v8377_v2 = vld [vmem:[%s11663_s3 + $0x248] ss:$16 sps:$4 sm:$0xff]  }
 0x22c   : > { %6118 = vmatprep.subr.bf16.mxu1 %v8313_v3  ;;  %v8382_v3 = vld [vmem:[%s11663_s3 + $0x264] ss:$16 sps:$4 sm:$0xff]  }
 0x22e   : > { %5955 = vmatpush1.bf16.msra.mxu0 %v8308_v6  ;;  %v8385_v6 = vld [vmem:[%s11663_s3 + $0x26c] ss:$16 sps:$4 sm:$0xff]  }
 0x22f   : > { %6119 = vmatpush1.bf16.msra.mxu1 %v8311_v10  ;;  %5956 = vmatprep.subr.bf16.mxu0 %v8316_v11  ;;  %v8380_v10 = vld [vmem:[%s11663_s3 + $0x260] ss:$16 sps:$4 sm:$0xff]   ;;  %v8383_v11 = vld [vmem:[%s11663_s3 + $0x268] ss:$16 sps:$4 sm:$0xff]  }
 0x230   : > { %6120 = vmatprep.subr.bf16.mxu1 %v8319_v14  ;;  %v8388_v14 = vld [vmem:[%s11663_s3 + $0x284] ss:$16 sps:$4 sm:$0xff]  }
 0x232   : > { %5957 = vmatpush1.bf16.msra.mxu0 %v8314_v16  ;;  %v8391_v16 = vld [vmem:[%s11663_s3 + $0x28c] ss:$16 sps:$4 sm:$0xff]  }
 0x233   : > { %6121 = vmatpush1.bf16.msra.mxu1 %v8317_v17  ;;  %5958 = vmatprep.subr.bf16.mxu0 %v8322_v57  ;;  %v8386_v17 = vld [vmem:[%s11663_s3 + $0x280] ss:$16 sps:$4 sm:$0xff]   ;;  %v8389_v57 = vld [vmem:[%s11663_s3 + $0x288] ss:$16 sps:$4 sm:$0xff]  }
 0x234   : > { %6122 = vmatprep.subr.bf16.mxu1 %v8325_v18  ;;  %v8394_v18 = vld [vmem:[%s11663_s3 + $0x2a4] ss:$16 sps:$4 sm:$0xff]  }
 0x236   : > { %5959 = vmatpush1.bf16.msra.mxu0 %v8320_v53  ;;  %v8397_v53 = vld [vmem:[%s11663_s3 + $0x2ac] ss:$16 sps:$4 sm:$0xff]  }
 0x237   : > { %6123 = vmatpush1.bf16.msra.mxu1 %v8323_v19  ;;  %5960 = vmatprep.subr.bf16.mxu0 %v8328_v20  ;;  %v8392_v19 = vld [vmem:[%s11663_s3 + $0x2a0] ss:$16 sps:$4 sm:$0xff]   ;;  %v8395_v20 = vld [vmem:[%s11663_s3 + $0x2a8] ss:$16 sps:$4 sm:$0xff]  }
 0x238   : > { %6124 = vmatprep.subr.bf16.mxu1 %v8331_v21  ;;  %v8400_v21 = vld [vmem:[%s11663_s3 + $0x2c4] ss:$16 sps:$4 sm:$0xff]  }
 0x23a   : > { %5961 = vmatpush1.bf16.msra.mxu0 %v8326_v12  ;;  %v8403_v12 = vld [vmem:[%s11663_s3 + $0x2cc] ss:$16 sps:$4 sm:$0xff]  }
 0x23b   : > { %6125 = vmatpush1.bf16.msra.mxu1 %v8329_v22  ;;  %5962 = vmatprep.subr.bf16.mxu0 %v8334_v26  ;;  %v8398_v22 = vld [vmem:[%s11663_s3 + $0x2c0] ss:$16 sps:$4 sm:$0xff]   ;;  %v8401_v26 = vld [vmem:[%s11663_s3 + $0x2c8] ss:$16 sps:$4 sm:$0xff]  }
 0x23c   : > { %6126 = vmatprep.subr.bf16.mxu1 %v8337_v27  ;;  %v8406_v27 = vld [vmem:[%s11663_s3 + $0x2e4] ss:$16 sps:$4 sm:$0xff]  }
 0x23e   : > { %5963 = vmatpush1.bf16.msra.mxu0 %v8332_v28  ;;  %v8409_v28 = vld [vmem:[%s11663_s3 + $0x2ec] ss:$16 sps:$4 sm:$0xff]  }
 0x23f   : > { %6127 = vmatpush1.bf16.msra.mxu1 %v8335_v29  ;;  %5964 = vmatprep.subr.bf16.mxu0 %v8340_v30  ;;  %v8404_v29 = vld [vmem:[%s11663_s3 + $0x2e0] ss:$16 sps:$4 sm:$0xff]   ;;  %v8407_v30 = vld [vmem:[%s11663_s3 + $0x2e8] ss:$16 sps:$4 sm:$0xff]  }
 0x240   : > { %6128 = vmatprep.subr.bf16.mxu1 %v8343_v23  ;;  %v8412_v23 = vld [vmem:[%s11663_s3 + $0x304] ss:$16 sps:$4 sm:$0xff]  }
 0x242   : > { %5965 = vmatpush1.bf16.msra.mxu0 %v8338_v25  ;;  %v8415_v25 = vld [vmem:[%s11663_s3 + $0x30c] ss:$16 sps:$4 sm:$0xff]  }
 0x243   : > { %6129 = vmatpush1.bf16.msra.mxu1 %v8341_v32  ;;  %5966 = vmatprep.subr.bf16.mxu0 %v8346_v34  ;;  %v8410_v32 = vld [vmem:[%s11663_s3 + $0x300] ss:$16 sps:$4 sm:$0xff]   ;;  %v8413_v34 = vld [vmem:[%s11663_s3 + $0x308] ss:$16 sps:$4 sm:$0xff]  }
 0x244   : > { %6130 = vmatprep.subr.bf16.mxu1 %v8349_v9  ;;  %v8421_v9 = vld [vmem:[%s11663_s3 + $0x32c] ss:$16 sps:$4 sm:$0xff]  }
 0x246   : > { %5967 = vmatpush1.bf16.msra.mxu0 %v8344_v37  ;;  %v8419_v37 = vld [vmem:[%s11663_s3 + $0x328] ss:$16 sps:$4 sm:$0xff]  }
 0x247   : > { %6131 = vmatpush1.bf16.msra.mxu1 %v8347_v39  ;;  %5968 = vmatprep.subr.bf16.mxu0 %v8352_v40  ;;  %v8424_v39 = vld [vmem:[%s11663_s3 + $0x344] ss:$16 sps:$4 sm:$0xff]   ;;  %v8427_v40 = vld [vmem:[%s11663_s3 + $0x34c] ss:$16 sps:$4 sm:$0xff]  }
 0x248   : > { %6132 = vmatprep.subr.bf16.mxu1 %v8355_v33  ;;  %v8425_v33 = vld [vmem:[%s11663_s3 + $0x348] ss:$16 sps:$4 sm:$0xff]  }
 0x24a   : > { %5969 = vmatpush1.bf16.msra.mxu0 %v8350_v43  ;;  %v8433_v43 = vld [vmem:[%s11663_s3 + $0x36c] ss:$16 sps:$4 sm:$0xff]  }
 0x24b   : > { %6133 = vmatpush1.bf16.msra.mxu1 %v8353_v44  ;;  %5970 = vmatprep.subr.bf16.mxu0 %v8358_v4  ;;  %v8428_v44 = vld [vmem:[%s11663_s3 + $0x360] ss:$16 sps:$4 sm:$0xff]   ;;  %v8431_v4 = vld [vmem:[%s11663_s3 + $0x368] ss:$16 sps:$4 sm:$0xff]  }
 0x24c   : > { %6134 = vmatprep.subr.bf16.mxu1 %v8361_v13  ;;  %v10881_v13 = vsub.s32 2, %v10478_v60 }
 0x24e   : > { %5971 = vmatpush1.bf16.msra.mxu0 %v8356_v47  ;;  %v8434_v47 = vld [vmem:[%s11663_s3 + $0x380] ss:$16 sps:$4 sm:$0xff]   ;;  %v1077_v49 = vrot.slane %v10498_v7, %v10881_v13 }
 0x24f   : > { %6135 = vmatpush1.bf16.msra.mxu1 %v8359_v24  ;;  %5981 = vmatprep.subr.bf16.mxu0 %v8364_v46  ;;  %v8437_v24 = vld [vmem:[%s11663_s3 + $0x388] ss:$16 sps:$4 sm:$0xff]   ;;  %v8442_v46 = vld [vmem:[%s11663_s3 + $0x3a4] ss:$16 sps:$4 sm:$0xff]  }
 0x250   : > { %6145 = vmatprep.subr.bf16.mxu1 %v8367_v50  ;;  %v8445_v50 = vld [vmem:[%s11663_s3 + $0x3ac] ss:$16 sps:$4 sm:$0xff]  }
 0x251   : > { %5973 = vmatmul.mubr.bf16.vlgmr.msra.gmra.mrb[8].mxu0 %v4374_v54 }
 0x252   : > { %6137 = vmatmul.mubr.bf16.vlgmr.msra.gmra.mrb[8].mxu1 %v4374_v54  ;;  %5982 = vmatpush1.bf16.msra.mxu0 %v8362_v51  ;;  %v8440_v51 = vld [vmem:[%s11663_s3 + $0x3a0] ss:$16 sps:$4 sm:$0xff]   ;;  %v8448_v54 = vld [vmem:[%s11663_s3 + $0x3c4] ss:$16 sps:$4 sm:$0xff]  }
 0x253   : > { %6013 = vmatprep.mubr.bf16.mxu0 %v4377_v59  ;;  %6146 = vmatpush1.bf16.msra.mxu1 %v8365_v56  ;;  %v8160_v56 = vadd.f32 %v10405_v8, %v1077_v49  ;;  %v8454_v8 = vld [vmem:[%s11663_s3 + $0x3e4] ss:$16 sps:$4 sm:$0xff]   ;;  %v8523_v49 = vld [vmem:[%s11663_s3 + $0x54c] ss:$16 sps:$4 sm:$0xff]  }
 0x254   : > { %6177 = vmatprep.mubr.bf16.mxu1 %v4377_v59  ;;  %5983 = vmatprep.subr.bf16.mxu0 %v8370_v58  ;;  %v8451_v58 = vld [vmem:[%s11663_s3 + $0x3cc] ss:$16 sps:$4 sm:$0xff]   ;;  %v8446_v59 = vld [vmem:[%s11663_s3 + $0x3c0] ss:$16 sps:$4 sm:$0xff]  }
 0x255   : > { %6147 = vmatprep.subr.bf16.mxu1 %v8373_v61  ;;  %v8449_v61 = vld [vmem:[%s11663_s3 + $0x3c8] ss:$16 sps:$4 sm:$0xff]   ;;  %vm4352_vm3 = vcmp.ge.f32.partialorder %v8160_v56, 0.0 }
 0x256   : > { %5984 = vmatpush1.bf16.msra.mxu0 %v8368_v62  ;;  %v4360_v62 = vmul.f32 0.2, %v8160_v56 }
 0x257   : > { %6148 = vmatpush1.bf16.msra.mxu1 %v8371_v38  ;;  %5985 = vmatprep.subr.bf16.mxu0 %v8376_v63  ;;  %v8457_v38 = vld [vmem:[%s11663_s3 + $0x3ec] ss:$16 sps:$4 sm:$0xff]   ;;  %v8452_v63 = vld [vmem:[%s11663_s3 + $0x3e0] ss:$16 sps:$4 sm:$0xff]  }
 0x258   : > { %6149 = vmatprep.subr.bf16.mxu1 %v8379_v0  ;;  %v8455_v0 = vld [vmem:[%s11663_s3 + $0x3e8] ss:$16 sps:$4 sm:$0xff]  }
 0x25a   : > { %5986 = vmatpush1.bf16.msra.mxu0 %v8374_v1  ;;  %v8460_v1 = vld [vmem:[%s11663_s3 + $0x404] ss:$16 sps:$4 sm:$0xff]  }
 0x25b   : > { %6150 = vmatpush1.bf16.msra.mxu1 %v8377_v2  ;;  %5987 = vmatprep.subr.bf16.mxu0 %v8382_v3  ;;  %v4368_v2 = vsel %vm4352_vm3, %v8160_v56, %v4360_v62  ;;  %v8463_v3 = vld [vmem:[%s11663_s3 + $0x40c] ss:$16 sps:$4 sm:$0xff]   ;;  %v8524_v56 = vld [vmem:[%s11663_s3 + $0x560] ss:$16 sps:$4 sm:$0xff]   ;;  %v8533_v62 = vld [vmem:[%s11663_s3 + $0x588] ss:$16 sps:$4 sm:$0xff]  }
 0x25c   : > { %6151 = vmatprep.subr.bf16.mxu1 %v8385_v6  ;;  %v8458_v6 = vld [vmem:[%s11663_s3 + $0x400] ss:$16 sps:$4 sm:$0xff]  }
 0x25e   : > { %5988 = vmatpush1.bf16.msra.mxu0 %v8380_v10  ;;  %v4376_v10 = vpack.c.bf16 %v4368_v2, %v4368_v2  ;;  %v8544_v2 = vld [vmem:[%s11663_s3 + $0x5c4] ss:$16 sps:$4 sm:$0xff]  }
 0x25f   : > { %6152 = vmatpush1.bf16.msra.mxu1 %v8383_v11  ;;  %5989 = vmatprep.subr.bf16.mxu0 %v8388_v14  ;;  %v8461_v11 = vld [vmem:[%s11663_s3 + $0x408] ss:$16 sps:$4 sm:$0xff]   ;;  %v8466_v14 = vld [vmem:[%s11663_s3 + $0x424] ss:$16 sps:$4 sm:$0xff]  }
 0x260   : > { %6153 = vmatprep.subr.bf16.mxu1 %v8391_v16  ;;  %v8469_v16 = vld [vmem:[%s11663_s3 + $0x42c] ss:$16 sps:$4 sm:$0xff]  }
 0x262   : > { %5990 = vmatpush1.bf16.msra.mxu0 %v8386_v17  ;;  %v8464_v17 = vld [vmem:[%s11663_s3 + $0x420] ss:$16 sps:$4 sm:$0xff]  }
 0x263   : > { %6154 = vmatpush1.bf16.msra.mxu1 %v8389_v57  ;;  %5991 = vmatprep.subr.bf16.mxu0 %v8394_v18  ;;  %v8467_v57 = vld [vmem:[%s11663_s3 + $0x428] ss:$16 sps:$4 sm:$0xff]   ;;  %v8472_v18 = vld [vmem:[%s11663_s3 + $0x444] ss:$16 sps:$4 sm:$0xff]  }
 0x264   : > { %6155 = vmatprep.subr.bf16.mxu1 %v8397_v53  ;;  %v8475_v53 = vld [vmem:[%s11663_s3 + $0x44c] ss:$16 sps:$4 sm:$0xff]  }
 0x266   : > { %5992 = vmatpush1.bf16.msra.mxu0 %v8392_v19  ;;  %v8470_v19 = vld [vmem:[%s11663_s3 + $0x440] ss:$16 sps:$4 sm:$0xff]  }
 0x267   : > { %6156 = vmatpush1.bf16.msra.mxu1 %v8395_v20  ;;  %5993 = vmatprep.subr.bf16.mxu0 %v8400_v21  ;;  %v8473_v20 = vld [vmem:[%s11663_s3 + $0x448] ss:$16 sps:$4 sm:$0xff]   ;;  %v8478_v21 = vld [vmem:[%s11663_s3 + $0x464] ss:$16 sps:$4 sm:$0xff]  }
 0x268   : > { %6157 = vmatprep.subr.bf16.mxu1 %v8403_v12  ;;  %v8481_v12 = vld [vmem:[%s11663_s3 + $0x46c] ss:$16 sps:$4 sm:$0xff]  }
 0x26a   : > { %5994 = vmatpush1.bf16.msra.mxu0 %v8398_v22  ;;  %v8476_v22 = vld [vmem:[%s11663_s3 + $0x460] ss:$16 sps:$4 sm:$0xff]  }
 0x26b   : > { %6158 = vmatpush1.bf16.msra.mxu1 %v8401_v26  ;;  %5995 = vmatprep.subr.bf16.mxu0 %v8406_v27  ;;  %v8479_v26 = vld [vmem:[%s11663_s3 + $0x468] ss:$16 sps:$4 sm:$0xff]   ;;  %v8484_v27 = vld [vmem:[%s11663_s3 + $0x484] ss:$16 sps:$4 sm:$0xff]  }
 0x26c   : > { %6159 = vmatprep.subr.bf16.mxu1 %v8409_v28  ;;  %v8487_v28 = vld [vmem:[%s11663_s3 + $0x48c] ss:$16 sps:$4 sm:$0xff]  }
 0x26e   : > { %5996 = vmatpush1.bf16.msra.mxu0 %v8404_v29  ;;  %v8482_v29 = vld [vmem:[%s11663_s3 + $0x480] ss:$16 sps:$4 sm:$0xff]  }
 0x26f   : > { %6160 = vmatpush1.bf16.msra.mxu1 %v8407_v30  ;;  %5997 = vmatprep.subr.bf16.mxu0 %v8412_v23  ;;  %v8485_v30 = vld [vmem:[%s11663_s3 + $0x488] ss:$16 sps:$4 sm:$0xff]   ;;  %v8490_v23 = vld [vmem:[%s11663_s3 + $0x4a4] ss:$16 sps:$4 sm:$0xff]  }
 0x270   : > { %6161 = vmatprep.subr.bf16.mxu1 %v8415_v25  ;;  %v8493_v25 = vld [vmem:[%s11663_s3 + $0x4ac] ss:$16 sps:$4 sm:$0xff]  }
 0x272   : > { %5998 = vmatpush1.bf16.msra.mxu0 %v8410_v32  ;;  %v8488_v32 = vld [vmem:[%s11663_s3 + $0x4a0] ss:$16 sps:$4 sm:$0xff]  }
 0x273   : > { %6162 = vmatpush1.bf16.msra.mxu1 %v8413_v34  ;;  %5999 = vmatprep.subr.bf16.mxu0 %v8418_v35  ;;  %v8491_v34 = vld [vmem:[%s11663_s3 + $0x4a8] ss:$16 sps:$4 sm:$0xff]   ;;  %v8496_v35 = vld [vmem:[%s11663_s3 + $0x4c4] ss:$16 sps:$4 sm:$0xff]  }
 0x274   : > { %6163 = vmatprep.subr.bf16.mxu1 %v8421_v9  ;;  %v8499_v9 = vld [vmem:[%s11663_s3 + $0x4cc] ss:$16 sps:$4 sm:$0xff]  }
 0x276   : > { %6000 = vmatpush1.bf16.msra.mxu0 %v8416_v36  ;;  %v8494_v36 = vld [vmem:[%s11663_s3 + $0x4c0] ss:$16 sps:$4 sm:$0xff]  }
 0x277   : > { %6164 = vmatpush1.bf16.msra.mxu1 %v8419_v37  ;;  %6001 = vmatprep.subr.bf16.mxu0 %v8424_v39  ;;  %v8497_v37 = vld [vmem:[%s11663_s3 + $0x4c8] ss:$16 sps:$4 sm:$0xff]   ;;  %v8502_v39 = vld [vmem:[%s11663_s3 + $0x4e4] ss:$16 sps:$4 sm:$0xff]  }
 0x278   : > { %6165 = vmatprep.subr.bf16.mxu1 %v8427_v40  ;;  %v8505_v40 = vld [vmem:[%s11663_s3 + $0x4ec] ss:$16 sps:$4 sm:$0xff]  }
 0x27a   : > { %6002 = vmatpush1.bf16.msra.mxu0 %v8422_v41  ;;  %v8500_v41 = vld [vmem:[%s11663_s3 + $0x4e0] ss:$16 sps:$4 sm:$0xff]  }
 0x27b   : > { %6166 = vmatpush1.bf16.msra.mxu1 %v8425_v33  ;;  %6003 = vmatprep.subr.bf16.mxu0 %v8430_v42  ;;  %v8503_v33 = vld [vmem:[%s11663_s3 + $0x4e8] ss:$16 sps:$4 sm:$0xff]   ;;  %v8508_v42 = vld [vmem:[%s11663_s3 + $0x504] ss:$16 sps:$4 sm:$0xff]  }
 0x27c   : > { %6167 = vmatprep.subr.bf16.mxu1 %v8433_v43  ;;  %v8511_v43 = vld [vmem:[%s11663_s3 + $0x50c] ss:$16 sps:$4 sm:$0xff]  }
 0x27e   : > { %6004 = vmatpush1.bf16.msra.mxu0 %v8428_v44  ;;  %v8506_v44 = vld [vmem:[%s11663_s3 + $0x500] ss:$16 sps:$4 sm:$0xff]  }
 0x27f   : > { %6168 = vmatpush1.bf16.msra.mxu1 %v8431_v4  ;;  %6005 = vmatprep.subr.bf16.mxu0 %v8436_v55  ;;  %v8509_v4 = vld [vmem:[%s11663_s3 + $0x508] ss:$16 sps:$4 sm:$0xff]   ;;  %v8514_v55 = vld [vmem:[%s11663_s3 + $0x524] ss:$16 sps:$4 sm:$0xff]  }
 0x280   : > { %6169 = vmatprep.subr.bf16.mxu1 %v8439_v45  ;;  %v8517_v45 = vld [vmem:[%s11663_s3 + $0x52c] ss:$16 sps:$4 sm:$0xff]  }
 0x282   : > { %6006 = vmatpush1.bf16.msra.mxu0 %v8434_v47  ;;  %v8512_v47 = vld [vmem:[%s11663_s3 + $0x520] ss:$16 sps:$4 sm:$0xff]  }
 0x283   : > { %6170 = vmatpush1.bf16.msra.mxu1 %v8437_v24  ;;  %6007 = vmatprep.subr.bf16.mxu0 %v8442_v46  ;;  %v8515_v24 = vld [vmem:[%s11663_s3 + $0x528] ss:$16 sps:$4 sm:$0xff]   ;;  %v8520_v46 = vld [vmem:[%s11663_s3 + $0x544] ss:$16 sps:$4 sm:$0xff]  }
 0x284   : > { %6171 = vmatprep.subr.bf16.mxu1 %v8445_v50  ;;  %v8518_v50 = vld [vmem:[%s11663_s3 + $0x540] ss:$16 sps:$4 sm:$0xff]  }
 0x286   : > { %6008 = vmatpush1.bf16.msra.mxu0 %v8440_v51  ;;  %v8521_v51 = vld [vmem:[%s11663_s3 + $0x548] ss:$16 sps:$4 sm:$0xff]  }
 0x287   : > { %6172 = vmatpush1.bf16.msra.mxu1 %v8443_v52  ;;  %6009 = vmatprep.subr.bf16.mxu0 %v8448_v54  ;;  %v8526_v52 = vld [vmem:[%s11663_s3 + $0x564] ss:$16 sps:$4 sm:$0xff]   ;;  %v8529_v54 = vld [vmem:[%s11663_s3 + $0x56c] ss:$16 sps:$4 sm:$0xff]  }
 0x288   : > { %6173 = vmatprep.subr.bf16.mxu1 %v8451_v58  ;;  %v8527_v58 = vld [vmem:[%s11663_s3 + $0x568] ss:$16 sps:$4 sm:$0xff]  }
 0x28a   : > { %6010 = vmatpush1.bf16.msra.mxu0 %v8446_v59  ;;  %v8532_v59 = vld [vmem:[%s11663_s3 + $0x584] ss:$16 sps:$4 sm:$0xff]  }
 0x28b   : > { %6174 = vmatpush1.bf16.msra.mxu1 %v8449_v61  ;;  %6011 = vmatprep.subr.bf16.mxu0 %v8454_v8  ;;  %v8535_v61 = vld [vmem:[%s11663_s3 + $0x58c] ss:$16 sps:$4 sm:$0xff]   ;;  %v8530_v8 = vld [vmem:[%s11663_s3 + $0x580] ss:$16 sps:$4 sm:$0xff]  }
 0x28c   : > { %6175 = vmatprep.subr.bf16.mxu1 %v8457_v38  ;;  %v8538_v38 = vld [vmem:[%s11663_s3 + $0x5a4] ss:$16 sps:$4 sm:$0xff]  }
 0x28e   : > { %6012 = vmatpush1.bf16.msra.mxu0 %v8452_v63  ;;  %v8541_v63 = vld [vmem:[%s11663_s3 + $0x5ac] ss:$16 sps:$4 sm:$0xff]  }
 0x28f   : > { %6176 = vmatpush1.bf16.msra.mxu1 %v8455_v0  ;;  %6022 = vmatprep.subr.bf16.mxu0 %v8460_v1  ;;  %v8536_v0 = vld [vmem:[%s11663_s3 + $0x5a0] ss:$16 sps:$4 sm:$0xff]   ;;  %v8539_v1 = vld [vmem:[%s11663_s3 + $0x5a8] ss:$16 sps:$4 sm:$0xff]  }
 0x290   : > { %6186 = vmatprep.subr.bf16.mxu1 %v8463_v3  ;;  %v8547_v3 = vld [vmem:[%s11663_s3 + $0x5cc] ss:$16 sps:$4 sm:$0xff]  }
 0x291   : > { %6014 = vmatmul.mubr.bf16.vlgmr.msra.gmra.mrb[8].mxu0 %v4376_v10 }
 0x292   : > { %6178 = vmatmul.mubr.bf16.vlgmr.msra.gmra.mrb[8].mxu1 %v4376_v10  ;;  %6023 = vmatpush1.bf16.msra.mxu0 %v8458_v6  ;;  %v8542_v6 = vld [vmem:[%s11663_s3 + $0x5c0] ss:$16 sps:$4 sm:$0xff]   ;;  %v8545_v10 = vld [vmem:[%s11663_s3 + $0x5c8] ss:$16 sps:$4 sm:$0xff]  }
 0x293   : > { %6187 = vmatpush1.bf16.msra.mxu1 %v8461_v11  ;;  %6024 = vmatprep.subr.bf16.mxu0 %v8466_v14  ;;  %v8550_v11 = vld [vmem:[%s11663_s3 + $0x5e4] ss:$16 sps:$4 sm:$0xff]   ;;  %v8553_v14 = vld [vmem:[%s11663_s3 + $0x5ec] ss:$16 sps:$4 sm:$0xff]  }
 0x294   : > { %6188 = vmatprep.subr.bf16.mxu1 %v8469_v16  ;;  %v8548_v16 = vld [vmem:[%s11663_s3 + $0x5e0] ss:$16 sps:$4 sm:$0xff]  }
 0x296   : > { %6025 = vmatpush1.bf16.msra.mxu0 %v8464_v17  ;;  %v8551_v17 = vld [vmem:[%s11663_s3 + $0x5e8] ss:$16 sps:$4 sm:$0xff]  }
 0x297   : > { %6189 = vmatpush1.bf16.msra.mxu1 %v8467_v57  ;;  %6026 = vmatprep.subr.bf16.mxu0 %v8472_v18  ;;  %v8556_v57 = vld [vmem:[%s11663_s3 + $0x604] ss:$16 sps:$4 sm:$0xff]   ;;  %v8559_v18 = vld [vmem:[%s11663_s3 + $0x60c] ss:$16 sps:$4 sm:$0xff]  }
 0x298   : > { %6190 = vmatprep.subr.bf16.mxu1 %v8475_v53  ;;  %v1084_v53 = vsub.s32 4, %v10478_v60 }
 0x29a   : > { %6027 = vmatpush1.bf16.msra.mxu0 %v8470_v19  ;;  %v1088_v19 = vsub.s32 5, %v10478_v60 }
 0x29b   : > { %6191 = vmatpush1.bf16.msra.mxu1 %v8473_v20  ;;  %6028 = vmatprep.subr.bf16.mxu0 %v8478_v21  ;;  %v1096_v20 = vsub.s32 7, %v10478_v60  ;;  %v1085_v21 = vrot.slane %v10498_v7, %v1084_v53  ;;  %v8602_v53 = vld [vmem:[%s11663_s3 + $0x700] ss:$16 sps:$4 sm:$0xff]  }
 0x29c   : > { %6192 = vmatprep.subr.bf16.mxu1 %v8481_v12  ;;  %v1089_v12 = vrot.slane %v10498_v7, %v1088_v19  ;;  %v8605_v19 = vld [vmem:[%s11663_s3 + $0x708] ss:$16 sps:$4 sm:$0xff]  }
 0x29e   : > { %6029 = vmatpush1.bf16.msra.mxu0 %v8476_v22  ;;  %v1097_v22 = vrot.slane %v10498_v7, %v1096_v20  ;;  %v8610_v20 = vld [vmem:[%s11663_s3 + $0x724] ss:$16 sps:$4 sm:$0xff]  }
 0x29f   : > { %6193 = vmatpush1.bf16.msra.mxu1 %v8479_v26  ;;  %6030 = vmatprep.subr.bf16.mxu0 %v8484_v27 }
 0x2a0   : > { %6194 = vmatprep.subr.bf16.mxu1 %v8487_v28 }
 0x2a2   : > { %6031 = vmatpush1.bf16.msra.mxu0 %v8482_v29 }
 0x2a3   : > { %6195 = vmatpush1.bf16.msra.mxu1 %v8485_v30  ;;  %6032 = vmatprep.subr.bf16.mxu0 %v8490_v23 }
 0x2a4   : > { %6196 = vmatprep.subr.bf16.mxu1 %v8493_v25 }
 0x2a6   : > { %6033 = vmatpush1.bf16.msra.mxu0 %v8488_v32 }
 0x2a7   : > { %6197 = vmatpush1.bf16.msra.mxu1 %v8491_v34  ;;  %6034 = vmatprep.subr.bf16.mxu0 %v8496_v35 }
 0x2a8   : > { %6198 = vmatprep.subr.bf16.mxu1 %v8499_v9 }
 0x2aa   : > { %6035 = vmatpush1.bf16.msra.mxu0 %v8494_v36 }
 0x2ab   : > { %6199 = vmatpush1.bf16.msra.mxu1 %v8497_v37  ;;  %6036 = vmatprep.subr.bf16.mxu0 %v8502_v39 }
 0x2ac   : > { %6200 = vmatprep.subr.bf16.mxu1 %v8505_v40 }
 0x2ae   : > { %6037 = vmatpush1.bf16.msra.mxu0 %v8500_v41 }
 0x2af   : > { %6201 = vmatpush1.bf16.msra.mxu1 %v8503_v33  ;;  %6038 = vmatprep.subr.bf16.mxu0 %v8508_v42  ;;  %v8554_v33 = vld [vmem:[%s11663_s3 + $0x600] ss:$16 sps:$4 sm:$0xff]   ;;  %v8557_v42 = vld [vmem:[%s11663_s3 + $0x608] ss:$16 sps:$4 sm:$0xff]  }
 0x2b0   : > { %6202 = vmatprep.subr.bf16.mxu1 %v8511_v43 }
 0x2b2   : > { %6039 = vmatpush1.bf16.msra.mxu0 %v8506_v44 }
 0x2b3   : > { %6203 = vmatpush1.bf16.msra.mxu1 %v8509_v4  ;;  %6040 = vmatprep.subr.bf16.mxu0 %v8514_v55  ;;  %v8562_v4 = vld [vmem:[%s11663_s3 + $0x624] ss:$16 sps:$4 sm:$0xff]   ;;  %v8565_v55 = vld [vmem:[%s11663_s3 + $0x62c] ss:$16 sps:$4 sm:$0xff]  }
 0x2b4   : > { %6204 = vmatprep.subr.bf16.mxu1 %v8517_v45 }
 0x2b6   : > { %6041 = vmatpush1.bf16.msra.mxu0 %v8512_v47  ;;  %v8560_v47 = vld [vmem:[%s11663_s3 + $0x620] ss:$16 sps:$4 sm:$0xff]  }
 0x2b7   : > { %6205 = vmatpush1.bf16.msra.mxu1 %v8515_v24  ;;  %6042 = vmatprep.subr.bf16.mxu0 %v8520_v46  ;;  %v8563_v24 = vld [vmem:[%s11663_s3 + $0x628] ss:$16 sps:$4 sm:$0xff]   ;;  %v8568_v46 = vld [vmem:[%s11663_s3 + $0x644] ss:$16 sps:$4 sm:$0xff]  }
 0x2b8   : > { %6206 = vmatprep.subr.bf16.mxu1 %v8523_v49  ;;  %v8571_v49 = vld [vmem:[%s11663_s3 + $0x64c] ss:$16 sps:$4 sm:$0xff]  }
 0x2ba   : > { %6043 = vmatpush1.bf16.msra.mxu0 %v8518_v50  ;;  %v8566_v50 = vld [vmem:[%s11663_s3 + $0x640] ss:$16 sps:$4 sm:$0xff]  }
 0x2bb   : > { %6207 = vmatpush1.bf16.msra.mxu1 %v8521_v51  ;;  %6044 = vmatprep.subr.bf16.mxu0 %v8526_v52  ;;  %v8569_v51 = vld [vmem:[%s11663_s3 + $0x648] ss:$16 sps:$4 sm:$0xff]   ;;  %v8574_v52 = vld [vmem:[%s11663_s3 + $0x664] ss:$16 sps:$4 sm:$0xff]  }
 0x2bc   : > { %6208 = vmatprep.subr.bf16.mxu1 %v8529_v54  ;;  %v8577_v54 = vld [vmem:[%s11663_s3 + $0x66c] ss:$16 sps:$4 sm:$0xff]  }
 0x2be   : > { %6045 = vmatpush1.bf16.msra.mxu0 %v8524_v56  ;;  %v8572_v56 = vld [vmem:[%s11663_s3 + $0x660] ss:$16 sps:$4 sm:$0xff]  }
 0x2bf   : > { %6209 = vmatpush1.bf16.msra.mxu1 %v8527_v58  ;;  %6046 = vmatprep.subr.bf16.mxu0 %v8532_v59  ;;  %v8575_v58 = vld [vmem:[%s11663_s3 + $0x668] ss:$16 sps:$4 sm:$0xff]   ;;  %v8580_v59 = vld [vmem:[%s11663_s3 + $0x684] ss:$16 sps:$4 sm:$0xff]  }
 0x2c0   : > { %6210 = vmatprep.subr.bf16.mxu1 %v8535_v61  ;;  %v8583_v61 = vld [vmem:[%s11663_s3 + $0x68c] ss:$16 sps:$4 sm:$0xff]  }
 0x2c2   : > { %6047 = vmatpush1.bf16.msra.mxu0 %v8530_v8  ;;  %v8578_v8 = vld [vmem:[%s11663_s3 + $0x680] ss:$16 sps:$4 sm:$0xff]  }
 0x2c3   : > { %6211 = vmatpush1.bf16.msra.mxu1 %v8533_v62  ;;  %6048 = vmatprep.subr.bf16.mxu0 %v8538_v38  ;;  %v8581_v62 = vld [vmem:[%s11663_s3 + $0x688] ss:$16 sps:$4 sm:$0xff]   ;;  %v8586_v38 = vld [vmem:[%s11663_s3 + $0x6a4] ss:$16 sps:$4 sm:$0xff]  }
 0x2c4   : > { %6212 = vmatprep.subr.bf16.mxu1 %v8541_v63  ;;  %v8589_v63 = vld [vmem:[%s11663_s3 + $0x6ac] ss:$16 sps:$4 sm:$0xff]  }
 0x2c6   : > { %6049 = vmatpush1.bf16.msra.mxu0 %v8536_v0  ;;  %v8584_v0 = vld [vmem:[%s11663_s3 + $0x6a0] ss:$16 sps:$4 sm:$0xff]  }
 0x2c7   : > { %6213 = vmatpush1.bf16.msra.mxu1 %v8539_v1  ;;  %6050 = vmatprep.subr.bf16.mxu0 %v8544_v2  ;;  %v8587_v1 = vld [vmem:[%s11663_s3 + $0x6a8] ss:$16 sps:$4 sm:$0xff]   ;;  %v8592_v2 = vld [vmem:[%s11663_s3 + $0x6c4] ss:$16 sps:$4 sm:$0xff]  }
 0x2c8   : > { %6214 = vmatprep.subr.bf16.mxu1 %v8547_v3  ;;  %v8595_v3 = vld [vmem:[%s11663_s3 + $0x6cc] ss:$16 sps:$4 sm:$0xff]  }
 0x2ca   : > { %6051 = vmatpush1.bf16.msra.mxu0 %v8542_v6  ;;  %v8590_v6 = vld [vmem:[%s11663_s3 + $0x6c0] ss:$16 sps:$4 sm:$0xff]  }
 0x2cb   : > { %6215 = vmatpush1.bf16.msra.mxu1 %v8545_v10  ;;  %6052 = vmatprep.subr.bf16.mxu0 %v8550_v11  ;;  %v8593_v10 = vld [vmem:[%s11663_s3 + $0x6c8] ss:$16 sps:$4 sm:$0xff]   ;;  %v8598_v11 = vld [vmem:[%s11663_s3 + $0x6e4] ss:$16 sps:$4 sm:$0xff]  }
 0x2cc   : > { %6216 = vmatprep.subr.bf16.mxu1 %v8553_v14  ;;  %v8601_v14 = vld [vmem:[%s11663_s3 + $0x6ec] ss:$16 sps:$4 sm:$0xff]  }
 0x2ce   : > { %6053 = vmatpush1.bf16.msra.mxu0 %v8548_v16  ;;  %v8596_v16 = vld [vmem:[%s11663_s3 + $0x6e0] ss:$16 sps:$4 sm:$0xff]  }
 0x2cf   : > { %6217 = vmatpush1.bf16.msra.mxu1 %v8551_v17  ;;  %6063 = vmatprep.subr.bf16.mxu0 %v8556_v57  ;;  %v8599_v17 = vld [vmem:[%s11663_s3 + $0x6e8] ss:$16 sps:$4 sm:$0xff]   ;;  %v8604_v57 = vld [vmem:[%s11663_s3 + $0x704] ss:$16 sps:$4 sm:$0xff]  }
 0x2d0   : > { %6227 = vmatprep.subr.bf16.mxu1 %v8559_v18  ;;  %v8607_v18 = vld [vmem:[%s11663_s3 + $0x70c] ss:$16 sps:$4 sm:$0xff]  }
 0x2e4   : > { %v4179_v26 = vpop.f32.mrb[4].mxu0  ;;  %v11135_v28 = vpop.f32.mrb[4].mxu1 }
 0x2e5   : > { %v8162_v27 = vadd.f32 %v4179_v26, %v1085_v21  ;;  %v4181_v29 = vpop.f32.mrb[5].mxu0  ;;  %v4345_v23 = vpop.f32.mrb[5].mxu1  ;;  %v8613_v21 = vld [vmem:[%s11663_s3 + $0x72c] ss:$16 sps:$4 sm:$0xff]   ;;  %v8616_v26 = vld [vmem:[%s11663_s3 + $0x744] ss:$16 sps:$4 sm:$0xff]  }
 0x2e6   : > { %v8163_v30 = vadd.f32 %v4181_v29, %v1089_v12  ;;  %v4183_v25 = vpop.f32.mrb[6].mxu0  ;;  %v8165_v34 = vadd.f32 %v4345_v23, %v1097_v22  ;;  %v4347_v35 = vpop.f32.mrb[6].mxu1  ;;  %v8608_v12 = vld [vmem:[%s11663_s3 + $0x720] ss:$16 sps:$4 sm:$0xff]   ;;  %v8611_v22 = vld [vmem:[%s11663_s3 + $0x728] ss:$16 sps:$4 sm:$0xff]  }
 0x2e7   : > { %vm4354_vm4 = vcmp.ge.f32.partialorder %v8162_v27, 0.0  ;;  %v4362_v32 = vmul.f32 0.2, %v8162_v27  ;;  %v4184_v9 = vpop.f32.mrb[7].mxu0  ;;  %v4348_v40 = vpop.f32.mrb[7].mxu1 }
 0x2e8   : > { %vm4355_vm5 = vcmp.ge.f32.partialorder %v8163_v30, 0.0  ;;  %v4363_v36 = vmul.f32 0.2, %v8163_v30  ;;  %vm4357_vm6 = vcmp.ge.f32.partialorder %v8165_v34, 0.0  ;;  %v4365_v39 = vmul.f32 0.2, %v8165_v34 }
 0x2e9   : > { %v4370_v37 = vsel %vm4354_vm4, %v8162_v27, %v4362_v32  ;;  %v8619_v27 = vld [vmem:[%s11663_s3 + $0x74c] ss:$16 sps:$4 sm:$0xff]   ;;  %v8614_v29 = vld [vmem:[%s11663_s3 + $0x740] ss:$16 sps:$4 sm:$0xff]   ;;  %v8622_v23 = vld [vmem:[%s11663_s3 + $0x764] ss:$16 sps:$4 sm:$0xff]  }
 0x2ea   : > { %v4371_v7 = vsel %vm4355_vm5, %v8163_v30, %v4363_v36  ;;  %v4373_v43 = vsel %vm4357_vm6, %v8165_v34, %v4365_v39  ;;  %v4378_v44 = vpack.c.bf16 %v4370_v37, %v4370_v37  ;;  %v8617_v30 = vld [vmem:[%s11663_s3 + $0x748] ss:$16 sps:$4 sm:$0xff]   ;;  %v8625_v25 = vld [vmem:[%s11663_s3 + $0x76c] ss:$16 sps:$4 sm:$0xff]   ;;  %v8620_v32 = vld [vmem:[%s11663_s3 + $0x760] ss:$16 sps:$4 sm:$0xff]  }
 0x2eb   : > { %v4379_v41 = vpack.c.bf16 %v4371_v7, %v4371_v7  ;;  %v4381_v45 = vpack.c.bf16 %v4373_v43, %v4373_v43  ;;  %v8623_v34 = vld [vmem:[%s11663_s3 + $0x768] ss:$16 sps:$4 sm:$0xff]   ;;  %v8628_v35 = vld [vmem:[%s11663_s3 + $0x784] ss:$16 sps:$4 sm:$0xff]   ;;  %v8631_v9 = vld [vmem:[%s11663_s3 + $0x78c] ss:$16 sps:$4 sm:$0xff]  }
 0x2ec   : > { %v1092_v36 = vsub.s32 6, %v10478_v60  ;;  %v8626_v37 = vld [vmem:[%s11663_s3 + $0x780] ss:$16 sps:$4 sm:$0xff]   ;;  %v8629_v39 = vld [vmem:[%s11663_s3 + $0x788] ss:$16 sps:$4 sm:$0xff]  }
 0x2ed   : > { %6054 = vmatprep.mubr.bf16.mxu0 %v4379_v41  ;;  %6218 = vmatprep.mubr.bf16.mxu1 %v4379_v41  ;;  %v8634_v40 = vld [vmem:[%s11663_s3 + $0x7a4] ss:$16 sps:$4 sm:$0xff]   ;;  %v8637_v60 = vld [vmem:[%s11663_s3 + $0x7ac] ss:$16 sps:$4 sm:$0xff]  }
 0x2ee   : > { %6055 = vmatmul.mubr.bf16.vlgmr.msra.gmra.mrb[8].mxu0 %v4378_v44  ;;  %6219 = vmatmul.mubr.bf16.vlgmr.msra.gmra.mrb[8].mxu1 %v4378_v44  ;;  %v8774_v7 = vld [vmem:[%s11662_s2] sm:$0xff]  ;;  %v8643_v44 = vld [vmem:[%s11663_s3 + $0x7cc] ss:$16 sps:$4 sm:$0xff]  }
 0x2ef   : > { %6064 = vmatpush1.bf16.msra.mxu0 %v8554_v33  ;;  %6228 = vmatpush1.bf16.msra.mxu1 %v8557_v42  ;;  %v1093_v41 = vrot.slane %v8774_v7, %v1092_v36  ;;  %v8632_v33 = vld [vmem:[%s11663_s3 + $0x7a0] ss:$16 sps:$4 sm:$0xff]   ;;  %v8635_v42 = vld [vmem:[%s11663_s3 + $0x7a8] ss:$16 sps:$4 sm:$0xff]   ;;  %v8640_v43 = vld [vmem:[%s11663_s3 + $0x7c4] ss:$16 sps:$4 sm:$0xff]  }
 0x2f0   : > { %6095 = vmatprep.mubr.bf16.mxu0 %v4381_v45  ;;  %6259 = vmatprep.mubr.bf16.mxu1 %v4381_v45  ;;  %v8641_v45 = vld [vmem:[%s11663_s3 + $0x7c8] ss:$16 sps:$4 sm:$0xff]   ;;  %v8751_v36 = vld [vmem:[%s11671_s11 + $0x10] sm:$0xff]   ;;  %v4638_v7 = vld [vmem:[%s11664_s4] sm:$0xf] }
 0x2f1   : > { %6065 = vmatprep.subr.bf16.mxu0 %v8562_v4  ;;  %6229 = vmatprep.subr.bf16.mxu1 %v8565_v55  ;;  %v8164_v4 = vadd.f32 %v11135_v28, %v1093_v41  ;;  %v8638_v55 = vld [vmem:[%s11663_s3 + $0x7c0] ss:$16 sps:$4 sm:$0xff]   ;;  %v8649_v28 = vld [vmem:[%s11663_s3 + $0x7ec] ss:$16 sps:$4 sm:$0xff]   ;;  %v4643_v41 = vrot.slane %v4638_v7, %v10677_v31 }
 0x2f3   : > { %6066 = vmatpush1.bf16.msra.mxu0 %v8560_v47  ;;  %6230 = vmatpush1.bf16.msra.mxu1 %v8563_v24  ;;  %v8646_v47 = vld [vmem:[%s11663_s3 + $0x7e4] ss:$16 sps:$4 sm:$0xff]   ;;  %v4364_v24 = vmul.f32 0.2, %v8164_v4  ;;  %vm4356_vm7 = vcmp.ge.f32.partialorder %v8164_v4, 0.0 }
 0x2f4   : > { %6067 = vmatprep.subr.bf16.mxu0 %v8568_v46  ;;  %6231 = vmatprep.subr.bf16.mxu1 %v8571_v49  ;;  %v8644_v46 = vld [vmem:[%s11663_s3 + $0x7e0] ss:$16 sps:$4 sm:$0xff]   ;;  %v8647_v49 = vld [vmem:[%s11663_s3 + $0x7e8] ss:$16 sps:$4 sm:$0xff]  }
 0x2f7   : > { %6068 = vmatpush1.bf16.msra.mxu0 %v8566_v50  ;;  %6232 = vmatpush1.bf16.msra.mxu1 %v8569_v51  ;;  %v8652_v50 = vld [vmem:[%s11667_s7 + $0x4] ss:$8 sps:$4 sm:$0xff]   ;;  %v4372_v51 = vsel %vm4356_vm7, %v8164_v4, %v4364_v24  ;;  %v6306_v4 = vld [vmem:[%s11666_s6] sm:$0xf] }
 0x2f8   : > { %6069 = vmatprep.subr.bf16.mxu0 %v8574_v52  ;;  %6233 = vmatprep.subr.bf16.mxu1 %v8577_v54  ;;  %v8650_v52 = vld [vmem:[%s11667_s7] ss:$8 sps:$4 sm:$0xff]   ;;  %v4380_v54 = vpack.c.bf16 %v4372_v51, %v4372_v51 }
 0x2fb   : > { %6070 = vmatpush1.bf16.msra.mxu0 %v8572_v56  ;;  %6234 = vmatpush1.bf16.msra.mxu1 %v8575_v58  ;;  %v8655_v56 = vld [vmem:[%s11667_s7 + $0x14] ss:$8 sps:$4 sm:$0xff]   ;;  %v8653_v58 = vld [vmem:[%s11667_s7 + $0x10] ss:$8 sps:$4 sm:$0xff]  }
 0x2fc   : > { %6071 = vmatprep.subr.bf16.mxu0 %v8580_v59  ;;  %6235 = vmatprep.subr.bf16.mxu1 %v8583_v61  ;;  %v8658_v59 = vld [vmem:[%s11667_s7 + $0x24] ss:$8 sps:$4 sm:$0xff]   ;;  %v8656_v61 = vld [vmem:[%s11667_s7 + $0x20] ss:$8 sps:$4 sm:$0xff]  }
 0x2ff   : > { %6072 = vmatpush1.bf16.msra.mxu0 %v8578_v8  ;;  %6236 = vmatpush1.bf16.msra.mxu1 %v8581_v62  ;;  %v8661_v8 = vld [vmem:[%s11667_s7 + $0x34] ss:$8 sps:$4 sm:$0xff]   ;;  %v8659_v62 = vld [vmem:[%s11667_s7 + $0x30] ss:$8 sps:$4 sm:$0xff]  }
 0x300   : > { %6073 = vmatprep.subr.bf16.mxu0 %v8586_v38  ;;  %6237 = vmatprep.subr.bf16.mxu1 %v8589_v63  ;;  %v8664_v38 = vld [vmem:[%s11667_s7 + $0x44] ss:$8 sps:$4 sm:$0xff]   ;;  %v8662_v63 = vld [vmem:[%s11667_s7 + $0x40] ss:$8 sps:$4 sm:$0xff]  }
 0x303   : > { %6074 = vmatpush1.bf16.msra.mxu0 %v8584_v0  ;;  %6238 = vmatpush1.bf16.msra.mxu1 %v8587_v1  ;;  %v8667_v0 = vld [vmem:[%s11667_s7 + $0x54] ss:$8 sps:$4 sm:$0xff]   ;;  %v8665_v1 = vld [vmem:[%s11667_s7 + $0x50] ss:$8 sps:$4 sm:$0xff]  }
 0x304   : > { %6075 = vmatprep.subr.bf16.mxu0 %v8592_v2  ;;  %6239 = vmatprep.subr.bf16.mxu1 %v8595_v3  ;;  %v8670_v2 = vld [vmem:[%s11667_s7 + $0x64] ss:$8 sps:$4 sm:$0xff]   ;;  %v8668_v3 = vld [vmem:[%s11667_s7 + $0x60] ss:$8 sps:$4 sm:$0xff]  }
 0x307   : > { %6076 = vmatpush1.bf16.msra.mxu0 %v8590_v6  ;;  %6240 = vmatpush1.bf16.msra.mxu1 %v8593_v10  ;;  %v8673_v6 = vld [vmem:[%s11667_s7 + $0x74] ss:$8 sps:$4 sm:$0xff]   ;;  %v8671_v10 = vld [vmem:[%s11667_s7 + $0x70] ss:$8 sps:$4 sm:$0xff]  }
 0x308   : > { %6077 = vmatprep.subr.bf16.mxu0 %v8598_v11  ;;  %6241 = vmatprep.subr.bf16.mxu1 %v8601_v14  ;;  %v8676_v11 = vld [vmem:[%s11667_s7 + $0x84] ss:$8 sps:$4 sm:$0xff]   ;;  %v8674_v14 = vld [vmem:[%s11667_s7 + $0x80] ss:$8 sps:$4 sm:$0xff]  }
 0x30b   : > { %6078 = vmatpush1.bf16.msra.mxu0 %v8596_v16  ;;  %6242 = vmatpush1.bf16.msra.mxu1 %v8599_v17  ;;  %v8679_v16 = vld [vmem:[%s11667_s7 + $0x94] ss:$8 sps:$4 sm:$0xff]   ;;  %v8677_v17 = vld [vmem:[%s11667_s7 + $0x90] ss:$8 sps:$4 sm:$0xff]  }
 0x30c   : > { %6079 = vmatprep.subr.bf16.mxu0 %v8604_v57  ;;  %6243 = vmatprep.subr.bf16.mxu1 %v8607_v18  ;;  %v8682_v57 = vld [vmem:[%s11667_s7 + $0xa4] ss:$8 sps:$4 sm:$0xff]   ;;  %v8680_v18 = vld [vmem:[%s11667_s7 + $0xa0] ss:$8 sps:$4 sm:$0xff]  }
 0x30f   : > { %6080 = vmatpush1.bf16.msra.mxu0 %v8602_v53  ;;  %6244 = vmatpush1.bf16.msra.mxu1 %v8605_v19  ;;  %v8685_v53 = vld [vmem:[%s11667_s7 + $0xb4] ss:$8 sps:$4 sm:$0xff]   ;;  %v8683_v19 = vld [vmem:[%s11667_s7 + $0xb0] ss:$8 sps:$4 sm:$0xff]  }
 0x310   : > { %6081 = vmatprep.subr.bf16.mxu0 %v8610_v20  ;;  %6245 = vmatprep.subr.bf16.mxu1 %v8613_v21  ;;  %v8688_v20 = vld [vmem:[%s11667_s7 + $0xc4] ss:$8 sps:$4 sm:$0xff]   ;;  %v8686_v21 = vld [vmem:[%s11667_s7 + $0xc0] ss:$8 sps:$4 sm:$0xff]  }
 0x313   : > { %6082 = vmatpush1.bf16.msra.mxu0 %v8608_v12  ;;  %6246 = vmatpush1.bf16.msra.mxu1 %v8611_v22  ;;  %v8691_v12 = vld [vmem:[%s11667_s7 + $0xd4] ss:$8 sps:$4 sm:$0xff]   ;;  %v8689_v22 = vld [vmem:[%s11667_s7 + $0xd0] ss:$8 sps:$4 sm:$0xff]  }
 0x314   : > { %6083 = vmatprep.subr.bf16.mxu0 %v8616_v26  ;;  %6247 = vmatprep.subr.bf16.mxu1 %v8619_v27  ;;  %v8694_v26 = vld [vmem:[%s11667_s7 + $0xe4] ss:$8 sps:$4 sm:$0xff]   ;;  %v8692_v27 = vld [vmem:[%s11667_s7 + $0xe0] ss:$8 sps:$4 sm:$0xff]  }
 0x317   : > { %6084 = vmatpush1.bf16.msra.mxu0 %v8614_v29  ;;  %6248 = vmatpush1.bf16.msra.mxu1 %v8617_v30  ;;  %v8697_v29 = vld [vmem:[%s11667_s7 + $0xf4] ss:$8 sps:$4 sm:$0xff]   ;;  %v8695_v30 = vld [vmem:[%s11667_s7 + $0xf0] ss:$8 sps:$4 sm:$0xff]  }
 0x318   : > { %6085 = vmatprep.subr.bf16.mxu0 %v8622_v23  ;;  %6249 = vmatprep.subr.bf16.mxu1 %v8625_v25  ;;  %v8700_v23 = vld [vmem:[%s11667_s7 + $0x104] ss:$8 sps:$4 sm:$0xff]  }
 0x319   : > { %v8746_v25 = vld [vmem:[%s11671_s11 + $0x40] sm:$0xff]  }
 0x31b   : > { %6086 = vmatpush1.bf16.msra.mxu0 %v8620_v32  ;;  %6250 = vmatpush1.bf16.msra.mxu1 %v8623_v34  ;;  %v8747_v32 = vld [vmem:[%s11671_s11] sm:$0xff]   ;;  %v8748_v34 = vld [vmem:[%s11671_s11 + $0x48] sm:$0xff]  }
 0x31c   : > { %6087 = vmatprep.subr.bf16.mxu0 %v8628_v35  ;;  %6251 = vmatprep.subr.bf16.mxu1 %v8631_v9  ;;  %v8749_v35 = vld [vmem:[%s11671_s11 + $0x8] sm:$0xff]   ;;  %v8750_v9 = vld [vmem:[%s11671_s11 + $0x50] sm:$0xff]  }
 0x31f   : > { %6088 = vmatpush1.bf16.msra.mxu0 %v8626_v37  ;;  %6252 = vmatpush1.bf16.msra.mxu1 %v8629_v39  ;;  %v8752_v37 = vld [vmem:[%s11671_s11 + $0x58] sm:$0xff]  }
 0x320   : > { %6089 = vmatprep.subr.bf16.mxu0 %v8634_v40  ;;  %6253 = vmatprep.subr.bf16.mxu1 %v8637_v60  ;;  %v8753_v39 = vld [vmem:[%s11671_s11 + $0x18] sm:$0xff]   ;;  %v8754_v40 = vld [vmem:[%s11671_s11 + $0x60] sm:$0xff]  }
 0x321   : > { %v8755_v60 = vld [vmem:[%s11671_s11 + $0x20] sm:$0xff]  }
 0x323   : > { %6090 = vmatpush1.bf16.msra.mxu0 %v8632_v33  ;;  %6254 = vmatpush1.bf16.msra.mxu1 %v8635_v42  ;;  %v6280_v33 = vld [vmem:[%s11665_s5] sm:$0xf]  ;;  %v4651_v42 = vrot.slane %v4638_v7, %v10881_v13 }
 0x324   : > { %6091 = vmatprep.subr.bf16.mxu0 %v8640_v43  ;;  %6255 = vmatprep.subr.bf16.mxu1 %v8643_v44  ;;  %v4647_v43 = vrot.slane %v4638_v7, %v10493_v5  ;;  %v4655_v44 = vrot.slane %v4638_v7, %v10683_v15  ;;  %v8724_v7 = vld [vmem:[%s11667_s7 + $0x184] ss:$8 sps:$4 sm:$0xff]  }
 0x327   : > { %6092 = vmatpush1.bf16.msra.mxu0 %v8638_v55  ;;  %6256 = vmatpush1.bf16.msra.mxu1 %v8641_v45  ;;  %v6285_v45 = vrot.slane %v6280_v33, %v10677_v31 }
 0x328   : > { %6093 = vmatprep.subr.bf16.mxu0 %v8646_v47  ;;  %6257 = vmatprep.subr.bf16.mxu1 %v8649_v28  ;;  %v6293_v28 = vrot.slane %v6280_v33, %v10881_v13 }
 0x32b   : > { %6094 = vmatpush1.bf16.msra.mxu0 %v8644_v46  ;;  %6258 = vmatpush1.bf16.msra.mxu1 %v8647_v49 }
 0x32c   : > { %6732 = vmatprep.subr.bf16.mxu0 %v8652_v50  ;;  %8107 = vmatprep.subr.bf16.mxu1 %v8746_v25  ;;  %v6289_v50 = vrot.slane %v6280_v33, %v10493_v5  ;;  %v8709_v25 = vld [vmem:[%s11667_s7 + $0x134] ss:$8 sps:$4 sm:$0xff]  }
 0x32e   : > { %6096 = vmatmul.mubr.bf16.vlgmr.msra.gmra.mrb[8].mxu0 %v4380_v54  ;;  %6260 = vmatmul.mubr.bf16.vlgmr.msra.gmra.mrb[8].mxu1 %v4380_v54 }
 0x32f   : > { %6733 = vmatpush1.bf16.msra.mxu0 %v8650_v52  ;;  %8108 = vmatpush3.bf16.msra.mxu1 %v8747_v32  ;;  %v6297_v52 = vrot.slane %v6280_v33, %v10683_v15  ;;  %v8707_v32 = vld [vmem:[%s11667_s7 + $0x130] ss:$8 sps:$4 sm:$0xff]   ;;  %v8727_v33 = vld [vmem:[%s11667_s7 + $0x194] ss:$8 sps:$4 sm:$0xff]  }
 0x330   : > { %6734 = vmatprep.subr.bf16.mxu0 %v8655_v56  ;;  %8109 = vmatprep.subr.bf16.mxu1 %v8748_v34  ;;  %v8712_v34 = vld [vmem:[%s11667_s7 + $0x144] ss:$8 sps:$4 sm:$0xff]  }
 0x333   : > { %6735 = vmatpush1.bf16.msra.mxu0 %v8653_v58  ;;  %8110 = vmatpush3.bf16.msra.mxu1 %v8749_v35  ;;  %v8710_v35 = vld [vmem:[%s11667_s7 + $0x140] ss:$8 sps:$4 sm:$0xff]  }
 0x334   : > { %6736 = vmatprep.subr.bf16.mxu0 %v8658_v59  ;;  %8111 = vmatprep.subr.bf16.mxu1 %v8750_v9  ;;  %v8715_v9 = vld [vmem:[%s11667_s7 + $0x154] ss:$8 sps:$4 sm:$0xff]  }
 0x337   : > { %6737 = vmatpush1.bf16.msra.mxu0 %v8656_v61  ;;  %8112 = vmatpush3.bf16.msra.mxu1 %v8751_v36  ;;  %v6311_v61 = vrot.slane %v6306_v4, %v10677_v31  ;;  %v8713_v36 = vld [vmem:[%s11667_s7 + $0x150] ss:$8 sps:$4 sm:$0xff]  }
 0x338   : > { %6738 = vmatprep.subr.bf16.mxu0 %v8661_v8  ;;  %8113 = vmatprep.subr.bf16.mxu1 %v8752_v37  ;;  %v6319_v8 = vrot.slane %v6306_v4, %v10881_v13  ;;  %v8718_v37 = vld [vmem:[%s11667_s7 + $0x164] ss:$8 sps:$4 sm:$0xff]  }
 0x33b   : > { %6739 = vmatpush1.bf16.msra.mxu0 %v8659_v62  ;;  %8114 = vmatpush3.bf16.msra.mxu1 %v8753_v39  ;;  %v8716_v39 = vld [vmem:[%s11667_s7 + $0x160] ss:$8 sps:$4 sm:$0xff]  }
 0x33c   : > { %6740 = vmatprep.subr.bf16.mxu0 %v8664_v38  ;;  %8115 = vmatprep.subr.bf16.mxu1 %v8754_v40  ;;  %v8721_v40 = vld [vmem:[%s11667_s7 + $0x174] ss:$8 sps:$4 sm:$0xff]  }
 0x33f   : > { %6741 = vmatpush1.bf16.msra.mxu0 %v8662_v63  ;;  %8116 = vmatpush3.bf16.msra.mxu1 %v8755_v60  ;;  %v8719_v60 = vld [vmem:[%s11667_s7 + $0x170] ss:$8 sps:$4 sm:$0xff]  }
 0x340   : > { %6742 = vmatprep.subr.bf16.mxu0 %v8667_v0 }
 0x343   : > { %6743 = vmatpush1.bf16.msra.mxu0 %v8665_v1 }
 0x344   : > { %6744 = vmatprep.subr.bf16.mxu0 %v8670_v2 }
 0x347   : > { %6745 = vmatpush1.bf16.msra.mxu0 %v8668_v3 }
 0x348   : > { %6746 = vmatprep.subr.bf16.mxu0 %v8673_v6 }
 0x34b   : > { %6747 = vmatpush1.bf16.msra.mxu0 %v8671_v10  ;;  %v6315_v10 = vrot.slane %v6306_v4, %v10493_v5 }
 0x34c   : > { %6748 = vmatprep.subr.bf16.mxu0 %v8676_v11  ;;  %v6323_v11 = vrot.slane %v6306_v4, %v10683_v15  ;;  %v8703_v15 = vld [vmem:[%s11667_s7 + $0x114] ss:$8 sps:$4 sm:$0xff]  }
 0x34d   : > { %v8733_v4 = vld [vmem:[%s11667_s7 + $0x1b4] ss:$8 sps:$4 sm:$0xff]  }
 0x34f   : > { %6749 = vmatpush1.bf16.msra.mxu0 %v8674_v14 }
 0x350   : > { %6750 = vmatprep.subr.bf16.mxu0 %v8679_v16 }
 0x353   : > { %6751 = vmatpush1.bf16.msra.mxu0 %v8677_v17 }
 0x354   : > { %6752 = vmatprep.subr.bf16.mxu0 %v8682_v57 }
 0x357   : > { %6753 = vmatpush1.bf16.msra.mxu0 %v8680_v18 }
 0x358   : > { %6754 = vmatprep.subr.bf16.mxu0 %v8685_v53 }
 0x35b   : > { %6755 = vmatpush1.bf16.msra.mxu0 %v8683_v19 }
 0x35c   : > { %6756 = vmatprep.subr.bf16.mxu0 %v8688_v20 }
 0x35f   : > { %6757 = vmatpush1.bf16.msra.mxu0 %v8686_v21 }
 0x360   : > { %6758 = vmatprep.subr.bf16.mxu0 %v8691_v12 }
 0x363   : > { %6759 = vmatpush1.bf16.msra.mxu0 %v8689_v22  ;;  %v8698_v22 = vld [vmem:[%s11667_s7 + $0x100] ss:$8 sps:$4 sm:$0xff]  }
 0x364   : > { %6760 = vmatprep.subr.bf16.mxu0 %v8694_v26 }
 0x367   : > { %6761 = vmatpush1.bf16.msra.mxu0 %v8692_v27 }
 0x368   : > { %6762 = vmatprep.subr.bf16.mxu0 %v8697_v29  ;;  %v8701_v29 = vld [vmem:[%s11667_s7 + $0x110] ss:$8 sps:$4 sm:$0xff]  }
 0x36b   : > { %6763 = vmatpush1.bf16.msra.mxu0 %v8695_v30  ;;  %v8706_v30 = vld [vmem:[%s11667_s7 + $0x124] ss:$8 sps:$4 sm:$0xff]  }
 0x36c   : > { %6773 = vmatprep.subr.bf16.mxu0 %v8700_v23  ;;  %v8704_v23 = vld [vmem:[%s11667_s7 + $0x120] ss:$8 sps:$4 sm:$0xff]  }
 0x401   : > { %v6097_v55 = vpop.f32.mrb[8].mxu0  ;;  %v6261_v47 = vpop.f32.mrb[8].mxu1 }
 0x402   : > { %v8166_v24 = vadd.f32 %v6097_v55, %v4643_v41  ;;  %v8168_v46 = vadd.f32 %v6261_v47, %v4651_v42  ;;  %v6099_v49 = vpop.f32.mrb[9].mxu0  ;;  %v6263_v51 = vpop.f32.mrb[9].mxu1  ;;  %v8722_v41 = vld [vmem:[%s11667_s7 + $0x180] ss:$8 sps:$4 sm:$0xff]   ;;  %v8725_v42 = vld [vmem:[%s11667_s7 + $0x190] ss:$8 sps:$4 sm:$0xff]  }
 0x403   : > { %v8167_v54 = vadd.f32 %v6099_v49, %v4647_v43  ;;  %v8169_v56 = vadd.f32 %v6263_v51, %v4655_v44  ;;  %v6101_v58 = vpop.f32.mrb[10].mxu0  ;;  %v6265_v59 = vpop.f32.mrb[10].mxu1  ;;  %v8730_v43 = vld [vmem:[%s11667_s7 + $0x1a4] ss:$8 sps:$4 sm:$0xff]   ;;  %v8728_v44 = vld [vmem:[%s11667_s7 + $0x1a0] ss:$8 sps:$4 sm:$0xff]  }
 0x404   : > { %vm6268_vm8 = vcmp.ge.f32.partialorder %v8166_v24, 0.0  ;;  %v6272_v62 = vmul.f32 0.2, %v8166_v24  ;;  %vm6270_vm9 = vcmp.ge.f32.partialorder %v8168_v46, 0.0  ;;  %v6274_v38 = vmul.f32 0.2, %v8168_v46 }
 0x405   : > { %vm6269_vm10 = vcmp.ge.f32.partialorder %v8167_v54, 0.0  ;;  %v6273_v63 = vmul.f32 0.2, %v8167_v54  ;;  %vm6271_vm11 = vcmp.ge.f32.partialorder %v8169_v56, 0.0  ;;  %v6275_v0 = vmul.f32 0.2, %v8169_v56 }
 0x406   : > { %v6276_v1 = vsel %vm6268_vm8, %v8166_v24, %v6272_v62  ;;  %v6278_v2 = vsel %vm6270_vm9, %v8168_v46, %v6274_v38  ;;  %v6102_v3 = vpop.f32.mrb[11].mxu0  ;;  %v6266_v6 = vpop.f32.mrb[11].mxu1  ;;  %v8731_v55 = vld [vmem:[%s11667_s7 + $0x1b0] ss:$8 sps:$4 sm:$0xff]   ;;  %v8734_v47 = vld [vmem:[%s11667_s7 + $0x1c0] ss:$8 sps:$4 sm:$0xff]  }
 0x407   : > { %v6302_v14 = vmul.f32 %v6285_v45, %v6276_v1  ;;  %v6304_v16 = vmul.f32 %v6293_v28, %v6278_v2  ;;  %v6277_v17 = vsel %vm6269_vm10, %v8167_v54, %v6273_v63  ;;  %v6279_v13 = vsel %vm6271_vm11, %v8169_v56, %v6275_v0  ;;  %v8736_v45 = vld [vmem:[%s11667_s7 + $0x1c4] ss:$8 sps:$4 sm:$0xff]   ;;  %v8739_v28 = vld [vmem:[%s11667_s7 + $0x1d4] ss:$8 sps:$4 sm:$0xff]   ;;  %v8737_v24 = vld [vmem:[%s11667_s7 + $0x1d0] ss:$8 sps:$4 sm:$0xff]  }
 0x408   : > { %v6303_v57 = vmul.f32 %v6289_v50, %v6277_v17  ;;  %v6305_v18 = vmul.f32 %v6297_v52, %v6279_v13  ;;  %v8742_v46 = vld [vmem:[%s11667_s7 + $0x1e4] ss:$8 sps:$4 sm:$0xff]   ;;  %v8740_v49 = vld [vmem:[%s11667_s7 + $0x1e0] ss:$8 sps:$4 sm:$0xff]   ;;  %v8745_v50 = vld [vmem:[%s11667_s7 + $0x1f4] ss:$8 sps:$4 sm:$0xff]  }
 0x409   : > { %v6328_v53 = vadd.f32 %v6311_v61, %v6302_v14  ;;  %v11478_v19 = vadd.f32 %v6319_v8, %v6304_v16  ;;  %v8743_v51 = vld [vmem:[%s11667_s7 + $0x1f0] ss:$8 sps:$4 sm:$0xff]   ;;  %v8756_v54 = vld [vmem:[%s11671_s11 + $0x68] sm:$0xff]   ;;  %v8783_v62 = vmov 0.0   ;;  %v6400_v38 = vld [vmem:[%s11668_s8] sm:$0x3] }
 0x40a   : > { %v6329_v20 = vadd.f32 %v6315_v10, %v6303_v57  ;;  %v6331_v21 = vadd.f32 %v6323_v11, %v6305_v18  ;;  %v8757_v56 = vld [vmem:[%s11671_s11 + $0x28] sm:$0xff]   ;;  %8117 = vmatprep.subr.bf16.mxu1 %v8756_v54  ;;  %v8758_v58 = vld [vmem:[%s11671_s11 + $0x70] sm:$0xff]   ;;  %v8760_v61 = vld [vmem:[%s11671_s11 + $0x78] sm:$0xff]   ;;  %v6405_v63 = vrot.slane %v6400_v38, %v10677_v31  ;;  %v6409_v0 = vrot.slane %v6400_v38, %v10493_v5 }
 0x40b   : > { %v6332_v26 = vpack.c.bf16 %v6328_v53, %v6328_v53  ;;  %v6334_v52 = vpack.c.bf16 %v11478_v19, %v11478_v19  ;;  %8118 = vmatpush3.bf16.msra.mxu1 %v8757_v56  ;;  %v8759_v59 = vld [vmem:[%s11671_s11 + $0x30] sm:$0xff]   ;;  %v8761_v8 = vld [vmem:[%s11671_s11 + $0x38] sm:$0xff]   ;;  %v6820_v1 = vld [vmem:[%s11669_s9] sm:$0x3] }
 0x40c   : > { %v6333_v12 = vpack.c.bf16 %v6329_v20, %v6329_v20  ;;  %v6335_v27 = vpack.c.bf16 %v6331_v21, %v6331_v21  ;;  %8119 = vmatprep.subr.bf16.mxu1 %v8758_v58  ;;  %v6834_v10 = vld [vmem:[%s11670_s10] sm:$0x3]  ;;  %v6825_v11 = vrot.slane %v6820_v1, %v10677_v31  ;;  %v6829_v13 = vrot.slane %v6820_v1, %v10493_v5 }
 0x40d   : > { %v6839_v53 = vrot.slane %v6834_v10, %v10677_v31  ;;  %v6843_v20 = vrot.slane %v6834_v10, %v10493_v5  ;;  %v8763_v31 = vld [vmem:[%s11675_s15 + $0x8] sm:$0xff]   ;;  %v8764_v5 = vld [vmem:[%s11675_s15 + $0x10] sm:$0xff]  }
 0x40e   : > { %6764 = vmatprep.mubr.bf16.mxu0 %v6333_v12 }
 0x40f   : > { %6765 = vmatmul.mubr.bf16.vlgmr.msra.gmra.mrb[12].mxu0 %v6332_v26  ;;  %8120 = vmatpush3.bf16.msra.mxu1 %v8759_v59 }
 0x410   : > { %6774 = vmatpush1.bf16.msra.mxu0 %v8698_v22  ;;  %6805 = vmatprep.mubr.bf16.mxu0 %v6335_v27 }
 0x411   : > { %6775 = vmatprep.subr.bf16.mxu0 %v8703_v15  ;;  %8121 = vmatprep.subr.bf16.mxu1 %v8760_v61 }
 0x413   : > { %8122 = vmatpush3.bf16.msra.mxu1 %v8761_v8 }
 0x414   : > { %6776 = vmatpush1.bf16.msra.mxu0 %v8701_v29  ;;  %8138 = vmatprep.subr.bf16.mxu1 %v8783_v62  ;;  %v8762_v29 = vld [vmem:[%s11675_s15] sm:$0xff]  }
 0x415   : > { %6777 = vmatprep.subr.bf16.mxu0 %v8706_v30 }
 0x418   : > { %6778 = vmatpush1.bf16.msra.mxu0 %v8704_v23  ;;  %v8765_v23 = vld [vmem:[%s11675_s15 + $0x18] sm:$0xff]  }
 0x419   : > { %6779 = vmatprep.subr.bf16.mxu0 %v8709_v25  ;;  %v8766_v25 = vld [vmem:[%s11675_s15 + $0x20] sm:$0xff]  }
 0x41c   : > { %6780 = vmatpush1.bf16.msra.mxu0 %v8707_v32  ;;  %v8767_v32 = vld [vmem:[%s11675_s15 + $0x28] sm:$0xff]  }
 0x41d   : > { %6781 = vmatprep.subr.bf16.mxu0 %v8712_v34  ;;  %v8768_v34 = vld [vmem:[%s11675_s15 + $0x30] sm:$0xff]  }
 0x420   : > { %6782 = vmatpush1.bf16.msra.mxu0 %v8710_v35  ;;  %v8769_v35 = vld [vmem:[%s11675_s15 + $0x38] sm:$0xff]  }
 0x421   : > { %6783 = vmatprep.subr.bf16.mxu0 %v8715_v9 }
 0x424   : > { %6784 = vmatpush1.bf16.msra.mxu0 %v8713_v36  ;;  %v8076_v36 = vld [vmem:[%s11672_s12] ss:$0 sm:$0xff] }
 0x425   : > { %6785 = vmatprep.subr.bf16.mxu0 %v8718_v37 }
 0x428   : > { %6786 = vmatpush1.bf16.msra.mxu0 %v8716_v39 }
 0x429   : > { %6787 = vmatprep.subr.bf16.mxu0 %v8721_v40 }
 0x42c   : > { %6788 = vmatpush1.bf16.msra.mxu0 %v8719_v60 }
 0x42d   : > { %6789 = vmatprep.subr.bf16.mxu0 %v8724_v7 }
 0x430   : > { %6790 = vmatpush1.bf16.msra.mxu0 %v8722_v41 }
 0x431   : > { %6791 = vmatprep.subr.bf16.mxu0 %v8727_v33  ;;  %v8093_v33 = vld [vmem:[%s11673_s13] ss:$0 sm:$0xff] }
 0x434   : > { %6792 = vmatpush1.bf16.msra.mxu0 %v8725_v42 }
 0x435   : > { %6793 = vmatprep.subr.bf16.mxu0 %v8730_v43  ;;  %v8094_v43 = vld [vmem:[%s11674_s14] ss:$0 sm:$0xff] }
 0x438   : > { %6794 = vmatpush1.bf16.msra.mxu0 %v8728_v44 }
 0x439   : > { %6795 = vmatprep.subr.bf16.mxu0 %v8733_v4 }
 0x43c   : > { %6796 = vmatpush1.bf16.msra.mxu0 %v8731_v55 }
 0x43d   : > { %6797 = vmatprep.subr.bf16.mxu0 %v8736_v45  ;;  %v7157_v45 = vand.u32 127, %v1066_v48 }
 0x43f   : > { %vm7158_vm0 = vcmp.ge.s32.totalorder %v7157_v45, 1  ;;  %vm7159_vm1 = vcmp.lt.s32.totalorder %v7157_v45, 11 }
 0x440   : > { %6798 = vmatpush1.bf16.msra.mxu0 %v8734_v47  ;;  %v8095_v47 = vld [vmem:[%s11676_s16] ss:$0 sm:$0xff]  ;;  %vm11645_vm2 = vmand %vm7158_vm0, %vm7159_vm1 }
 0x441   : > { %6799 = vmatprep.subr.bf16.mxu0 %v8739_v28 }
 0x444   : > { %6800 = vmatpush1.bf16.msra.mxu0 %v8737_v24 }
 0x445   : > { %6801 = vmatprep.subr.bf16.mxu0 %v8742_v46 }
 0x448   : > { %6802 = vmatpush1.bf16.msra.mxu0 %v8740_v49 }
 0x449   : > { %6803 = vmatprep.subr.bf16.mxu0 %v8745_v50 }
 0x44c   : > { %6804 = vmatpush1.bf16.msra.mxu0 %v8743_v51 }
 0x44f   : > { %6806 = vmatmul.mubr.bf16.vlgmr.msra.gmra.mrb[12].mxu0 %v6334_v52 }
 0x522   : > { %v6807_v2 = vpop.f32.mrb[12].mxu0 }
 0x523   : > { %v8170_v3 = vadd.f32 %v6807_v2, %v6405_v63  ;;  %v6809_v6 = vpop.f32.mrb[13].mxu0 }
 0x524   : > { %v8171_v14 = vadd.f32 %v6809_v6, %v6409_v0  ;;  %v6811_v16 = vpop.f32.mrb[14].mxu0 }
 0x525   : > { %vm6814_vm12 = vcmp.ge.f32.partialorder %v8170_v3, 0.0  ;;  %v6816_v17 = vmul.f32 0.2, %v8170_v3  ;;  %v6812_v57 = vpop.f32.mrb[15].mxu0 }
 0x526   : > { %vm6815_vm13 = vcmp.ge.f32.partialorder %v8171_v14, 0.0  ;;  %v6817_v18 = vmul.f32 0.2, %v8171_v14 }
 0x527   : > { %v6818_v19 = vsel %vm6814_vm12, %v8170_v3, %v6816_v17 }
 0x528   : > { %v6832_v21 = vmul.f32 %v6825_v11, %v6818_v19  ;;  %v6819_v12 = vsel %vm6815_vm13, %v8171_v14, %v6817_v18 }
 0x529   : > { %v6833_v22 = vmul.f32 %v6829_v13, %v6819_v12 }
 0x52a   : > { %v6846_v26 = vadd.f32 %v6839_v53, %v6832_v21 }
 0x52b   : > { %v6847_v15 = vadd.f32 %v6843_v20, %v6833_v22 }
 0x52c   : > { %v6848_v30 = vpack.c.bf16 %v6846_v26, %v6846_v26 }
 0x52d   : > { %v6849_v27 = vpack.c.bf16 %v6847_v15, %v6847_v15 }
 0x52f   : > { %7017 = vmatprep.mubr.bf16.mxu1 %v6849_v27 }
 0x530   : > { %7018 = vmatmul.mubr.bf16.vlgmr.msra.gmra.mrb[12].mxu1 %v6848_v30 }
 0x531   : > { %8139 = vmatpush3.bf16.msra.mxu1 %v8762_v29  ;;  %8154 = vmatprep.mubr.msk.bf16.mxu1 %vm8784_vm14, %v8783_v62 }
 0x532   : > { %8140 = vmatprep.subr.bf16.mxu1 %v8783_v62 }
 0x535   : > { %8141 = vmatpush3.bf16.msra.mxu1 %v8763_v31 }
 0x536   : > { %8142 = vmatprep.subr.bf16.mxu1 %v8783_v62 }
 0x539   : > { %8143 = vmatpush3.bf16.msra.mxu1 %v8764_v5 }
 0x53a   : > { %8144 = vmatprep.subr.bf16.mxu1 %v8783_v62 }
 0x53d   : > { %8145 = vmatpush3.bf16.msra.mxu1 %v8765_v23 }
 0x53e   : > { %8146 = vmatprep.subr.bf16.mxu1 %v8783_v62 }
 0x541   : > { %8147 = vmatpush3.bf16.msra.mxu1 %v8766_v25 }
 0x542   : > { %8148 = vmatprep.subr.bf16.mxu1 %v8783_v62 }
 0x545   : > { %8149 = vmatpush3.bf16.msra.mxu1 %v8767_v32 }
 0x546   : > { %8150 = vmatprep.subr.bf16.mxu1 %v8783_v62 }
 0x549   : > { %8151 = vmatpush3.bf16.msra.mxu1 %v8768_v34 }
 0x54a   : > { %8152 = vmatprep.subr.bf16.mxu1 %v8783_v62 }
 0x54d   : > { %8153 = vmatpush3.bf16.msra.mxu1 %v8769_v35 }
 0x603   : > { %v8123_v9 = vpop.f32.mrb[12].mxu1 }
 0x604   : > { %v8124_v37 = vpop.f32.mrb[13].mxu1 }
 0x605   : > { %v8125_v39 = vadd.f32 %v8124_v37, %v8123_v9  ;;  %v8126_v40 = vpop.f32.mrb[14].mxu1 }
 0x606   : > { %v8127_v60 = vpop.f32.mrb[15].mxu1 }
 0x607   : > { %v7020_v7 = vadd.f32 %v8125_v39, %v8076_v36 }
 0x609   : > { %vm7025_vm15 = vcmp.ge.f32.partialorder %v7020_v7, 0.0  ;;  %v7026_v41 = vmul.f32 0.2, %v7020_v7 }
 0x60b   : > { %v7027_v42 = vsel %vm7025_vm15, %v7020_v7, %v7026_v41 }
 0x60c   : > { %v7035_v44 = vmul.f32 %v8093_v33, %v7027_v42 }
 0x60e   : > { %v7043_v4 = vadd.f32 %v8094_v43, %v7035_v44 }
 0x610   : > { %v7044_v55 = vpack.c.bf16 %v7043_v4, %v7043_v4 }
 0x612   : > { %8155 = vmatmul.mubr.bf16.vlgmr.msra.gmra.mrb[16].mxu1 %v7044_v55 }
 0x6e5   : > { %v7150_v28 = vpop.f32.mrb[16].mxu1 }
 0x6e6   : > { %v7151_v46 = vadd.f32 %v8095_v47, %v7150_v28  ;;  %v8156_v49 = vpop.f32.mrb[17].mxu1 }
 0x6e7   : > { %v7153_v50 = vpop.f32.mrb[18].mxu1 }
 0x6e8   : > { %v8157_v51 = vpop.f32.mrb[19].mxu1  ;;  %v7163_v52 = vsel %vm11645_vm2, %v7151_v46, -1e+30 }
 0x6e9   : > { %7164 = vmax.xlane.f32.xlu0 %v7163_v52 }
 0x776   : > { %v7165_v48 = vpop.xlane.xlu0 %7164 }
 0x777   : > { %v7166_v54 = vsub.f32 %v7163_v52, %v7165_v48 }
 0x779   : > { %v7167_v56 = vmul.f32 1.442695, %v7166_v54 }
 0x77b   : > { %8770 = vpow2.f32 %v7167_v56 }
 0x785   : > { %v8771_v58 = vpop.eup %8770 }
 0x786   : > { %7169 = vadd.xlane.f32.xlu0 %v8771_v58 }
 0x813   : > { %v7170_v59 = vpop.xlane.xlu0 %7169 }
 0x814   : > { %8772 = vrcp.f32 %v7170_v59 }
 0x81e   : > { %v8773_v61 = vpop.eup %8772 }
 0x81f   : > { %v7172_v8 = vmul.f32 %v8773_v61, %v8771_v58 }
 0x821   : > { %v7173_v62 = vsel %vm11645_vm2, %v7172_v8, %v7151_v46 }
 0x822   : > { %7174 = vst [vmem:[%s546_s1] sm:$0xff] %v7173_v62 }
 0x823 PF: > { %s11687_s21 = sld [smem:[#allocation2_spill]] }
 0x829   : > { %s27_s24 = sadd.s32 1, %s11687_s21  }
 0x82a   : > { %p24_p4 = scmp.ge.s32.totalorder %s27_s24, 4  }
 0x82c   :  { %26 = sbr.rel (!%p24_p4) target bundleno = 3 (0x3), region = 118 }

</bundles_post_ra>
